<compile_context>
chip_gen: v6e
topology: v6e:2x2x1
jax: 0.10.0
libtpu: 0.0.40
codegen_flags: <defaults>
</compile_context>

<pallas_src>
import numpy as np

import jax
import jax.numpy as jnp
from jax import lax
from jax.experimental import pallas as pl
from jax.experimental.pallas import tpu as pltpu

NB_HIDDEN = 128


def _round_up(n, m):
    return ((n + m - 1) // m) * m


# ----------------------------- fused Pallas kernel ------------------------- #

def _fused_forward_kernel(x_ref, wc1_ref, w2_ref, wf1_ref, wf2_ref, wpre_ref,
                          wfin_ref, ball_ref, o_ref):
    """Whole forward pass for one batch block of R samples.

    x_ref   : [14*R, 28]   rows = (h, sample), cols = cin*14 + w   (both image channels)
    wc1_ref : [3, 28, 768] banded conv1 weight per kernel-row shift; cols = parity*384 + iw*64 + c
    w2_ref  : [1152, 512]  banded block-diagonal conv2 weight; cols = wf*128 + cout
    wf1_ref : [512, 256]   fc1, both branches block-diagonal, torch-flatten order folded in
    wf2_ref : [256, 20]    fc2, block-diagonal -> output IS torch.cat((o1, o2), 1)
    wpre_ref: [20, 10]     fc_prefinal
    wfin_ref: [10, 128]    fc_final padded to 128 lanes (only column 0 is real)
    ball_ref: [6, 384]     one bias per row, lane offset 0: [bc1(384)|bc2(256)|bf1(256)|bf2(20)|bpre(10)|bfin(128)]
    o_ref   : [R, 128]     prediction in column 0
    """
    R = o_ref.shape[0]
    ball = ball_ref[...]
    nbh2 = wf1_ref.shape[1]

    # ---- conv1 (both branches, block-diag over the 2 input channels): 3 banded matmuls ----
    acc = jnp.dot(x_ref[0:12 * R], wc1_ref[0], preferred_element_type=jnp.float32)
    acc = acc + jnp.dot(x_ref[R:13 * R], wc1_ref[1], preferred_element_type=jnp.float32)
    acc = acc + jnp.dot(x_ref[2 * R:14 * R], wc1_ref[2], preferred_element_type=jnp.float32)
    # acc: [12R, 768], rows = (i, r), cols = parity*384 + iw*64 + c  (conv1 col j = 2*iw + parity)

    # ---- 2x2 maxpool + bias + relu ----
    pj = jnp.maximum(acc[:, 0:384], acc[:, 384:768])            # pool width: aligned lane halves
    bc1 = ball[0:1, 0:384]
    parts = []
    for ih in range(6):                                          # pool height: aligned row blocks
        a = pj[(2 * ih) * R:(2 * ih + 1) * R]
        b = pj[(2 * ih + 1) * R:(2 * ih + 2) * R]
        parts.append(jnp.maximum(jnp.maximum(a, b) + bc1, 0.0))
    y1 = jnp.concatenate(parts, axis=0)                          # [6R, 384], rows=(ih, r), cols=iw*64+c

    # ---- conv2: ONE banded matmul (K = 1152) ----
    c2lhs = jnp.concatenate([y1[0:4 * R], y1[R:5 * R], y1[2 * R:6 * R]], axis=1)  # [4R, 1152]
    z = jnp.dot(c2lhs, w2_ref[...], preferred_element_type=jnp.float32)           # [4R, 512]

    # ---- 2x2 maxpool + bias + relu, flatten to FC features ----
    zw = jnp.concatenate([jnp.maximum(z[:, 0:128], z[:, 128:256]),
                          jnp.maximum(z[:, 256:384], z[:, 384:512])], axis=1)      # [4R, 256]
    bc2 = ball[1:2, 0:256]
    f0 = jnp.maximum(jnp.maximum(zw[0:R], zw[R:2 * R]) + bc2, 0.0)                 # ph = 0
    f1 = jnp.maximum(jnp.maximum(zw[2 * R:3 * R], zw[3 * R:4 * R]) + bc2, 0.0)     # ph = 1
    feat = jnp.concatenate([f0, f1], axis=1)                     # [R, 512], cols = ph*256 + pw*128 + cout

    # ---- FC branches (Dropout(p=0) = identity), block-diagonal packing ----
    h1 = jnp.maximum(jnp.dot(feat, wf1_ref[...], preferred_element_type=jnp.float32)
                     + ball[2:3, 0:nbh2], 0.0)                   # [R, 2*nbh]
    o = jnp.maximum(jnp.dot(h1, wf2_ref[...], preferred_element_type=jnp.float32)
                    + ball[3:4, 0:20], 0.0)                      # [R, 20] == concat(o1, o2)

    # ---- head: fc_prefinal + relu, fc_final (dense 128-lane store, column 0 is the result) ----
    pre = jnp.maximum(jnp.dot(o, wpre_ref[...], preferred_element_type=jnp.float32)
                      + ball[4:5, 0:10], 0.0)                    # [R, 10]
    o_ref[...] = (jnp.dot(pre, wfin_ref[...], preferred_element_type=jnp.float32)
                  + ball[5:6, 0:128])


# ------------------------------- forward glue ------------------------------ #

def branches_to_vec_forward(x, prep, block_b=64):
    """x: [B, 2, 14, 14] float32 -> [B] prediction values."""
    assert block_b % 8 == 0
    B = x.shape[0]
    BB = min(block_b, _round_up(B, 8))      # batch block, multiple of 8 (sublane-aligned slices)
    Bpad = _round_up(B, BB)
    G = Bpad // BB

    x_p = x if Bpad == B else jnp.pad(x, ((0, Bpad - B), (0, 0), (0, 0), (0, 0)))
    # batch-block-major, (h, sample)-row layout: row = (g*14 + h)*BB + r, col = cin*14 + w
    xg = jnp.transpose(x_p.reshape(G, BB, 2, 14, 14), (0, 3, 1, 2, 4))   # [G, 14, BB, 2, 14]
    xim = xg.reshape(G * 14 * BB, 28)

    out = pl.pallas_call(
        _fused_forward_kernel,
        out_shape=jax.ShapeDtypeStruct((Bpad, 128), jnp.float32),
        grid=(G,),
        in_specs=[
            pl.BlockSpec((14 * BB, 28), lambda i: (i, 0)),        # per-step image block
            pl.BlockSpec((3, 28, 768), lambda i: (0, 0, 0)),      # weights: constant index_map
            pl.BlockSpec((1152, 512), lambda i: (0, 0)),          #  -> VMEM-resident across steps
            pl.BlockSpec(prep['wf1'].shape, lambda i: (0, 0)),
            pl.BlockSpec(prep['wf2'].shape, lambda i: (0, 0)),
            pl.BlockSpec((20, 10), lambda i: (0, 0)),
            pl.BlockSpec((10, 128), lambda i: (0, 0)),
            pl.BlockSpec((6, 384), lambda i: (0, 0)),
        ],
        out_specs=pl.BlockSpec((BB, 128), lambda i: (i, 0)),
        compiler_params=pltpu.CompilerParams(
            dimension_semantics=("parallel",),
            vmem_limit_bytes=48 * 1024 * 1024,
        ),
    )(xim, prep['wc1'], prep['w2'], prep['wf1'], prep['wf2'],
      prep['wpre'], prep['wfin'], prep['ball'])
    return out[:B, 0]


# --------------------------- parameter preparation -------------------------- #

def prepare_params(p):
    """One-time host-side weight preprocessing (numpy): fold im2col banding, branch packing,
    pooling-friendly column order and the torch NCHW-flatten permutation into the weights."""
    f32 = np.float32
    nbh = int(np.asarray(p['fc1_w1']).shape[0])

    # conv1: block-diag over the 2 input channels -> 64 output channels (0:32 branch1, 32:64 branch2)
    c1w1 = np.asarray(p['c1_w1'], f32)                        # [32, 1, 3, 3]
    c2w1 = np.asarray(p['c2_w1'], f32)
    W1c = np.zeros((3, 3, 2, 64), f32)                        # [di, dj, cin, cout]
    W1c[:, :, 0, 0:32] = np.transpose(c1w1[:, 0], (1, 2, 0))
    W1c[:, :, 1, 32:64] = np.transpose(c2w1[:, 0], (1, 2, 0))
    # banded matmul weight: rows = cin*14 + w, cols = parity*384 + iw*64 + c  (conv col j = 2*iw+parity)
    wc1 = np.zeros((3, 28, 768), f32)
    for di in range(3):
        for j in range(12):
            iw, parity = j // 2, j % 2
            col = parity * 384 + iw * 64
            for dj in range(3):
                w = j + dj
                for cin in range(2):
                    wc1[di, cin * 14 + w, col:col + 64] = W1c[di, dj, cin]
    b1c = np.concatenate([np.asarray(p['c1_b1'], f32), np.asarray(p['c2_b1'], f32)])
    bc1t = np.tile(b1c, 6)                                    # [384], cols after pooling = iw*64 + c

    # conv2: block-diag over branch channels, banded over the width taps
    c1w2 = np.asarray(p['c1_w2'], f32)                        # [64, 32, 3, 3]
    c2w2 = np.asarray(p['c2_w2'], f32)
    W2c = np.zeros((3, 3, 64, 128), f32)                      # [di2, dj2, cin_feat, cout]
    W2c[:, :, 0:32, 0:64] = np.transpose(c1w2, (2, 3, 1, 0))
    W2c[:, :, 32:64, 64:128] = np.transpose(c2w2, (2, 3, 1, 0))
    # rows = di2*384 + iw*64 + cin_feat, cols = wf*128 + cout
    w2 = np.zeros((1152, 512), f32)
    for di2 in range(3):
        for wf in range(4):
            for dj2 in range(3):
                iw = wf + dj2
                r0 = di2 * 384 + iw * 64
                w2[r0:r0 + 64, wf * 128:wf * 128 + 128] = W2c[di2, dj2]
    b2c = np.concatenate([np.asarray(p['c1_b2'], f32), np.asarray(p['c2_b2'], f32)])
    bc2t = np.tile(b2c, 2)                                    # [256], cols after pooling = pw*128 + cout

    # fc1: fold kernel feature order (ph*256 + pw*128 + branch*64 + c) vs torch (c*4 + ph*2 + pw)
    wf1 = np.zeros((512, 2 * nbh), f32)
    fws = [np.asarray(p['fc1_w1'], f32), np.asarray(p['fc2_w1'], f32)]
    for br in range(2):
        wr = np.transpose(fws[br].reshape(nbh, 64, 2, 2), (2, 3, 1, 0))   # [ph, pw, c, h]
        for ph in range(2):
            for pw in range(2):
                base = ph * 256 + pw * 128 + br * 64
                wf1[base:base + 64, br * nbh:(br + 1) * nbh] = wr[ph, pw]
    bf1 = np.concatenate([np.asarray(p['fc1_b1'], f32), np.asarray(p['fc2_b1'], f32)])

    # fc2 block-diagonal: output [.,20] is exactly torch.cat((o1, o2), 1)
    wf2 = np.zeros((2 * nbh, 20), f32)
    wf2[0:nbh, 0:10] = np.asarray(p['fc1_w2'], f32).T
    wf2[nbh:2 * nbh, 10:20] = np.asarray(p['fc2_w2'], f32).T
    bf2 = np.concatenate([np.asarray(p['fc1_b2'], f32), np.asarray(p['fc2_b2'], f32)])

    # head
    wpre = np.asarray(p['pre_w'], f32).T                      # [20, 10]
    bpre = np.asarray(p['pre_b'], f32)                        # [10]
    wfin = np.zeros((10, 128), f32)                           # lane-dense final weight, col 0 real
    wfin[:, 0] = np.asarray(p['fin_w'], f32)[0]
    bfin = np.zeros((128,), f32)
    bfin[0] = float(np.asarray(p['fin_b'], f32)[0])

    # bias slab: one bias per row, each starting at lane 0 (lane-aligned slices in-kernel)
    ball = np.zeros((6, 384), f32)
    ball[0, 0:384] = bc1t
    ball[1, 0:256] = bc2t
    ball[2, 0:2 * nbh] = bf1
    ball[3, 0:20] = bf2
    ball[4, 0:10] = bpre
    ball[5, 0:128] = bfin

    return {k: jnp.asarray(v) for k, v in
            dict(wc1=wc1, w2=w2, wf1=wf1, wf2=wf2, wpre=wpre, wfin=wfin, ball=ball).items()}


# --------------------------- parameter construction ------------------------ #

def init_params(key, nb_hidden=NB_HIDDEN):
    ks = jax.random.split(key, 20)

    def unif(k, shape, fan_in):
        bound = 1.0 / jnp.sqrt(jnp.float32(fan_in))
        return jax.random.uniform(k, shape, jnp.float32, -bound, bound)

    p = {}
    p['c1_w1'] = unif(ks[0], (32, 1, 3, 3), 9)
    p['c1_b1'] = unif(ks[1], (32,), 9)
    p['c1_w2'] = unif(ks[2], (64, 32, 3, 3), 288)
    p['c1_b2'] = unif(ks[3], (64,), 288)
    p['c2_w1'] = unif(ks[4], (32, 1, 3, 3), 9)
    p['c2_b1'] = unif(ks[5], (32,), 9)
    p['c2_w2'] = unif(ks[6], (64, 32, 3, 3), 288)
    p['c2_b2'] = unif(ks[7], (64,), 288)
    p['fc1_w1'] = unif(ks[8], (nb_hidden, 256), 256)
    p['fc1_b1'] = unif(ks[9], (nb_hidden,), 256)
    p['fc1_w2'] = unif(ks[10], (10, nb_hidden), nb_hidden)
    p['fc1_b2'] = unif(ks[11], (10,), nb_hidden)
    p['fc2_w1'] = unif(ks[12], (nb_hidden, 256), 256)
    p['fc2_b1'] = unif(ks[13], (nb_hidden,), 256)
    p['fc2_w2'] = unif(ks[14], (10, nb_hidden), nb_hidden)
    p['fc2_b2'] = unif(ks[15], (10,), nb_hidden)
    p['pre_w'] = unif(ks[16], (10, 20), 20)
    p['pre_b'] = unif(ks[17], (10,), 20)
    p['fin_w'] = unif(ks[18], (1, 10), 10)
    p['fin_b'] = unif(ks[19], (1,), 10)
    return p


# ------------------------------ pure-JAX reference ------------------------- #

def reference_forward(x, p):
    def conv2d(x_nchw, w, b):
        out = lax.conv_general_dilated(x_nchw, w, (1, 1), 'VALID',
                                       dimension_numbers=('NCHW', 'OIHW', 'NCHW'))
        return out + b.reshape(1, -1, 1, 1)

    def maxpool2(x_nchw):
        return lax.reduce_window(x_nchw, -jnp.inf, lax.max,
                                 (1, 1, 2, 2), (1, 1, 2, 2), 'VALID')

    def branch(xb, w1, b1, w2, b2, fw1, fb1, fw2, fb2):
        h = jnp.maximum(maxpool2(conv2d(xb, w1, b1)), 0.0)
        h = jnp.maximum(maxpool2(conv2d(h, w2, b2)), 0.0)
        h = h.reshape(h.shape[0], -1)
        h = jnp.maximum(h @ fw1.T + fb1, 0.0)
        h = jnp.maximum(h @ fw2.T + fb2, 0.0)
        return h

    o1 = branch(x[:, 0:1], p['c1_w1'], p['c1_b1'], p['c1_w2'], p['c1_b2'],
                p['fc1_w1'], p['fc1_b1'], p['fc1_w2'], p['fc1_b2'])
    o2 = branch(x[:, 1:2], p['c2_w1'], p['c2_b1'], p['c2_w2'], p['c2_b2'],
                p['fc2_w1'], p['fc2_b1'], p['fc2_w2'], p['fc2_b2'])
    cat = jnp.concatenate([o1, o2], axis=1)
    pre = jnp.maximum(cat @ p['pre_w'].T + p['pre_b'], 0.0)
    return (pre @ p['fin_w'].T + p['fin_b']).reshape(-1)


# ----------------------------------- main ----------------------------------- #

if __name__ == "__main__":
    key = jax.random.PRNGKey(0)
    k_x, k_p, k_x2 = jax.random.split(key, 3)
    params = init_params(k_p)
    prep = prepare_params(params)            # one-time weight preprocessing (host, numpy)

    fwd = jax.jit(branches_to_vec_forward, static_argnames=("block_b",))

    # primary check at batch=2 (single grid step, batch padded to 8)
    x = jax.random.normal(k_x, (2, 2, 14, 14), dtype=jnp.float32)
    out = jax.block_until_ready(fwd(x, prep))
    ref = jax.block_until_ready(reference_forward(x, params))
    assert out.shape == (2,), out.shape
    assert jnp.allclose(out, ref, rtol=1e-4, atol=1e-4), (out, ref)

    # secondary check: odd batch + multi-step parallel grid (exercises padding & pipelining)
    x2 = jax.random.normal(k_x2, (13, 2, 14, 14), dtype=jnp.float32)
    out2 = jax.block_until_ready(fwd(x2, prep, block_b=8))
    ref2 = jax.block_until_ready(reference_forward(x2, params))
    assert out2.shape == (13,), out2.shape
    assert jnp.allclose(out2, ref2, rtol=1e-4, atol=1e-4), (out2, ref2)

    print("KERNEL_OK")
</pallas_src>

<mosaic_0001>
module attributes {stable_mosaic.version = 11 : i64} {
  func.func @_fused_forward_kernel(%arg0: i32, %arg1: memref<112x28xf32, #tpu.memory_space<vmem>>, %arg2: memref<3x28x768xf32, #tpu.memory_space<vmem>>, %arg3: memref<1152x512xf32, #tpu.memory_space<vmem>>, %arg4: memref<512x256xf32, #tpu.memory_space<vmem>>, %arg5: memref<256x20xf32, #tpu.memory_space<vmem>>, %arg6: memref<20x10xf32, #tpu.memory_space<vmem>>, %arg7: memref<10x128xf32, #tpu.memory_space<vmem>>, %arg8: memref<6x384xf32, #tpu.memory_space<vmem>>, %arg9: memref<8x128xf32, #tpu.memory_space<vmem>>) attributes {dimension_semantics = [#tpu.dimension_semantics<parallel>], iteration_bounds = array<i64: 1>, scalar_prefetch = 0 : i64, scratch_operands = 0 : i64, tpu.core_type = #tpu.core_type<tc>, window_params = [{transform_indices = @transform_0, window_bounds = array<i64: 112, 28>}, {pipeline_mode = #tpu.pipeline_mode<synchronous>, transform_indices = @transform_1, window_bounds = array<i64: 3, 28, 768>}, {pipeline_mode = #tpu.pipeline_mode<synchronous>, transform_indices = @transform_2, window_bounds = array<i64: 1152, 512>}, {pipeline_mode = #tpu.pipeline_mode<synchronous>, transform_indices = @transform_3, window_bounds = array<i64: 512, 256>}, {pipeline_mode = #tpu.pipeline_mode<synchronous>, transform_indices = @transform_4, window_bounds = array<i64: 256, 20>}, {pipeline_mode = #tpu.pipeline_mode<synchronous>, transform_indices = @transform_5, window_bounds = array<i64: 20, 10>}, {pipeline_mode = #tpu.pipeline_mode<synchronous>, transform_indices = @transform_6, window_bounds = array<i64: 10, 128>}, {pipeline_mode = #tpu.pipeline_mode<synchronous>, transform_indices = @transform_7, window_bounds = array<i64: 6, 384>}, {transform_indices = @transform_8, window_bounds = array<i64: 8, 128>}]} {
    %c0 = arith.constant 0 : index
    %c0_0 = arith.constant 0 : index
    %0 = vector.load %arg8[%c0, %c0_0] : memref<6x384xf32, #tpu.memory_space<vmem>>, vector<6x384xf32>
    %c0_1 = arith.constant 0 : index
    %c0_2 = arith.constant 0 : index
    %1 = vector.load %arg1[%c0_1, %c0_2] : memref<112x28xf32, #tpu.memory_space<vmem>>, vector<96x28xf32>
    %c0_3 = arith.constant 0 : index
    %c0_4 = arith.constant 0 : index
    %c0_5 = arith.constant 0 : index
    %2 = vector.load %arg2[%c0_3, %c0_4, %c0_5] : memref<3x28x768xf32, #tpu.memory_space<vmem>>, vector<1x28x768xf32>
    %3 = vector.shape_cast %2 : vector<1x28x768xf32> to vector<28x768xf32>
    %cst = arith.constant dense<0.000000e+00> : vector<96x768xf32>
    %4 = tpu.matmul %1, %3, %cst {dimension_numbers = #tpu.dot_dimension_numbers<[1], [0], [0], [1], [0, 0, 1, 1], [], []>} : vector<96x28xf32>, vector<28x768xf32>, vector<96x768xf32> -> vector<96x768xf32>
    %c8 = arith.constant 8 : index
    %c0_6 = arith.constant 0 : index
    %5 = vector.load %arg1[%c8, %c0_6] : memref<112x28xf32, #tpu.memory_space<vmem>>, vector<96x28xf32>
    %c1 = arith.constant 1 : index
    %c0_7 = arith.constant 0 : index
    %c0_8 = arith.constant 0 : index
    %6 = vector.load %arg2[%c1, %c0_7, %c0_8] : memref<3x28x768xf32, #tpu.memory_space<vmem>>, vector<1x28x768xf32>
    %7 = vector.shape_cast %6 : vector<1x28x768xf32> to vector<28x768xf32>
    %cst_9 = arith.constant dense<0.000000e+00> : vector<96x768xf32>
    %8 = tpu.matmul %5, %7, %cst_9 {dimension_numbers = #tpu.dot_dimension_numbers<[1], [0], [0], [1], [0, 0, 1, 1], [], []>} : vector<96x28xf32>, vector<28x768xf32>, vector<96x768xf32> -> vector<96x768xf32>
    %9 = arith.addf %4, %8 : vector<96x768xf32>
    %c16 = arith.constant 16 : index
    %c0_10 = arith.constant 0 : index
    %10 = vector.load %arg1[%c16, %c0_10] : memref<112x28xf32, #tpu.memory_space<vmem>>, vector<96x28xf32>
    %c2 = arith.constant 2 : index
    %c0_11 = arith.constant 0 : index
    %c0_12 = arith.constant 0 : index
    %11 = vector.load %arg2[%c2, %c0_11, %c0_12] : memref<3x28x768xf32, #tpu.memory_space<vmem>>, vector<1x28x768xf32>
    %12 = vector.shape_cast %11 : vector<1x28x768xf32> to vector<28x768xf32>
    %cst_13 = arith.constant dense<0.000000e+00> : vector<96x768xf32>
    %13 = tpu.matmul %10, %12, %cst_13 {dimension_numbers = #tpu.dot_dimension_numbers<[1], [0], [0], [1], [0, 0, 1, 1], [], []>} : vector<96x28xf32>, vector<28x768xf32>, vector<96x768xf32> -> vector<96x768xf32>
    %14 = arith.addf %9, %13 : vector<96x768xf32>
    %15 = vector.extract_strided_slice %14 {offsets = [0, 0], sizes = [96, 384], strides = [1, 1]} : vector<96x768xf32> to vector<96x384xf32>
    %16 = vector.extract_strided_slice %14 {offsets = [0, 384], sizes = [96, 384], strides = [1, 1]} : vector<96x768xf32> to vector<96x384xf32>
    %17 = arith.maximumf %15, %16 : vector<96x384xf32>
    %18 = vector.extract_strided_slice %0 {offsets = [0, 0], sizes = [1, 384], strides = [1, 1]} : vector<6x384xf32> to vector<1x384xf32>
    %19 = vector.extract_strided_slice %17 {offsets = [0, 0], sizes = [8, 384], strides = [1, 1]} : vector<96x384xf32> to vector<8x384xf32>
    %20 = vector.extract_strided_slice %17 {offsets = [8, 0], sizes = [8, 384], strides = [1, 1]} : vector<96x384xf32> to vector<8x384xf32>
    %21 = arith.maximumf %19, %20 : vector<8x384xf32>
    %22 = vector.broadcast %18 : vector<1x384xf32> to vector<8x384xf32>
    %23 = arith.addf %21, %22 : vector<8x384xf32>
    %cst_14 = arith.constant 0.000000e+00 : f32
    %24 = vector.broadcast %cst_14 : f32 to vector<8x384xf32>
    %25 = arith.maximumf %23, %24 : vector<8x384xf32>
    %26 = vector.extract_strided_slice %17 {offsets = [16, 0], sizes = [8, 384], strides = [1, 1]} : vector<96x384xf32> to vector<8x384xf32>
    %27 = vector.extract_strided_slice %17 {offsets = [24, 0], sizes = [8, 384], strides = [1, 1]} : vector<96x384xf32> to vector<8x384xf32>
    %28 = arith.maximumf %26, %27 : vector<8x384xf32>
    %29 = vector.broadcast %18 : vector<1x384xf32> to vector<8x384xf32>
    %30 = arith.addf %28, %29 : vector<8x384xf32>
    %cst_15 = arith.constant 0.000000e+00 : f32
    %31 = vector.broadcast %cst_15 : f32 to vector<8x384xf32>
    %32 = arith.maximumf %30, %31 : vector<8x384xf32>
    %33 = vector.extract_strided_slice %17 {offsets = [32, 0], sizes = [8, 384], strides = [1, 1]} : vector<96x384xf32> to vector<8x384xf32>
    %34 = vector.extract_strided_slice %17 {offsets = [40, 0], sizes = [8, 384], strides = [1, 1]} : vector<96x384xf32> to vector<8x384xf32>
    %35 = arith.maximumf %33, %34 : vector<8x384xf32>
    %36 = vector.broadcast %18 : vector<1x384xf32> to vector<8x384xf32>
    %37 = arith.addf %35, %36 : vector<8x384xf32>
    %cst_16 = arith.constant 0.000000e+00 : f32
    %38 = vector.broadcast %cst_16 : f32 to vector<8x384xf32>
    %39 = arith.maximumf %37, %38 : vector<8x384xf32>
    %40 = vector.extract_strided_slice %17 {offsets = [48, 0], sizes = [8, 384], strides = [1, 1]} : vector<96x384xf32> to vector<8x384xf32>
    %41 = vector.extract_strided_slice %17 {offsets = [56, 0], sizes = [8, 384], strides = [1, 1]} : vector<96x384xf32> to vector<8x384xf32>
    %42 = arith.maximumf %40, %41 : vector<8x384xf32>
    %43 = vector.broadcast %18 : vector<1x384xf32> to vector<8x384xf32>
    %44 = arith.addf %42, %43 : vector<8x384xf32>
    %cst_17 = arith.constant 0.000000e+00 : f32
    %45 = vector.broadcast %cst_17 : f32 to vector<8x384xf32>
    %46 = arith.maximumf %44, %45 : vector<8x384xf32>
    %47 = vector.extract_strided_slice %17 {offsets = [64, 0], sizes = [8, 384], strides = [1, 1]} : vector<96x384xf32> to vector<8x384xf32>
    %48 = vector.extract_strided_slice %17 {offsets = [72, 0], sizes = [8, 384], strides = [1, 1]} : vector<96x384xf32> to vector<8x384xf32>
    %49 = arith.maximumf %47, %48 : vector<8x384xf32>
    %50 = vector.broadcast %18 : vector<1x384xf32> to vector<8x384xf32>
    %51 = arith.addf %49, %50 : vector<8x384xf32>
    %cst_18 = arith.constant 0.000000e+00 : f32
    %52 = vector.broadcast %cst_18 : f32 to vector<8x384xf32>
    %53 = arith.maximumf %51, %52 : vector<8x384xf32>
    %54 = vector.extract_strided_slice %17 {offsets = [80, 0], sizes = [8, 384], strides = [1, 1]} : vector<96x384xf32> to vector<8x384xf32>
    %55 = vector.extract_strided_slice %17 {offsets = [88, 0], sizes = [8, 384], strides = [1, 1]} : vector<96x384xf32> to vector<8x384xf32>
    %56 = arith.maximumf %54, %55 : vector<8x384xf32>
    %57 = vector.broadcast %18 : vector<1x384xf32> to vector<8x384xf32>
    %58 = arith.addf %56, %57 : vector<8x384xf32>
    %cst_19 = arith.constant 0.000000e+00 : f32
    %59 = vector.broadcast %cst_19 : f32 to vector<8x384xf32>
    %60 = arith.maximumf %58, %59 : vector<8x384xf32>
    %61 = tpu.concatenate %25, %32, %39, %46, %53, %60 in 0 : vector<8x384xf32>, vector<8x384xf32>, vector<8x384xf32>, vector<8x384xf32>, vector<8x384xf32>, vector<8x384xf32> -> vector<48x384xf32>
    %62 = vector.extract_strided_slice %61 {offsets = [0, 0], sizes = [32, 384], strides = [1, 1]} : vector<48x384xf32> to vector<32x384xf32>
    %63 = vector.extract_strided_slice %61 {offsets = [8, 0], sizes = [32, 384], strides = [1, 1]} : vector<48x384xf32> to vector<32x384xf32>
    %64 = vector.extract_strided_slice %61 {offsets = [16, 0], sizes = [32, 384], strides = [1, 1]} : vector<48x384xf32> to vector<32x384xf32>
    %65 = tpu.concatenate %62, %63, %64 in 1 : vector<32x384xf32>, vector<32x384xf32>, vector<32x384xf32> -> vector<32x1152xf32>
    %c0_20 = arith.constant 0 : index
    %c0_21 = arith.constant 0 : index
    %66 = vector.load %arg3[%c0_20, %c0_21] : memref<1152x512xf32, #tpu.memory_space<vmem>>, vector<1152x512xf32>
    %cst_22 = arith.constant dense<0.000000e+00> : vector<32x512xf32>
    %67 = tpu.matmul %65, %66, %cst_22 {dimension_numbers = #tpu.dot_dimension_numbers<[1], [0], [0], [1], [0, 0, 1, 1], [], []>} : vector<32x1152xf32>, vector<1152x512xf32>, vector<32x512xf32> -> vector<32x512xf32>
    %68 = vector.extract_strided_slice %67 {offsets = [0, 0], sizes = [32, 128], strides = [1, 1]} : vector<32x512xf32> to vector<32x128xf32>
    %69 = vector.extract_strided_slice %67 {offsets = [0, 128], sizes = [32, 128], strides = [1, 1]} : vector<32x512xf32> to vector<32x128xf32>
    %70 = arith.maximumf %68, %69 : vector<32x128xf32>
    %71 = vector.extract_strided_slice %67 {offsets = [0, 256], sizes = [32, 128], strides = [1, 1]} : vector<32x512xf32> to vector<32x128xf32>
    %72 = vector.extract_strided_slice %67 {offsets = [0, 384], sizes = [32, 128], strides = [1, 1]} : vector<32x512xf32> to vector<32x128xf32>
    %73 = arith.maximumf %71, %72 : vector<32x128xf32>
    %74 = tpu.concatenate %70, %73 in 1 : vector<32x128xf32>, vector<32x128xf32> -> vector<32x256xf32>
    %75 = vector.extract_strided_slice %0 {offsets = [1, 0], sizes = [1, 256], strides = [1, 1]} : vector<6x384xf32> to vector<1x256xf32>
    %76 = vector.extract_strided_slice %74 {offsets = [0, 0], sizes = [8, 256], strides = [1, 1]} : vector<32x256xf32> to vector<8x256xf32>
    %77 = vector.extract_strided_slice %74 {offsets = [8, 0], sizes = [8, 256], strides = [1, 1]} : vector<32x256xf32> to vector<8x256xf32>
    %78 = arith.maximumf %76, %77 : vector<8x256xf32>
    %79 = vector.broadcast %75 : vector<1x256xf32> to vector<8x256xf32>
    %80 = arith.addf %78, %79 : vector<8x256xf32>
    %cst_23 = arith.constant 0.000000e+00 : f32
    %81 = vector.broadcast %cst_23 : f32 to vector<8x256xf32>
    %82 = arith.maximumf %80, %81 : vector<8x256xf32>
    %83 = vector.extract_strided_slice %74 {offsets = [16, 0], sizes = [8, 256], strides = [1, 1]} : vector<32x256xf32> to vector<8x256xf32>
    %84 = vector.extract_strided_slice %74 {offsets = [24, 0], sizes = [8, 256], strides = [1, 1]} : vector<32x256xf32> to vector<8x256xf32>
    %85 = arith.maximumf %83, %84 : vector<8x256xf32>
    %86 = vector.broadcast %75 : vector<1x256xf32> to vector<8x256xf32>
    %87 = arith.addf %85, %86 : vector<8x256xf32>
    %cst_24 = arith.constant 0.000000e+00 : f32
    %88 = vector.broadcast %cst_24 : f32 to vector<8x256xf32>
    %89 = arith.maximumf %87, %88 : vector<8x256xf32>
    %90 = tpu.concatenate %82, %89 in 1 : vector<8x256xf32>, vector<8x256xf32> -> vector<8x512xf32>
    %c0_25 = arith.constant 0 : index
    %c0_26 = arith.constant 0 : index
    %91 = vector.load %arg4[%c0_25, %c0_26] : memref<512x256xf32, #tpu.memory_space<vmem>>, vector<512x256xf32>
    %cst_27 = arith.constant dense<0.000000e+00> : vector<8x256xf32>
    %92 = tpu.matmul %90, %91, %cst_27 {dimension_numbers = #tpu.dot_dimension_numbers<[1], [0], [0], [1], [0, 0, 1, 1], [], []>} : vector<8x512xf32>, vector<512x256xf32>, vector<8x256xf32> -> vector<8x256xf32>
    %93 = vector.extract_strided_slice %0 {offsets = [2, 0], sizes = [1, 256], strides = [1, 1]} : vector<6x384xf32> to vector<1x256xf32>
    %94 = vector.broadcast %93 : vector<1x256xf32> to vector<8x256xf32>
    %95 = arith.addf %92, %94 : vector<8x256xf32>
    %cst_28 = arith.constant 0.000000e+00 : f32
    %96 = vector.broadcast %cst_28 : f32 to vector<8x256xf32>
    %97 = arith.maximumf %95, %96 : vector<8x256xf32>
    %c0_29 = arith.constant 0 : index
    %c0_30 = arith.constant 0 : index
    %98 = vector.load %arg5[%c0_29, %c0_30] : memref<256x20xf32, #tpu.memory_space<vmem>>, vector<256x20xf32>
    %cst_31 = arith.constant dense<0.000000e+00> : vector<8x20xf32>
    %99 = tpu.matmul %97, %98, %cst_31 {dimension_numbers = #tpu.dot_dimension_numbers<[1], [0], [0], [1], [0, 0, 1, 1], [], []>} : vector<8x256xf32>, vector<256x20xf32>, vector<8x20xf32> -> vector<8x20xf32>
    %100 = vector.extract_strided_slice %0 {offsets = [3, 0], sizes = [1, 20], strides = [1, 1]} : vector<6x384xf32> to vector<1x20xf32>
    %101 = vector.broadcast %100 : vector<1x20xf32> to vector<8x20xf32>
    %102 = arith.addf %99, %101 : vector<8x20xf32>
    %cst_32 = arith.constant 0.000000e+00 : f32
    %103 = vector.broadcast %cst_32 : f32 to vector<8x20xf32>
    %104 = arith.maximumf %102, %103 : vector<8x20xf32>
    %c0_33 = arith.constant 0 : index
    %c0_34 = arith.constant 0 : index
    %105 = vector.load %arg6[%c0_33, %c0_34] : memref<20x10xf32, #tpu.memory_space<vmem>>, vector<20x10xf32>
    %cst_35 = arith.constant dense<0.000000e+00> : vector<8x10xf32>
    %106 = tpu.matmul %104, %105, %cst_35 {dimension_numbers = #tpu.dot_dimension_numbers<[1], [0], [0], [1], [0, 0, 1, 1], [], []>} : vector<8x20xf32>, vector<20x10xf32>, vector<8x10xf32> -> vector<8x10xf32>
    %107 = vector.extract_strided_slice %0 {offsets = [4, 0], sizes = [1, 10], strides = [1, 1]} : vector<6x384xf32> to vector<1x10xf32>
    %108 = vector.broadcast %107 : vector<1x10xf32> to vector<8x10xf32>
    %109 = arith.addf %106, %108 : vector<8x10xf32>
    %cst_36 = arith.constant 0.000000e+00 : f32
    %110 = vector.broadcast %cst_36 : f32 to vector<8x10xf32>
    %111 = arith.maximumf %109, %110 : vector<8x10xf32>
    %c0_37 = arith.constant 0 : index
    %c0_38 = arith.constant 0 : index
    %112 = vector.load %arg7[%c0_37, %c0_38] : memref<10x128xf32, #tpu.memory_space<vmem>>, vector<10x128xf32>
    %cst_39 = arith.constant dense<0.000000e+00> : vector<8x128xf32>
    %113 = tpu.matmul %111, %112, %cst_39 {dimension_numbers = #tpu.dot_dimension_numbers<[1], [0], [0], [1], [0, 0, 1, 1], [], []>} : vector<8x10xf32>, vector<10x128xf32>, vector<8x128xf32> -> vector<8x128xf32>
    %114 = vector.extract_strided_slice %0 {offsets = [5, 0], sizes = [1, 128], strides = [1, 1]} : vector<6x384xf32> to vector<1x128xf32>
    %115 = vector.broadcast %114 : vector<1x128xf32> to vector<8x128xf32>
    %116 = arith.addf %113, %115 : vector<8x128xf32>
    %c0_40 = arith.constant 0 : index
    %c0_41 = arith.constant 0 : index
    %117 = vector.load %arg9[%c0_40, %c0_41] : memref<8x128xf32, #tpu.memory_space<vmem>>, vector<8x128xf32>
    tpu.vector_store %arg9[%c0_40, %c0_41], %116 {strides = array<i32>} : memref<8x128xf32, #tpu.memory_space<vmem>>, vector<8x128xf32>,
    return
  }
  func.func @transform_0(%arg0: i32) -> (i32, i32) {
    %c0_i32 = arith.constant 0 : i32
    %c0_i32_0 = arith.constant 0 : i32
    return %arg0, %c0_i32 : i32, i32
  }
  func.func @transform_1(%arg0: i32) -> (i32, i32, i32) {
    %c0_i32 = arith.constant 0 : i32
    %c0_i32_0 = arith.constant 0 : i32
    %c0_i32_1 = arith.constant 0 : i32
    %c0_i32_2 = arith.constant 0 : i32
    return %c0_i32, %c0_i32_0, %c0_i32_1 : i32, i32, i32
  }
  func.func @transform_2(%arg0: i32) -> (i32, i32) {
    %c0_i32 = arith.constant 0 : i32
    %c0_i32_0 = arith.constant 0 : i32
    %c0_i32_1 = arith.constant 0 : i32
    return %c0_i32, %c0_i32_0 : i32, i32
  }
  func.func @transform_3(%arg0: i32) -> (i32, i32) {
    %c0_i32 = arith.constant 0 : i32
    %c0_i32_0 = arith.constant 0 : i32
    %c0_i32_1 = arith.constant 0 : i32
    return %c0_i32, %c0_i32_0 : i32, i32
  }
  func.func @transform_4(%arg0: i32) -> (i32, i32) {
    %c0_i32 = arith.constant 0 : i32
    %c0_i32_0 = arith.constant 0 : i32
    %c0_i32_1 = arith.constant 0 : i32
    return %c0_i32, %c0_i32_0 : i32, i32
  }
  func.func @transform_5(%arg0: i32) -> (i32, i32) {
    %c0_i32 = arith.constant 0 : i32
    %c0_i32_0 = arith.constant 0 : i32
    %c0_i32_1 = arith.constant 0 : i32
    return %c0_i32, %c0_i32_0 : i32, i32
  }
  func.func @transform_6(%arg0: i32) -> (i32, i32) {
    %c0_i32 = arith.constant 0 : i32
    %c0_i32_0 = arith.constant 0 : i32
    %c0_i32_1 = arith.constant 0 : i32
    return %c0_i32, %c0_i32_0 : i32, i32
  }
  func.func @transform_7(%arg0: i32) -> (i32, i32) {
    %c0_i32 = arith.constant 0 : i32
    %c0_i32_0 = arith.constant 0 : i32
    %c0_i32_1 = arith.constant 0 : i32
    return %c0_i32, %c0_i32_0 : i32, i32
  }
  func.func @transform_8(%arg0: i32) -> (i32, i32) {
    %c0_i32 = arith.constant 0 : i32
    %c0_i32_0 = arith.constant 0 : i32
    return %arg0, %c0_i32 : i32, i32
  }
}

</mosaic_0001>

<bundles_post_ra>
// kernel: branches_to_vec_forward.1
= control target key start
LH: loop header
LB: loop body
LE: loop exit
PB: predicated region body
PF: predicated region fallthrough
CT: control target
= control target key end

     0   :  { %13 = vsyncpa [#allocation3], 0  ;;  %s5468_s0 = inlined_call_operand.vmem [shape: f32[112,28], index: 0, kind: input, shape index: {}]   ;;  %s5469_s1 = inlined_call_operand.hbm [shape: f32[3,28,768], index: 1, kind: input, shape index: {}]   ;;  %s5470_s2 = inlined_call_operand.hbm [shape: f32[1152,512], index: 2, kind: input, shape index: {}]   ;;  %s5471_s3 = inlined_call_operand.hbm [shape: f32[512,256], index: 3, kind: input, shape index: {}]   ;;  %s5472_s4 = inlined_call_operand.vmem [shape: f32[256,20], index: 4, kind: input, shape index: {}]   ;;  %s5473_s5 = inlined_call_operand.vmem [shape: f32[20,10], index: 5, kind: input, shape index: {}]   ;;  %s5474_s6 = inlined_call_operand.hbm [shape: f32[10,128], index: 6, kind: input, shape index: {}]   ;;  %s5475_s7 = inlined_call_operand.hbm [shape: f32[6,384], index: 7, kind: input, shape index: {}]   ;;  %s5476_s8 = inlined_call_operand.vmem [shape: f32[8,128], index: 8, kind: output, shape index: {}]  }
   0x1   :  { %14 = vsyncpa [#allocation5], 0 }
   0x2   :  { %15 = vsyncpa [#allocation8], 0  ;;  %s4104_s27 = smov [#allocation4]  }
   0x3   :  { %s35_s28 = sshll.u32 %s4104_s27, 4  ;;  %s36_s28 = int_to_ptr.vmem [resolvable:$true] %s35_s28 }
   0x4   :  { %s4006_s29 = scalar_lea.vmem %s36_s28, 73728  ;;  %p4011_p1 = scmp.lt.s32.totalorder %s36_s28, %s36_s28 }
   0x5   :  { %p4007_p0 = scmp.ne.s32.totalorder %s36_s28, %s4006_s29  ;;  %p4012_p2 = scmp.lt.s32.totalorder %s4006_s29, %s4006_s29 }
   0x7   :  { %p4013_p3 = por %p4012_p2, %p4011_p1 }
   0x9   :  { %p4014_p4 = pnand %p4013_p3, %p4007_p0 }
   0xb   :  { %4017 = shalt.err (!%p4014_p4)
}
   0xc   :  { %s4105_s30 = smov 512   ;;  %s4106_s9 = smov 32  }
   0xd   :  { %41 = dma.hbm_to_vmem [thread:$0]  %s5470_s2, 73728, %s36_s28, [#allocation5], %s4105_s30, %s4105_s30, %s4106_s9  }
   0xe   :  { %s4107_s12 = smov [#allocation7]  }
   0xf   :  { %s63_s13 = sshll.u32 %s4107_s12, 4  ;;  %s64_s13 = int_to_ptr.vmem [resolvable:$true] %s63_s13 }
  0x10   :  { %s4026_s14 = scalar_lea.vmem %s64_s13, 256  ;;  %p4031_p6 = scmp.lt.s32.totalorder %s64_s13, %s64_s13 }
  0x11   :  { %p4027_p5 = scmp.ne.s32.totalorder %s64_s13, %s4026_s14  ;;  %p4032_p7 = scmp.lt.s32.totalorder %s4026_s14, %s4026_s14 }
  0x13   :  { %p4033_p8 = por %p4032_p7, %p4031_p6 }
  0x15   :  { %p4034_p9 = pnand %p4033_p8, %p4027_p5 }
  0x17   :  { %4037 = shalt.err (!%p4034_p9)
}
  0x18   :  { %s4108_s15 = smov 128   ;;  %s4109_s16 = smov 8  }
  0x19   :  { %69 = dma.hbm_to_vmem [thread:$0]  %s5474_s6, 256, %s64_s13, [#allocation8], %s4108_s15, %s4108_s15, %s4109_s16  }
  0x1a   :  { %s4110_s19 = smov [#allocation2]  }
  0x1b   :  { %s23_s20 = sshll.u32 %s4110_s19, 4  ;;  %s24_s20 = int_to_ptr.vmem [resolvable:$true] %s23_s20 }
  0x1c   :  { %s4046_s2 = scalar_lea.vmem %s24_s20, 9216  ;;  %p4051_p11 = scmp.lt.s32.totalorder %s24_s20, %s24_s20 }
  0x1d   :  { %p4047_p10 = scmp.ne.s32.totalorder %s24_s20, %s4046_s2  ;;  %p4052_p12 = scmp.lt.s32.totalorder %s4046_s2, %s4046_s2 }
  0x1f   :  { %p4053_p13 = por %p4052_p12, %p4051_p11 }
  0x21   :  { %p4054_p0 = pnand %p4053_p13, %p4047_p10 }
  0x23   :  { %4057 = shalt.err (!%p4054_p0)
}
  0x24   :  { %s4111_s21 = smov 768   ;;  %s4112_s22 = smov 48  }
  0x25   :  { %29 = dma.hbm_to_vmem [thread:$0]  %s5469_s1, 9216, %s24_s20, [#allocation3], %s4111_s21, %s4111_s21, %s4112_s22  }
  0x26   :  { %s4113_s25 = smov [#allocation6]  }
  0x27   :  { %s47_s26 = sshll.u32 %s4113_s25, 4  ;;  %s48_s26 = int_to_ptr.vmem [resolvable:$true] %s47_s26 }
  0x28   :  { %s4066_s6 = scalar_lea.vmem %s48_s26, 16384  ;;  %p4071_p2 = scmp.lt.s32.totalorder %s48_s26, %s48_s26 }
  0x29   :  { %p4067_p1 = scmp.ne.s32.totalorder %s48_s26, %s4066_s6  ;;  %p4072_p3 = scmp.lt.s32.totalorder %s4066_s6, %s4066_s6 }
  0x2b   :  { %p4073_p4 = por %p4072_p3, %p4071_p2 }
  0x2d   :  { %p4074_p5 = pnand %p4073_p4, %p4067_p1 }
  0x2f   :  { %4077 = shalt.err (!%p4074_p5)
}
  0x30   :  { %s4114_s27 = smov 256   ;;  %s4115_s28 = smov 16  }
  0x31   :  { %53 = dma.hbm_to_vmem [thread:$0]  %s5471_s3, 16384, %s48_s26, [#allocation5], %s4114_s27, %s4114_s27, %s4115_s28  }
  0x32   :  { %s4116_s9 = smov [#allocation9]  }
  0x33   :  { %s76_s10 = sshll.u32 %s4116_s9, 4  ;;  %s77_s10 = int_to_ptr.vmem [resolvable:$true] %s76_s10 }
  0x34   :  { %s4086_s1 = scalar_lea.vmem %s77_s10, 384  ;;  %p4091_p7 = scmp.lt.s32.totalorder %s77_s10, %s77_s10 }
  0x35   :  { %p4087_p6 = scmp.ne.s32.totalorder %s77_s10, %s4086_s1  ;;  %p4092_p8 = scmp.lt.s32.totalorder %s4086_s1, %s4086_s1 }
  0x37   :  { %p4093_p9 = por %p4092_p8, %p4091_p7 }
  0x39   :  { %p4094_p10 = pnand %p4093_p9, %p4087_p6 }
  0x3b   :  { %4097 = shalt.err (!%p4094_p10)
}
  0x3c   :  { %79 = dma.hbm_to_vmem [thread:$0]  %s5475_s7, 384, %s77_s10, [#allocation8]  }
  0x3d   :  { %4098 = dma.done.wait [#allocation3], 9216  }
  0x3e   :  { %4099 = vsyncadd [#allocation3], 4294958080 }
  0x3f   :  { %4100 = dma.done.wait [#allocation5], 90112  }
  0x40   :  { %4101 = vsyncadd [#allocation5], 4294877184 }
  0x41   :  { %4102 = dma.done.wait [#allocation8], 640  }
  0x42   :  { %4103 = vsyncadd [#allocation8], 4294966656  ;;  %v5477_v0 = vmov 0.0   ;;  %vm197_vm0 = vcmask 1043456   ;;  %v155_v1 = vld [vmem:[#allocation2 + $0x158] sm:$0xf] }
  0x43   :  { %280 = vmatprep.mubr.f32.mxu0 %v5477_v0  ;;  %417 = vmatprep.mubr.f32.mxu1 %v5477_v0  ;;  %v157_v2 = vld [vmem:[#allocation2 + $0x168] sm:$0xf]  ;;  %v154_v3 = vld [vmem:[#allocation2 + $0x150] sm:$0xf]  ;;  %v156_v4 = vld [vmem:[#allocation2 + $0x160] sm:$0xf] }
  0x44   :  { %3793 = vmatprep.subr.msk.mxu0 %vm197_vm0, %v155_v1  ;;  %3807 = vmatprep.subr.msk.mxu1 %vm197_vm0, %v157_v2  ;;  %v149_v5 = vld [vmem:[#allocation2 + $0x128] sm:$0xff]  ;;  %v151_v6 = vld [vmem:[#allocation2 + $0x138] sm:$0xff]  ;;  %v148_v7 = vld [vmem:[#allocation2 + $0x120] sm:$0xff]  ;;  %vm160_vm1 = vcmask 228352   ;;  %vm4118_vm2 = vmmov 0   ;;  %vm3623_vm3 = vcmask 162816  }
  0x45   :  { %3794 = vmatpush1.msk.msra.mxu0 %vm197_vm0, %v154_v3  ;;  %3808 = vmatpush1.msk.msra.mxu1 %vm197_vm0, %v156_v4  ;;  %v150_v8 = vld [vmem:[#allocation2 + $0x130] sm:$0xff]  ;;  %v143_v9 = vld [vmem:[#allocation2 + $0xf8] sm:$0xff]  ;;  %v145_v10 = vld [vmem:[#allocation2 + $0x108] sm:$0xff]  ;;  %vm3711_vm4 = vcmask 1041408   ;;  %vm3707_vm5 = vcmask 80896  }
  0x46   :  { %242 = vmatprep.subr.mxu0 %v149_v5  ;;  %379 = vmatprep.subr.mxu1 %v151_v6  ;;  %v142_v11 = vld [vmem:[#allocation2 + $0xf0] sm:$0xff]  ;;  %v144_v12 = vld [vmem:[#allocation2 + $0x100] sm:$0xff]  ;;  %v137_v13 = vld [vmem:[#allocation2 + $0xc8] sm:$0xff] }
  0x47   :  { %243 = vmatpush1.msra.mxu0 %v148_v7  ;;  %380 = vmatpush1.msra.mxu1 %v150_v8  ;;  %v139_v14 = vld [vmem:[#allocation2 + $0xd8] sm:$0xff]  ;;  %v136_v15 = vld [vmem:[#allocation2 + $0xc0] sm:$0xff]  ;;  %v138_v16 = vld [vmem:[#allocation2 + $0xd0] sm:$0xff] }
  0x48   :  { %244 = vmatprep.subr.mxu0 %v143_v9  ;;  %381 = vmatprep.subr.mxu1 %v145_v10  ;;  %v4188_v17 = vld [vmem:[%s5468_s0 + $0x8] sm:$0xff]  ;;  %v159_v18 = vld [vmem:[#allocation2 + $0x178] sm:$0xf]  ;;  %v158_v19 = vld [vmem:[#allocation2 + $0x170] sm:$0xf] }
  0x49   :  { %245 = vmatpush1.msra.mxu0 %v142_v11  ;;  %382 = vmatpush1.msra.mxu1 %v144_v12  ;;  %v153_v20 = vld [vmem:[#allocation2 + $0x148] sm:$0xff]  ;;  %v4199_v21 = vld [vmem:[%s5468_s0 + $0x10] sm:$0xff]  ;;  %v129_v22 = vld [vmem:[#allocation2 + $0x98] sm:$0xf] }
  0x4a   :  { %246 = vmatprep.subr.mxu0 %v137_v13  ;;  %383 = vmatprep.subr.mxu1 %v139_v14  ;;  %v152_v23 = vld [vmem:[#allocation2 + $0x140] sm:$0xff]  ;;  %v128_v24 = vld [vmem:[#allocation2 + $0x90] sm:$0xf]  ;;  %v147_v25 = vld [vmem:[#allocation2 + $0x118] sm:$0xff] }
  0x4b   :  { %247 = vmatpush1.msra.mxu0 %v136_v15  ;;  %384 = vmatpush1.msra.mxu1 %v138_v16  ;;  %v123_v26 = vld [vmem:[#allocation2 + $0x68] sm:$0xff]  ;;  %v4213_v27 = vld [vmem:[%s5468_s0 + $0x18] sm:$0xff]  ;;  %v146_v28 = vld [vmem:[#allocation2 + $0x110] sm:$0xff] }
  0x4c   :  { %3795 = vmatmul.mubr.msk.f32.vlgmr.msra.gmra.mxu0 %vm160_vm1, %v4188_v17  ;;  %3809 = vmatmul.mubr.msk.f32.vlgmr.msra.gmra.mxu1 %vm160_vm1, %v4188_v17  ;;  %v122_v29 = vld [vmem:[#allocation2 + $0x60] sm:$0xff]  ;;  %v141_v30 = vld [vmem:[#allocation2 + $0xe8] sm:$0xff]  ;;  %v117_v31 = vld [vmem:[#allocation2 + $0x38] sm:$0xff] }
  0x4d   :  { %3821 = vmatprep.subr.msk.mxu0 %vm197_vm0, %v159_v18  ;;  %286 = vmatprep.mubr.f32.mxu0 %v5477_v0  ;;  %v4225_v32 = vld [vmem:[%s5468_s0 + $0x20] sm:$0xff]  ;;  %v116_v34 = vld [vmem:[#allocation2 + $0x30] sm:$0xff]  ;;  %v111_v35 = vld [vmem:[#allocation2 + $0x8] sm:$0xff] }
  0x4e   :  { %3822 = vmatpush1.msk.msra.mxu0 %vm197_vm0, %v158_v19  ;;  %423 = vmatprep.mubr.f32.mxu1 %v5477_v0  ;;  %v140_v33 = vld [vmem:[#allocation2 + $0xe0] sm:$0xff]  ;;  %v131_v36 = vld [vmem:[#allocation2 + $0xa8] sm:$0xf]  ;;  %v133_v39 = vld [vmem:[#allocation2 + $0xb8] sm:$0xf] }
  0x4f   :  { %516 = vmatprep.subr.mxu0 %v153_v20  ;;  %3835 = vmatprep.subr.msk.mxu1 %vm197_vm0, %v129_v22  ;;  %v4236_v37 = vld [vmem:[%s5468_s0 + $0x28] sm:$0xff]  ;;  %v110_v38 = vld [vmem:[#allocation2] sm:$0xff]  ;;  %v4248_v40 = vld [vmem:[%s5468_s0 + $0x30] sm:$0xff] }
  0x50   :  { %3796 = vmatmul.mubr.msk.f32.gmra.mxu0 %vm160_vm1, %v4199_v21  ;;  %3810 = vmatmul.mubr.msk.f32.gmra.mxu1 %vm160_vm1, %v4199_v21  ;;  %v4260_v41 = vld [vmem:[%s5468_s0 + $0x38] sm:$0xff]  ;;  %v4271_v42 = vld [vmem:[%s5468_s0 + $0x40] sm:$0xff]  ;;  %v4282_v43 = vld [vmem:[%s5468_s0 + $0x48] sm:$0xff] }
  0x51   :  { %292 = vmatprep.mubr.f32.mxu0 %v5477_v0  ;;  %429 = vmatprep.mubr.f32.mxu1 %v5477_v0  ;;  %v4293_v44 = vld [vmem:[%s5468_s0 + $0x50] sm:$0xff]  ;;  %v4304_v45 = vld [vmem:[%s5468_s0 + $0x58] sm:$0xff]  ;;  %v4315_v46 = vld [vmem:[%s5468_s0 + $0x60] sm:$0xff] }
  0x52   :  { %517 = vmatpush1.msra.mxu0 %v152_v23  ;;  %3836 = vmatpush1.msk.msra.mxu1 %vm197_vm0, %v128_v24  ;;  %v4326_v47 = vld [vmem:[%s5468_s0] sm:$0xff]  ;;  %v125_v49 = vld [vmem:[#allocation2 + $0x78] sm:$0xff]  ;;  %v124_v50 = vld [vmem:[#allocation2 + $0x70] sm:$0xff] }
  0x53   :  { %518 = vmatprep.subr.mxu0 %v147_v25  ;;  %674 = vmatprep.subr.mxu1 %v123_v26  ;;  %v130_v48 = vld [vmem:[#allocation2 + $0xa0] sm:$0xf]  ;;  %v132_v51 = vld [vmem:[#allocation2 + $0xb0] sm:$0xf]  ;;  %v119_v52 = vld [vmem:[#allocation2 + $0x48] sm:$0xff] }
  0x54   :  { %3797 = vmatmul.mubr.msk.f32.gmra.mxu0 %vm160_vm1, %v4213_v27  ;;  %3811 = vmatmul.mubr.msk.f32.gmra.mxu1 %vm160_vm1, %v4213_v27  ;;  %v127_v53 = vld [vmem:[#allocation2 + $0x88] sm:$0xff]  ;;  %v118_v54 = vld [vmem:[#allocation2 + $0x40] sm:$0xff]  ;;  %v113_v56 = vld [vmem:[#allocation2 + $0x18] sm:$0xff] }
  0x55   :  { %298 = vmatprep.mubr.f32.mxu0 %v5477_v0  ;;  %435 = vmatprep.mubr.f32.mxu1 %v5477_v0  ;;  %v126_v55 = vld [vmem:[#allocation2 + $0x80] sm:$0xff]  ;;  %v121_v57 = vld [vmem:[#allocation2 + $0x58] sm:$0xff]  ;;  %v112_v58 = vld [vmem:[#allocation2 + $0x10] sm:$0xff] }
  0x56   :  { %519 = vmatpush1.msra.mxu0 %v146_v28  ;;  %675 = vmatpush1.msra.mxu1 %v122_v29  ;;  %v120_v59 = vld [vmem:[#allocation2 + $0x50] sm:$0xff]  ;;  %v115_v60 = vld [vmem:[#allocation2 + $0x28] sm:$0xff]  ;;  %v1091_v61 = vld [vmem:[#allocation2 + $0x218] sm:$0xf] }
  0x57   :  { %520 = vmatprep.subr.mxu0 %v141_v30  ;;  %676 = vmatprep.subr.mxu1 %v117_v31  ;;  %v114_v62 = vld [vmem:[#allocation2 + $0x20] sm:$0xff]  ;;  %v1093_v63 = vld [vmem:[#allocation2 + $0x228] sm:$0xf]  ;;  %v1090_v1 = vld [vmem:[#allocation2 + $0x210] sm:$0xf] }
  0x58   :  { %3798 = vmatmul.mubr.msk.f32.gmra.mxu0 %vm160_vm1, %v4225_v32  ;;  %3812 = vmatmul.mubr.msk.f32.gmra.mxu1 %vm160_vm1, %v4225_v32  ;;  %v1085_v2 = vld [vmem:[#allocation2 + $0x1e8] sm:$0xff]  ;;  %v1084_v3 = vld [vmem:[#allocation2 + $0x1e0] sm:$0xff]  ;;  %v1079_v5 = vld [vmem:[#allocation2 + $0x1b8] sm:$0xff] }
  0x59   :  { %304 = vmatprep.mubr.f32.mxu0 %v5477_v0  ;;  %441 = vmatprep.mubr.f32.mxu1 %v5477_v0  ;;  %v1092_v4 = vld [vmem:[#allocation2 + $0x220] sm:$0xf]  ;;  %v1087_v6 = vld [vmem:[#allocation2 + $0x1f8] sm:$0xff]  ;;  %v1078_v7 = vld [vmem:[#allocation2 + $0x1b0] sm:$0xff] }
  0x5a   :  { %521 = vmatpush1.msra.mxu0 %v140_v33  ;;  %677 = vmatpush1.msra.mxu1 %v116_v34  ;;  %v1086_v8 = vld [vmem:[#allocation2 + $0x1f0] sm:$0xff]  ;;  %v1073_v9 = vld [vmem:[#allocation2 + $0x188] sm:$0xff]  ;;  %v1072_v11 = vld [vmem:[#allocation2 + $0x180] sm:$0xff] }
  0x5b   :  { %678 = vmatprep.subr.mxu1 %v111_v35  ;;  %3849 = vmatprep.subr.msk.mxu0 %vm197_vm0, %v131_v36  ;;  %v1081_v10 = vld [vmem:[#allocation2 + $0x1c8] sm:$0xff]  ;;  %v1080_v12 = vld [vmem:[#allocation2 + $0x1c0] sm:$0xff]  ;;  %v1075_v13 = vld [vmem:[#allocation2 + $0x198] sm:$0xff] }
  0x5c   :  { %3799 = vmatmul.mubr.msk.f32.gmra.mxu0 %vm160_vm1, %v4236_v37  ;;  %3813 = vmatmul.mubr.msk.f32.gmra.mxu1 %vm160_vm1, %v4236_v37  ;;  %v1095_v14 = vld [vmem:[#allocation2 + $0x238] sm:$0xf]  ;;  %v1074_v15 = vld [vmem:[#allocation2 + $0x190] sm:$0xff]  ;;  %v1088_v18 = vld [vmem:[#allocation2 + $0x200] sm:$0xff] }
  0x5d   :  { %310 = vmatprep.mubr.f32.mxu0 %v5477_v0  ;;  %447 = vmatprep.mubr.f32.mxu1 %v5477_v0  ;;  %v1094_v16 = vld [vmem:[#allocation2 + $0x230] sm:$0xf]  ;;  %v1083_v19 = vld [vmem:[#allocation2 + $0x1d8] sm:$0xff]  ;;  %v1077_v22 = vld [vmem:[#allocation2 + $0x1a8] sm:$0xff] }
  0x5e   :  { %679 = vmatpush1.msra.mxu1 %v110_v38  ;;  %v1082_v20 = vld [vmem:[#allocation2 + $0x1d0] sm:$0xff]  ;;  %v1076_v23 = vld [vmem:[#allocation2 + $0x1a0] sm:$0xff]  ;;  %v4549_v24 = vld [vmem:[%s5468_s0 + $0x68] sm:$0xff] }
  0x5f   :  { %3863 = vmatprep.subr.msk.mxu1 %vm197_vm0, %v133_v39 }
  0x60   :  { %3800 = vmatmul.mubr.msk.f32.gmra.mxu0 %vm160_vm1, %v4248_v40  ;;  %3814 = vmatmul.mubr.msk.f32.gmra.mxu1 %vm160_vm1, %v4248_v40 }
  0x61   :  { %316 = vmatprep.mubr.f32.mxu0 %v5477_v0  ;;  %453 = vmatprep.mubr.f32.mxu1 %v5477_v0 }
  0x64   :  { %3801 = vmatmul.mubr.msk.f32.gmra.mxu0 %vm160_vm1, %v4260_v41  ;;  %3815 = vmatmul.mubr.msk.f32.gmra.mxu1 %vm160_vm1, %v4260_v41 }
  0x65   :  { %322 = vmatprep.mubr.f32.mxu0 %v5477_v0  ;;  %459 = vmatprep.mubr.f32.mxu1 %v5477_v0 }
  0x68   :  { %3802 = vmatmul.mubr.msk.f32.gmra.mxu0 %vm160_vm1, %v4271_v42  ;;  %3816 = vmatmul.mubr.msk.f32.gmra.mxu1 %vm160_vm1, %v4271_v42 }
  0x69   :  { %328 = vmatprep.mubr.f32.mxu0 %v5477_v0  ;;  %465 = vmatprep.mubr.f32.mxu1 %v5477_v0 }
  0x6c   :  { %3803 = vmatmul.mubr.msk.f32.gmra.mxu0 %vm160_vm1, %v4282_v43  ;;  %3817 = vmatmul.mubr.msk.f32.gmra.mxu1 %vm160_vm1, %v4282_v43 }
  0x6d   :  { %334 = vmatprep.mubr.f32.mxu0 %v5477_v0  ;;  %471 = vmatprep.mubr.f32.mxu1 %v5477_v0 }
  0x70   :  { %3804 = vmatmul.mubr.msk.f32.gmra.mxu0 %vm160_vm1, %v4293_v44  ;;  %3818 = vmatmul.mubr.msk.f32.gmra.mxu1 %vm160_vm1, %v4293_v44 }
  0x71   :  { %340 = vmatprep.mubr.f32.mxu0 %v5477_v0  ;;  %477 = vmatprep.mubr.f32.mxu1 %v5477_v0 }
  0x74   :  { %3805 = vmatmul.mubr.msk.f32.gmra.mxu0 %vm160_vm1, %v4304_v45  ;;  %3819 = vmatmul.mubr.msk.f32.gmra.mxu1 %vm160_vm1, %v4304_v45 }
  0x75   :  { %346 = vmatprep.mubr.f32.mxu0 %v5477_v0  ;;  %483 = vmatprep.mubr.f32.mxu1 %v5477_v0 }
  0x78   :  { %3806 = vmatmul.mubr.msk.f32.gmra.mxu0 %vm160_vm1, %v4315_v46  ;;  %3820 = vmatmul.mubr.msk.f32.gmra.mxu1 %vm160_vm1, %v4315_v46 }
  0x79   :  { %554 = vmatprep.mubr.f32.mxu0 %v5477_v0  ;;  %712 = vmatprep.mubr.f32.mxu1 %v5477_v0 }
  0x7c   :  { %3823 = vmatmul.mubr.msk.f32.vlgmr.msra.gmra.mxu0 %vm160_vm1, %v4188_v17  ;;  %3837 = vmatmul.mubr.msk.f32.vlgmr.msra.gmra.mxu1 %vm160_vm1, %v4326_v47 }
  0x7d   :  { %3850 = vmatpush1.msk.msra.mxu0 %vm197_vm0, %v130_v48  ;;  %560 = vmatprep.mubr.f32.mxu0 %v5477_v0 }
  0x7e   :  { %718 = vmatprep.mubr.f32.mxu1 %v5477_v0  ;;  %811 = vmatprep.subr.mxu0 %v125_v49  ;;  %v1795_v49 = vld [vmem:[#allocation4 + $0x1e0] sm:$0xff] }
  0x7f   :  { %812 = vmatpush1.msra.mxu0 %v124_v50  ;;  %3864 = vmatpush1.msk.msra.mxu1 %vm197_vm0, %v132_v51  ;;  %v1924_v50 = vld [vmem:[#allocation4 + $0x5e8] sm:$0xff] }
  0x80   :  { %3824 = vmatmul.mubr.msk.f32.gmra.mxu0 %vm160_vm1, %v4199_v21  ;;  %3838 = vmatmul.mubr.msk.f32.gmra.mxu1 %vm160_vm1, %v4188_v17 }
  0x81   :  { %566 = vmatprep.mubr.f32.mxu0 %v5477_v0  ;;  %724 = vmatprep.mubr.f32.mxu1 %v5477_v0 }
  0x82   :  { %813 = vmatprep.subr.mxu0 %v119_v52  ;;  %948 = vmatprep.subr.mxu1 %v127_v53  ;;  %v1792_v53 = vld [vmem:[#allocation4 + $0x1c8] sm:$0xff] }
  0x83   :  { %814 = vmatpush1.msra.mxu0 %v118_v54  ;;  %949 = vmatpush1.msra.mxu1 %v126_v55  ;;  %v1791_v54 = vld [vmem:[#allocation4 + $0x1c0] sm:$0xff]  ;;  %v1920_v55 = vld [vmem:[#allocation4 + $0x5c8] sm:$0xff] }
  0x84   :  { %3825 = vmatmul.mubr.msk.f32.gmra.mxu0 %vm160_vm1, %v4213_v27  ;;  %3839 = vmatmul.mubr.msk.f32.gmra.mxu1 %vm160_vm1, %v4199_v21 }
  0x85   :  { %572 = vmatprep.mubr.f32.mxu0 %v5477_v0  ;;  %730 = vmatprep.mubr.f32.mxu1 %v5477_v0 }
  0x86   :  { %815 = vmatprep.subr.mxu0 %v113_v56  ;;  %950 = vmatprep.subr.mxu1 %v121_v57 }
  0x87   :  { %816 = vmatpush1.msra.mxu0 %v112_v58  ;;  %951 = vmatpush1.msra.mxu1 %v120_v59  ;;  %v1788_v58 = vld [vmem:[#allocation4 + $0x1a8] sm:$0xff]  ;;  %v1919_v59 = vld [vmem:[#allocation4 + $0x5c0] sm:$0xff] }
  0x88   :  { %3826 = vmatmul.mubr.msk.f32.gmra.mxu0 %vm160_vm1, %v4225_v32  ;;  %3840 = vmatmul.mubr.msk.f32.gmra.mxu1 %vm160_vm1, %v4213_v27 }
  0x89   :  { %578 = vmatprep.mubr.f32.mxu0 %v5477_v0  ;;  %736 = vmatprep.mubr.f32.mxu1 %v5477_v0 }
  0x8a   :  { %952 = vmatprep.subr.mxu1 %v115_v60  ;;  %3877 = vmatprep.subr.msk.mxu0 %vm197_vm0, %v1091_v61  ;;  %v1787_v60 = vld [vmem:[#allocation4 + $0x1a0] sm:$0xff] }
  0x8b   :  { %953 = vmatpush1.msra.mxu1 %v114_v62 }
  0x8c   :  { %3827 = vmatmul.mubr.msk.f32.gmra.mxu0 %vm160_vm1, %v4236_v37  ;;  %3841 = vmatmul.mubr.msk.f32.gmra.mxu1 %vm160_vm1, %v4225_v32 }
  0x8d   :  { %584 = vmatprep.mubr.f32.mxu0 %v5477_v0  ;;  %742 = vmatprep.mubr.f32.mxu1 %v5477_v0 }
  0x8e   :  { %3891 = vmatprep.subr.msk.mxu1 %vm197_vm0, %v1093_v63  ;;  %v1784_v63 = vld [vmem:[#allocation4 + $0x188] sm:$0xff] }
  0x90   :  { %3828 = vmatmul.mubr.msk.f32.gmra.mxu0 %vm160_vm1, %v4248_v40  ;;  %3842 = vmatmul.mubr.msk.f32.gmra.mxu1 %vm160_vm1, %v4236_v37 }
  0x91   :  { %590 = vmatprep.mubr.f32.mxu0 %v5477_v0  ;;  %748 = vmatprep.mubr.f32.mxu1 %v5477_v0 }
  0x94   :  { %3829 = vmatmul.mubr.msk.f32.gmra.mxu0 %vm160_vm1, %v4260_v41  ;;  %3843 = vmatmul.mubr.msk.f32.gmra.mxu1 %vm160_vm1, %v4248_v40 }
  0x95   :  { %596 = vmatprep.mubr.f32.mxu0 %v5477_v0  ;;  %754 = vmatprep.mubr.f32.mxu1 %v5477_v0 }
  0x98   :  { %3830 = vmatmul.mubr.msk.f32.gmra.mxu0 %vm160_vm1, %v4271_v42  ;;  %3844 = vmatmul.mubr.msk.f32.gmra.mxu1 %vm160_vm1, %v4260_v41 }
  0x99   :  { %602 = vmatprep.mubr.f32.mxu0 %v5477_v0  ;;  %760 = vmatprep.mubr.f32.mxu1 %v5477_v0 }
  0x9c   :  { %3831 = vmatmul.mubr.msk.f32.gmra.mxu0 %vm160_vm1, %v4282_v43  ;;  %3845 = vmatmul.mubr.msk.f32.gmra.mxu1 %vm160_vm1, %v4271_v42 }
  0x9d   :  { %608 = vmatprep.mubr.f32.mxu0 %v5477_v0  ;;  %766 = vmatprep.mubr.f32.mxu1 %v5477_v0 }
  0xa0   :  { %3832 = vmatmul.mubr.msk.f32.gmra.mxu0 %vm160_vm1, %v4293_v44  ;;  %3846 = vmatmul.mubr.msk.f32.gmra.mxu1 %vm160_vm1, %v4282_v43 }
  0xa1   :  { %614 = vmatprep.mubr.f32.mxu0 %v5477_v0  ;;  %772 = vmatprep.mubr.f32.mxu1 %v5477_v0 }
  0xa4   :  { %3833 = vmatmul.mubr.msk.f32.gmra.mxu0 %vm160_vm1, %v4304_v45  ;;  %3847 = vmatmul.mubr.msk.f32.gmra.mxu1 %vm160_vm1, %v4293_v44 }
  0xa5   :  { %620 = vmatprep.mubr.f32.mxu0 %v5477_v0  ;;  %778 = vmatprep.mubr.f32.mxu1 %v5477_v0 }
  0xa8   :  { %3834 = vmatmul.mubr.msk.f32.gmra.mxu0 %vm160_vm1, %v4315_v46  ;;  %3848 = vmatmul.mubr.msk.f32.gmra.mxu1 %vm160_vm1, %v4304_v45 }
  0xa9   :  { %849 = vmatprep.mubr.f32.mxu0 %v5477_v0  ;;  %986 = vmatprep.mubr.f32.mxu1 %v5477_v0 }
  0xac   :  { %3851 = vmatmul.mubr.msk.f32.vlgmr.msra.gmra.mxu0 %vm160_vm1, %v4326_v47  ;;  %3865 = vmatmul.mubr.msk.f32.vlgmr.msra.gmra.mxu1 %vm160_vm1, %v4326_v47 }
  0xad   :  { %3878 = vmatpush1.msk.msra.mxu0 %vm197_vm0, %v1090_v1  ;;  %855 = vmatprep.mubr.f32.mxu0 %v5477_v0  ;;  %v1915_v1 = vld [vmem:[#allocation4 + $0x5a0] sm:$0xff] }
  0xae   :  { %992 = vmatprep.mubr.f32.mxu1 %v5477_v0  ;;  %1176 = vmatprep.subr.mxu0 %v1085_v2  ;;  %v1783_v2 = vld [vmem:[#allocation4 + $0x180] sm:$0xff] }
  0xaf   :  { %1177 = vmatpush1.msra.mxu0 %v1084_v3  ;;  %3892 = vmatpush1.msk.msra.mxu1 %vm197_vm0, %v1092_v4 }
  0xb0   :  { %3852 = vmatmul.mubr.msk.f32.gmra.mxu0 %vm160_vm1, %v4188_v17  ;;  %3866 = vmatmul.mubr.msk.f32.gmra.mxu1 %vm160_vm1, %v4188_v17  ;;  %v1089_v17 = vld [vmem:[#allocation2 + $0x208] sm:$0xff] }
  0xb1   :  { %861 = vmatprep.mubr.f32.mxu0 %v5477_v0  ;;  %998 = vmatprep.mubr.f32.mxu1 %v5477_v0 }
  0xb2   :  { %1178 = vmatprep.subr.mxu0 %v1079_v5  ;;  %1313 = vmatprep.subr.mxu1 %v1087_v6  ;;  %v1912_v5 = vld [vmem:[#allocation4 + $0x588] sm:$0xff] }
  0xb3   :  { %1179 = vmatpush1.msra.mxu0 %v1078_v7  ;;  %1314 = vmatpush1.msra.mxu1 %v1086_v8  ;;  %v1780_v6 = vld [vmem:[#allocation4 + $0x168] sm:$0xff]  ;;  %v1911_v7 = vld [vmem:[#allocation4 + $0x580] sm:$0xff] }
  0xb4   :  { %3853 = vmatmul.mubr.msk.f32.gmra.mxu0 %vm160_vm1, %v4199_v21  ;;  %3867 = vmatmul.mubr.msk.f32.gmra.mxu1 %vm160_vm1, %v4199_v21 }
  0xb5   :  { %867 = vmatprep.mubr.f32.mxu0 %v5477_v0  ;;  %1004 = vmatprep.mubr.f32.mxu1 %v5477_v0 }
  0xb6   :  { %1180 = vmatprep.subr.mxu0 %v1073_v9  ;;  %1315 = vmatprep.subr.mxu1 %v1081_v10  ;;  %v1779_v9 = vld [vmem:[#allocation4 + $0x160] sm:$0xff]  ;;  %v1908_v10 = vld [vmem:[#allocation4 + $0x568] sm:$0xff] }
  0xb7   :  { %1181 = vmatpush1.msra.mxu0 %v1072_v11  ;;  %1316 = vmatpush1.msra.mxu1 %v1080_v12  ;;  %v1776_v11 = vld [vmem:[#allocation4 + $0x148] sm:$0xff] }
  0xb8   :  { %3854 = vmatmul.mubr.msk.f32.gmra.mxu0 %vm160_vm1, %v4213_v27  ;;  %3868 = vmatmul.mubr.msk.f32.gmra.mxu1 %vm160_vm1, %v4213_v27 }
  0xb9   :  { %873 = vmatprep.mubr.f32.mxu0 %v5477_v0  ;;  %1010 = vmatprep.mubr.f32.mxu1 %v5477_v0 }
  0xba   :  { %1317 = vmatprep.subr.mxu1 %v1075_v13  ;;  %3905 = vmatprep.subr.msk.mxu0 %vm197_vm0, %v1095_v14  ;;  %v1907_v14 = vld [vmem:[#allocation4 + $0x560] sm:$0xff] }
  0xbb   :  { %1318 = vmatpush1.msra.mxu1 %v1074_v15  ;;  %v1775_v15 = vld [vmem:[#allocation4 + $0x140] sm:$0xff] }
  0xbc   :  { %3855 = vmatmul.mubr.msk.f32.gmra.mxu0 %vm160_vm1, %v4225_v32  ;;  %3869 = vmatmul.mubr.msk.f32.gmra.mxu1 %vm160_vm1, %v4225_v32 }
  0xbd   :  { %879 = vmatprep.mubr.f32.mxu0 %v5477_v0  ;;  %1016 = vmatprep.mubr.f32.mxu1 %v5477_v0 }
  0xc0   :  { %3856 = vmatmul.mubr.msk.f32.gmra.mxu0 %vm160_vm1, %v4236_v37  ;;  %3870 = vmatmul.mubr.msk.f32.gmra.mxu1 %vm160_vm1, %v4236_v37 }
  0xc1   :  { %885 = vmatprep.mubr.f32.mxu0 %v5477_v0  ;;  %1022 = vmatprep.mubr.f32.mxu1 %v5477_v0 }
  0xc4   :  { %3857 = vmatmul.mubr.msk.f32.gmra.mxu0 %vm160_vm1, %v4248_v40  ;;  %3871 = vmatmul.mubr.msk.f32.gmra.mxu1 %vm160_vm1, %v4248_v40 }
  0xc5   :  { %891 = vmatprep.mubr.f32.mxu0 %v5477_v0  ;;  %1028 = vmatprep.mubr.f32.mxu1 %v5477_v0 }
  0xc8   :  { %3858 = vmatmul.mubr.msk.f32.gmra.mxu0 %vm160_vm1, %v4260_v41  ;;  %3872 = vmatmul.mubr.msk.f32.gmra.mxu1 %vm160_vm1, %v4260_v41 }
  0xc9   :  { %897 = vmatprep.mubr.f32.mxu0 %v5477_v0  ;;  %1034 = vmatprep.mubr.f32.mxu1 %v5477_v0 }
  0xcc   :  { %3859 = vmatmul.mubr.msk.f32.gmra.mxu0 %vm160_vm1, %v4271_v42  ;;  %3873 = vmatmul.mubr.msk.f32.gmra.mxu1 %vm160_vm1, %v4271_v42 }
  0xcd   :  { %903 = vmatprep.mubr.f32.mxu0 %v5477_v0  ;;  %1040 = vmatprep.mubr.f32.mxu1 %v5477_v0 }
  0xd0   :  { %3860 = vmatmul.mubr.msk.f32.gmra.mxu0 %vm160_vm1, %v4282_v43  ;;  %3874 = vmatmul.mubr.msk.f32.gmra.mxu1 %vm160_vm1, %v4282_v43 }
  0xd1   :  { %909 = vmatprep.mubr.f32.mxu0 %v5477_v0  ;;  %1046 = vmatprep.mubr.f32.mxu1 %v5477_v0 }
  0xd4   :  { %3861 = vmatmul.mubr.msk.f32.gmra.mxu0 %vm160_vm1, %v4293_v44  ;;  %3875 = vmatmul.mubr.msk.f32.gmra.mxu1 %vm160_vm1, %v4293_v44 }
  0xd5   :  { %915 = vmatprep.mubr.f32.mxu0 %v5477_v0  ;;  %1052 = vmatprep.mubr.f32.mxu1 %v5477_v0 }
  0xd8   :  { %3862 = vmatmul.mubr.msk.f32.gmra.mxu0 %vm160_vm1, %v4304_v45  ;;  %3876 = vmatmul.mubr.msk.f32.gmra.mxu1 %vm160_vm1, %v4304_v45 }
  0xd9   :  { %1214 = vmatprep.mubr.f32.mxu0 %v5477_v0  ;;  %1351 = vmatprep.mubr.f32.mxu1 %v5477_v0 }
  0xdc   :  { %3879 = vmatmul.mubr.msk.f32.vlgmr.msra.gmra.mxu0 %vm160_vm1, %v4199_v21  ;;  %3893 = vmatmul.mubr.msk.f32.vlgmr.msra.gmra.mxu1 %vm160_vm1, %v4199_v21 }
  0xdd   :  { %3906 = vmatpush1.msk.msra.mxu0 %vm197_vm0, %v1094_v16  ;;  %1220 = vmatprep.mubr.f32.mxu0 %v5477_v0  ;;  %v1904_v16 = vld [vmem:[#allocation4 + $0x548] sm:$0xff] }
  0xde   :  { %1357 = vmatprep.mubr.f32.mxu1 %v5477_v0  ;;  %1450 = vmatprep.subr.mxu0 %v1089_v17 }
  0xdf   :  { %1451 = vmatpush1.msra.mxu0 %v1088_v18  ;;  %v1772_v18 = vld [vmem:[#allocation4 + $0x128] sm:$0xff] }
  0xe0   :  { %3880 = vmatmul.mubr.msk.f32.gmra.mxu0 %vm160_vm1, %v4213_v27  ;;  %3894 = vmatmul.mubr.msk.f32.gmra.mxu1 %vm160_vm1, %v4213_v27 }
  0xe1   :  { %1226 = vmatprep.mubr.f32.mxu0 %v5477_v0  ;;  %1363 = vmatprep.mubr.f32.mxu1 %v5477_v0 }
  0xe2   :  { %1452 = vmatprep.subr.mxu0 %v1083_v19  ;;  %v1903_v19 = vld [vmem:[#allocation4 + $0x540] sm:$0xff] }
  0xe3   :  { %1453 = vmatpush1.msra.mxu0 %v1082_v20  ;;  %v1771_v20 = vld [vmem:[#allocation4 + $0x120] sm:$0xff] }
  0xe4   :  { %3881 = vmatmul.mubr.msk.f32.gmra.mxu0 %vm160_vm1, %v4225_v32  ;;  %3895 = vmatmul.mubr.msk.f32.gmra.mxu1 %vm160_vm1, %v4225_v32 }
  0xe5   :  { %1232 = vmatprep.mubr.f32.mxu0 %v5477_v0  ;;  %1369 = vmatprep.mubr.f32.mxu1 %v5477_v0 }
  0xe6   :  { %1454 = vmatprep.subr.mxu0 %v1077_v22 }
  0xe7   :  { %1455 = vmatpush1.msra.mxu0 %v1076_v23 }
  0xe8   :  { %3882 = vmatmul.mubr.msk.f32.gmra.mxu0 %vm160_vm1, %v4236_v37  ;;  %3896 = vmatmul.mubr.msk.f32.gmra.mxu1 %vm160_vm1, %v4236_v37 }
  0xe9   :  { %1238 = vmatprep.mubr.f32.mxu0 %v5477_v0  ;;  %1375 = vmatprep.mubr.f32.mxu1 %v5477_v0 }
  0xea   :  { %2400 = vmatprep.subr.mxu0 %v1924_v50  ;;  %v1899_v50 = vld [vmem:[#allocation4 + $0x520] sm:$0xff] }
  0xec   :  { %3883 = vmatmul.mubr.msk.f32.gmra.mxu0 %vm160_vm1, %v4248_v40  ;;  %3897 = vmatmul.mubr.msk.f32.gmra.mxu1 %vm160_vm1, %v4248_v40 }
  0xed   :  { %1244 = vmatprep.mubr.f32.mxu0 %v5477_v0  ;;  %1381 = vmatprep.mubr.f32.mxu1 %v5477_v0 }
  0xf0   :  { %3884 = vmatmul.mubr.msk.f32.gmra.mxu0 %vm160_vm1, %v4260_v41  ;;  %3898 = vmatmul.mubr.msk.f32.gmra.mxu1 %vm160_vm1, %v4260_v41 }
  0xf1   :  { %1250 = vmatprep.mubr.f32.mxu0 %v5477_v0  ;;  %1387 = vmatprep.mubr.f32.mxu1 %v5477_v0 }
  0xf4   :  { %3885 = vmatmul.mubr.msk.f32.gmra.mxu0 %vm160_vm1, %v4271_v42  ;;  %3899 = vmatmul.mubr.msk.f32.gmra.mxu1 %vm160_vm1, %v4271_v42 }
  0xf5   :  { %1256 = vmatprep.mubr.f32.mxu0 %v5477_v0  ;;  %1393 = vmatprep.mubr.f32.mxu1 %v5477_v0 }
  0xf8   :  { %3886 = vmatmul.mubr.msk.f32.gmra.mxu0 %vm160_vm1, %v4282_v43  ;;  %3900 = vmatmul.mubr.msk.f32.gmra.mxu1 %vm160_vm1, %v4282_v43 }
  0xf9   :  { %1262 = vmatprep.mubr.f32.mxu0 %v5477_v0  ;;  %1399 = vmatprep.mubr.f32.mxu1 %v5477_v0 }
  0xfc   :  { %3887 = vmatmul.mubr.msk.f32.gmra.mxu0 %vm160_vm1, %v4293_v44  ;;  %3901 = vmatmul.mubr.msk.f32.gmra.mxu1 %vm160_vm1, %v4293_v44 }
  0xfd   :  { %1268 = vmatprep.mubr.f32.mxu0 %v5477_v0  ;;  %1405 = vmatprep.mubr.f32.mxu1 %v5477_v0 }
 0x100   :  { %3888 = vmatmul.mubr.msk.f32.gmra.mxu0 %vm160_vm1, %v4304_v45  ;;  %3902 = vmatmul.mubr.msk.f32.gmra.mxu1 %vm160_vm1, %v4304_v45 }
 0x101   :  { %1274 = vmatprep.mubr.f32.mxu0 %v5477_v0  ;;  %1411 = vmatprep.mubr.f32.mxu1 %v5477_v0 }
 0x104   :  { %3889 = vmatmul.mubr.msk.f32.gmra.mxu0 %vm160_vm1, %v4315_v46  ;;  %3903 = vmatmul.mubr.msk.f32.gmra.mxu1 %vm160_vm1, %v4315_v46 }
 0x105   :  { %1280 = vmatprep.mubr.f32.mxu0 %v5477_v0  ;;  %1417 = vmatprep.mubr.f32.mxu1 %v5477_v0 }
 0x108   :  { %3890 = vmatmul.mubr.msk.f32.gmra.mxu0 %vm160_vm1, %v4549_v24  ;;  %3904 = vmatmul.mubr.msk.f32.gmra.mxu1 %vm160_vm1, %v4549_v24 }
 0x109   :  { %1488 = vmatprep.mubr.f32.mxu0 %v5477_v0 }
 0x10c   :  { %v4556_v25 = vpop.f32.mrf.mxu0  ;;  %v4558_v26 = vpop.f32.mrf.mxu1  ;;  %3907 = vmatmul.mubr.msk.f32.vlgmr.msra.gmra.mxu0 %vm160_vm1, %v4199_v21 }
 0x10d   :  { %5481 = vst [vmem:[#allocation13_spill] sm:$0xff] %v4558_v26  ;;  %1494 = vmatprep.mubr.f32.mxu0 %v5477_v0 }
 0x10e   :  { %v4563_v28 = vpop.f32.mrf.mxu0  ;;  %v4565_v29 = vpop.f32.mrf.mxu1 }
 0x110   :  { %v4567_v30 = vpop.f32.mrf.mxu0  ;;  %v4569_v31 = vpop.f32.mrf.mxu1  ;;  %3908 = vmatmul.mubr.msk.f32.gmra.mxu0 %vm160_vm1, %v4213_v27 }
 0x111   :  { %5482 = vst [vmem:[#allocation14_spill] sm:$0xff] %v4569_v31  ;;  %1500 = vmatprep.mubr.f32.mxu0 %v5477_v0 }
 0x112   :  { %v4574_v33 = vpop.f32.mrf.mxu0  ;;  %v4576_v34 = vpop.f32.mrf.mxu1 }
 0x113   :  { %5483 = vst [vmem:[#allocation15_spill] sm:$0xff] %v4574_v33 }
 0x114   :  { %v4578_v21 = vpop.f32.mrf.mxu0  ;;  %v4580_v35 = vpop.f32.mrf.mxu1  ;;  %3909 = vmatmul.mubr.msk.f32.gmra.mxu0 %vm160_vm1, %v4225_v32  ;;  %v1796_v32 = vld [vmem:[#allocation4 + $0x1e8] sm:$0xff] }
 0x115   :  { %5484 = vst [vmem:[#allocation16_spill] sm:$0xff] %v4580_v35  ;;  %1506 = vmatprep.mubr.f32.mxu0 %v5477_v0  ;;  %2311 = vmatprep.subr.mxu1 %v1796_v32  ;;  %v1900_v32 = vld [vmem:[#allocation4 + $0x528] sm:$0xff] }
 0x116   :  { %v4585_v36 = vpop.f32.mrf.mxu0  ;;  %v4587_v38 = vpop.f32.mrf.mxu1  ;;  %2312 = vmatpush1.msra.mxu1 %v1795_v49  ;;  %v1768_v49 = vld [vmem:[#allocation4 + $0x108] sm:$0xff] }
 0x117   :  { %5485 = vst [vmem:[#allocation17_spill] sm:$0xff] %v4585_v36  ;;  %2313 = vmatprep.subr.mxu1 %v1792_v53 }
 0x118   :  { %v4589_v27 = vpop.f32.mrf.mxu0  ;;  %v4591_v39 = vpop.f32.mrf.mxu1  ;;  %3910 = vmatmul.mubr.msk.f32.gmra.mxu0 %vm160_vm1, %v4236_v37  ;;  %v1923_v37 = vld [vmem:[#allocation4 + $0x5e0] sm:$0xff]  ;;  %2314 = vmatpush1.msra.mxu1 %v1791_v54  ;;  %v1896_v54 = vld [vmem:[#allocation4 + $0x508] sm:$0xff] }
 0x119   :  { %5486 = vst [vmem:[#allocation18_spill] sm:$0xff] %v4591_v39  ;;  %1512 = vmatprep.mubr.f32.mxu0 %v5477_v0  ;;  %2401 = vmatpush1.msra.mxu0 %v1923_v37  ;;  %v1767_v37 = vld [vmem:[#allocation4 + $0x100] sm:$0xff] }
 0x11a   :  { %v4596_v47 = vpop.f32.mrf.mxu0  ;;  %v4598_v48 = vpop.f32.mrf.mxu1  ;;  %2402 = vmatprep.subr.mxu0 %v1920_v55  ;;  %2315 = vmatprep.subr.mxu1 %v1788_v58  ;;  %v1764_v55 = vld [vmem:[#allocation4 + $0xe8] sm:$0xff] }
 0x11b   :  { %5487 = vst [vmem:[#allocation19_spill] sm:$0xff] %v4596_v47  ;;  %2403 = vmatpush1.msra.mxu0 %v1919_v59  ;;  %2316 = vmatpush1.msra.mxu1 %v1787_v60  ;;  %v1895_v60 = vld [vmem:[#allocation4 + $0x500] sm:$0xff] }
 0x11c   :  { %v4600_v51 = vpop.f32.mrf.mxu0  ;;  %v4602_v52 = vpop.f32.mrf.mxu1  ;;  %3911 = vmatmul.mubr.msk.f32.gmra.mxu0 %vm160_vm1, %v4248_v40  ;;  %v1916_v40 = vld [vmem:[#allocation4 + $0x5a8] sm:$0xff]  ;;  %2317 = vmatprep.subr.mxu1 %v1784_v63 }
 0x11d   :  { %5488 = vst [vmem:[#allocation20_spill] sm:$0xff] %v4602_v52  ;;  %1518 = vmatprep.mubr.f32.mxu0 %v5477_v0  ;;  %2404 = vmatprep.subr.mxu0 %v1916_v40  ;;  %v1763_v40 = vld [vmem:[#allocation4 + $0xe0] sm:$0xff]  ;;  %v1892_v63 = vld [vmem:[#allocation4 + $0x4e8] sm:$0xff] }
 0x11e   :  { %v4607_v56 = vpop.f32.mrf.mxu0  ;;  %v4609_v57 = vpop.f32.mrf.mxu1  ;;  %2405 = vmatpush1.msra.mxu0 %v1915_v1  ;;  %2318 = vmatpush1.msra.mxu1 %v1783_v2  ;;  %v1760_v2 = vld [vmem:[#allocation4 + $0xc8] sm:$0xff] }
 0x11f   :  { %5489 = vst [vmem:[#allocation21_spill] sm:$0xff] %v4607_v56  ;;  %2406 = vmatprep.subr.mxu0 %v1912_v5  ;;  %2319 = vmatprep.subr.mxu1 %v1780_v6  ;;  %v1891_v5 = vld [vmem:[#allocation4 + $0x4e0] sm:$0xff] }
 0x120   :  { %v4611_v61 = vpop.f32.mrf.mxu0  ;;  %v4613_v62 = vpop.f32.mrf.mxu1  ;;  %3912 = vmatmul.mubr.msk.f32.gmra.mxu0 %vm160_vm1, %v4260_v41  ;;  %2320 = vmatpush1.msra.mxu1 %v1779_v9  ;;  %v1759_v6 = vld [vmem:[#allocation4 + $0xc0] sm:$0xff] }
 0x121   :  { %5490 = vst [vmem:[#allocation22_spill] sm:$0xff] %v4613_v62  ;;  %1524 = vmatprep.mubr.f32.mxu0 %v5477_v0  ;;  %2407 = vmatpush1.msra.mxu0 %v1911_v7  ;;  %v1847_v62 = vld [vmem:[#allocation4 + $0x380] sm:$0xff] }
 0x122   :  { %v4618_v3 = vpop.f32.mrf.mxu0  ;;  %v4620_v4 = vpop.f32.mrf.mxu1  ;;  %2408 = vmatprep.subr.mxu0 %v1908_v10  ;;  %2321 = vmatprep.subr.mxu1 %v1776_v11  ;;  %v1888_v10 = vld [vmem:[#allocation4 + $0x4c8] sm:$0xff]  ;;  %v1839_v56 = vld [vmem:[#allocation4 + $0x340] sm:$0xff] }
 0x123   :  { %5491 = vst [vmem:[#allocation23_spill] sm:$0xff] %v4618_v3  ;;  %2409 = vmatpush1.msra.mxu0 %v1907_v14  ;;  %2322 = vmatpush1.msra.mxu1 %v1775_v15  ;;  %v1756_v11 = vld [vmem:[#allocation4 + $0xa8] sm:$0xff]  ;;  %v1887_v14 = vld [vmem:[#allocation4 + $0x4c0] sm:$0xff] }
 0x124   :  { %v4622_v8 = vpop.f32.mrf.mxu0  ;;  %v4624_v41 = vpop.f32.mrf.mxu1  ;;  %3913 = vmatmul.mubr.msk.f32.gmra.mxu0 %vm160_vm1, %v4271_v42  ;;  %2410 = vmatprep.subr.mxu0 %v1904_v16  ;;  %v1755_v16 = vld [vmem:[#allocation4 + $0xa0] sm:$0xff] }
 0x125   :  { %5492 = vst [vmem:[#allocation24_spill] sm:$0xff] %v4624_v41  ;;  %1530 = vmatprep.mubr.f32.mxu0 %v5477_v0  ;;  %2323 = vmatprep.subr.mxu1 %v1772_v18  ;;  %v1884_v18 = vld [vmem:[#allocation4 + $0x4a8] sm:$0xff]  ;;  %v1855_v41 = vld [vmem:[#allocation4 + $0x3c0] sm:$0xff] }
 0x126   :  { %v4629_v12 = vpop.f32.mrf.mxu0  ;;  %v4631_v13 = vpop.f32.mrf.mxu1  ;;  %2411 = vmatpush1.msra.mxu0 %v1903_v19  ;;  %2324 = vmatpush1.msra.mxu1 %v1771_v20  ;;  %v1752_v19 = vld [vmem:[#allocation4 + $0x88] sm:$0xff] }
 0x127   :  { %5493 = vst [vmem:[#allocation25_spill] sm:$0xff] %v4629_v12  ;;  %2412 = vmatprep.subr.mxu0 %v1900_v32  ;;  %2325 = vmatprep.subr.mxu1 %v1768_v49  ;;  %v1883_v49 = vld [vmem:[#allocation4 + $0x4a0] sm:$0xff] }
 0x128   :  { %v4633_v17 = vpop.f32.mrf.mxu0  ;;  %v4635_v42 = vpop.f32.mrf.mxu1  ;;  %3914 = vmatmul.mubr.msk.f32.gmra.mxu0 %vm160_vm1, %v4282_v43  ;;  %2326 = vmatpush1.msra.mxu1 %v1767_v37  ;;  %v1880_v37 = vld [vmem:[#allocation4 + $0x488] sm:$0xff] }
 0x129   :  { %5494 = vst [vmem:[#allocation26_spill] sm:$0xff] %v4635_v42  ;;  %1536 = vmatprep.mubr.f32.mxu0 %v5477_v0  ;;  %2413 = vmatpush1.msra.mxu0 %v1899_v50  ;;  %v1751_v50 = vld [vmem:[#allocation4 + $0x80] sm:$0xff] }
 0x12a   :  { %v4640_v22 = vpop.f32.mrf.mxu0  ;;  %v4642_v23 = vpop.f32.mrf.mxu1  ;;  %2414 = vmatprep.subr.mxu0 %v1896_v54  ;;  %2327 = vmatprep.subr.mxu1 %v1764_v55  ;;  %v1748_v54 = vld [vmem:[#allocation4 + $0x68] sm:$0xff] }
 0x12b   :  { %5495 = vst [vmem:[#allocation27_spill] sm:$0xff] %v4640_v22  ;;  %2415 = vmatpush1.msra.mxu0 %v1895_v60  ;;  %2328 = vmatpush1.msra.mxu1 %v1763_v40  ;;  %v1879_v60 = vld [vmem:[#allocation4 + $0x480] sm:$0xff] }
 0x12c   :  { %v4644_v53 = vpop.f32.mrf.mxu0  ;;  %v4646_v43 = vpop.f32.mrf.mxu1  ;;  %3915 = vmatmul.mubr.msk.f32.gmra.mxu0 %vm160_vm1, %v4293_v44  ;;  %2416 = vmatprep.subr.mxu0 %v1892_v63  ;;  %v1747_v40 = vld [vmem:[#allocation4 + $0x60] sm:$0xff]  ;;  %v1876_v63 = vld [vmem:[#allocation4 + $0x468] sm:$0xff] }
 0x12d   :  { %1542 = vmatprep.mubr.f32.mxu0 %v5477_v0  ;;  %2329 = vmatprep.subr.mxu1 %v1760_v2  ;;  %v1744_v2 = vld [vmem:[#allocation4 + $0x48] sm:$0xff] }
 0x12e   :  { %v4651_v58 = vpop.f32.mrf.mxu0  ;;  %v4653_v59 = vpop.f32.mrf.mxu1  ;;  %2417 = vmatpush1.msra.mxu0 %v1891_v5  ;;  %2330 = vmatpush1.msra.mxu1 %v1759_v6 }
 0x12f   :  { %2418 = vmatprep.subr.mxu0 %v1888_v10  ;;  %2331 = vmatprep.subr.mxu1 %v1756_v11  ;;  %v1875_v10 = vld [vmem:[#allocation4 + $0x460] sm:$0xff] }
 0x130   :  { %v4655_v1 = vpop.f32.mrf.mxu0  ;;  %v4657_v44 = vpop.f32.mrf.mxu1  ;;  %3916 = vmatmul.mubr.msk.f32.gmra.mxu0 %vm160_vm1, %v4304_v45  ;;  %2332 = vmatpush1.msra.mxu1 %v1755_v16  ;;  %v1743_v11 = vld [vmem:[#allocation4 + $0x40] sm:$0xff]  ;;  %v1740_v16 = vld [vmem:[#allocation4 + $0x28] sm:$0xff] }
 0x131   :  { %1548 = vmatprep.mubr.f32.mxu0 %v5477_v0  ;;  %2419 = vmatpush1.msra.mxu0 %v1887_v14  ;;  %v1872_v14 = vld [vmem:[#allocation4 + $0x448] sm:$0xff] }
 0x132   :  { %v4662_v7 = vpop.f32.mrf.mxu0  ;;  %v4664_v9 = vpop.f32.mrf.mxu1  ;;  %2420 = vmatprep.subr.mxu0 %v1884_v18  ;;  %2333 = vmatprep.subr.mxu1 %v1752_v19  ;;  %v1871_v19 = vld [vmem:[#allocation4 + $0x440] sm:$0xff] }
 0x133   :  { %2421 = vmatpush1.msra.mxu0 %v1883_v49  ;;  %2334 = vmatpush1.msra.mxu1 %v1751_v50  ;;  %v1739_v49 = vld [vmem:[#allocation4 + $0x20] sm:$0xff] }
 0x134   :  { %v4666_v15 = vpop.f32.mrf.mxu0  ;;  %v4668_v45 = vpop.f32.mrf.mxu1  ;;  %3917 = vmatmul.mubr.msk.f32.gmra.mxu0 %vm160_vm1, %v4315_v46  ;;  %2422 = vmatprep.subr.mxu0 %v1880_v37  ;;  %v1868_v37 = vld [vmem:[#allocation4 + $0x428] sm:$0xff] }
 0x135   :  { %5496 = vst [vmem:[#allocation28_spill] sm:$0xff] %v4668_v45  ;;  %1554 = vmatprep.mubr.f32.mxu0 %v5477_v0  ;;  %2335 = vmatprep.subr.mxu1 %v1748_v54  ;;  %v1736_v54 = vld [vmem:[#allocation4 + $0x8] sm:$0xff] }
 0x136   :  { %v4673_v20 = vpop.f32.mrf.mxu0  ;;  %v4675_v32 = vpop.f32.mrf.mxu1  ;;  %2423 = vmatpush1.msra.mxu0 %v1879_v60  ;;  %2336 = vmatpush1.msra.mxu1 %v1747_v40  ;;  %v1867_v40 = vld [vmem:[#allocation4 + $0x420] sm:$0xff] }
 0x137   :  { %2424 = vmatprep.subr.mxu0 %v1876_v63  ;;  %2337 = vmatprep.subr.mxu1 %v1744_v2  ;;  %v1864_v63 = vld [vmem:[#allocation4 + $0x408] sm:$0xff] }
 0x138   :  { %v4677_v46 = vpop.f32.mrf.mxu0  ;;  %v4679_v55 = vpop.f32.mrf.mxu1  ;;  %3918 = vmatmul.mubr.msk.f32.gmra.mxu0 %vm160_vm1, %v4549_v24  ;;  %2338 = vmatpush1.msra.mxu1 %v1743_v11  ;;  %v1860_v2 = vld [vmem:[#allocation4 + $0x3e8] sm:$0xff]  ;;  %v1859_v11 = vld [vmem:[#allocation4 + $0x3e0] sm:$0xff] }
 0x139   :  { %5497 = vst [vmem:[#allocation29_spill] sm:$0xff] %v4679_v55  ;;  %2425 = vmatpush1.msra.mxu0 %v1875_v10  ;;  %2339 = vmatprep.subr.mxu1 %v1740_v16  ;;  %v1735_v55 = vld [vmem:[#allocation4] sm:$0xff]  ;;  %v1856_v16 = vld [vmem:[#allocation4 + $0x3c8] sm:$0xff] }
 0x13a   :  { %v4683_v5 = vpop.f32.mrf.mxu0  ;;  %v4685_v6 = vpop.f32.mrf.mxu1  ;;  %2426 = vmatprep.subr.mxu0 %v1872_v14  ;;  %2340 = vmatpush1.msra.mxu1 %v1739_v49  ;;  %v1863_v10 = vld [vmem:[#allocation4 + $0x400] sm:$0xff]  ;;  %v1988_v14 = vld [vmem:[#allocation4 + $0x7e8] sm:$0xff] }
 0x13b   :  { %2427 = vmatpush1.msra.mxu0 %v1871_v19  ;;  %2341 = vmatprep.subr.mxu1 %v1736_v54  ;;  %v1987_v49 = vld [vmem:[#allocation4 + $0x7e0] sm:$0xff]  ;;  %v1852_v54 = vld [vmem:[#allocation4 + $0x3a8] sm:$0xff] }
 0x13c   :  { %v4687_v24 = vpop.f32.mrf.mxu0  ;;  %v714_v18 = vpop.f32.mrf.mxu1  ;;  %2428 = vmatprep.subr.mxu0 %v1868_v37  ;;  %2342 = vmatpush1.msra.mxu1 %v1735_v55  ;;  %v1984_v37 = vld [vmem:[#allocation4 + $0x7c8] sm:$0xff]  ;;  %v1983_v55 = vld [vmem:[#allocation4 + $0x7c0] sm:$0xff] }
 0x13d   :  { %v4690_v50 = vadd.f32 %v714_v18, %v4556_v25  ;;  %2429 = vmatpush1.msra.mxu0 %v1867_v40  ;;  %2343 = vmatprep.subr.mxu1 %v1860_v2  ;;  %v1851_v40 = vld [vmem:[#allocation4 + $0x3a0] sm:$0xff]  ;;  %v1848_v2 = vld [vmem:[#allocation4 + $0x388] sm:$0xff] }
 0x13e   :  { %v4692_v0 = vpop.f32.mrf.mxu0  ;;  %v4694_v60 = vpop.f32.mrf.mxu1  ;;  %2430 = vmatprep.subr.mxu0 %v1864_v63  ;;  %2344 = vmatpush2.msra.mxu1 %v1859_v11  ;;  %v1980_v63 = vld [vmem:[#allocation4 + $0x7a8] sm:$0xff]  ;;  %v1979_v11 = vld [vmem:[#allocation4 + $0x7a0] sm:$0xff] }
 0x13f   :  { %5498 = vst [vmem:[#allocation30_spill] sm:$0xff] %v4692_v0  ;;  %5499 = vst [vmem:[#allocation31_spill] sm:$0xff] %v4694_v60  ;;  %2431 = vmatpush1.msra.mxu0 %v1863_v10  ;;  %2345 = vmatprep.subr.mxu1 %v1856_v16  ;;  %v1844_v16 = vld [vmem:[#allocation4 + $0x368] sm:$0xff] }
 0x140   :  { %v4696_v45 = vpop.f32.mrf.mxu0  ;;  %v720_v25 = vpop.f32.mrf.mxu1  ;;  %2432 = vmatprep.subr.mxu0 %v1988_v14  ;;  %2346 = vmatpush2.msra.mxu1 %v1855_v41  ;;  %v1976_v14 = vld [vmem:[#allocation4 + $0x788] sm:$0xff]  ;;  %v1975_v41 = vld [vmem:[#allocation4 + $0x780] sm:$0xff] }
 0x141   :  { %v4699_v18 = vadd.f32 %v720_v25, %v4567_v30  ;;  %2433 = vmatpush2.msra.mxu0 %v1987_v49  ;;  %2347 = vmatprep.subr.mxu1 %v1852_v54  ;;  %v1843_v49 = vld [vmem:[#allocation4 + $0x360] sm:$0xff]  ;;  %v1840_v54 = vld [vmem:[#allocation4 + $0x348] sm:$0xff] }
 0x142   :  { %v4701_v42 = vpop.f32.mrf.mxu0  ;;  %v4703_v19 = vpop.f32.mrf.mxu1  ;;  %2434 = vmatprep.subr.mxu0 %v1984_v37  ;;  %2348 = vmatpush2.msra.mxu1 %v1851_v40  ;;  %v1972_v37 = vld [vmem:[#allocation4 + $0x768] sm:$0xff]  ;;  %v1971_v40 = vld [vmem:[#allocation4 + $0x760] sm:$0xff] }
 0x143   :  { %5500 = vst [vmem:[#allocation32_spill] sm:$0xff] %v4701_v42  ;;  %5501 = vst [vmem:[#allocation33_spill] sm:$0xff] %v4703_v19  ;;  %2435 = vmatpush2.msra.mxu0 %v1983_v55  ;;  %2349 = vmatprep.subr.mxu1 %v1848_v2  ;;  %v1836_v2 = vld [vmem:[#allocation4 + $0x328] sm:$0xff] }
 0x144   :  { %v4705_v22 = vpop.f32.mrf.mxu0  ;;  %v726_v30 = vpop.f32.mrf.mxu1  ;;  %2436 = vmatprep.subr.mxu0 %v1980_v63  ;;  %2350 = vmatpush2.msra.mxu1 %v1847_v62  ;;  %v1968_v63 = vld [vmem:[#allocation4 + $0x748] sm:$0xff]  ;;  %v1967_v62 = vld [vmem:[#allocation4 + $0x740] sm:$0xff] }
 0x145   :  { %v4708_v25 = vadd.f32 %v726_v30, %v4578_v21  ;;  %2437 = vmatpush2.msra.mxu0 %v1979_v11  ;;  %2351 = vmatprep.subr.mxu1 %v1844_v16  ;;  %v1835_v11 = vld [vmem:[#allocation4 + $0x320] sm:$0xff]  ;;  %v1832_v16 = vld [vmem:[#allocation4 + $0x308] sm:$0xff] }
 0x146   :  { %v4710_v12 = vpop.f32.mrf.mxu0  ;;  %v4712_v10 = vpop.f32.mrf.mxu1  ;;  %2438 = vmatprep.subr.mxu0 %v1976_v14  ;;  %2352 = vmatpush2.msra.mxu1 %v1843_v49  ;;  %v1964_v14 = vld [vmem:[#allocation4 + $0x728] sm:$0xff]  ;;  %v1963_v49 = vld [vmem:[#allocation4 + $0x720] sm:$0xff] }
 0x147   :  { %5502 = vst [vmem:[#allocation34_spill] sm:$0xff] %v4710_v12  ;;  %5503 = vst [vmem:[#allocation35_spill] sm:$0xff] %v4712_v10  ;;  %2439 = vmatpush2.msra.mxu0 %v1975_v41  ;;  %2353 = vmatprep.subr.mxu1 %v1840_v54  ;;  %v1828_v54 = vld [vmem:[#allocation4 + $0x2e8] sm:$0xff] }
 0x148   :  { %v4714_v3 = vpop.f32.mrf.mxu0  ;;  %v732_v21 = vpop.f32.mrf.mxu1  ;;  %2440 = vmatprep.subr.mxu0 %v1972_v37  ;;  %2354 = vmatpush2.msra.mxu1 %v1839_v56  ;;  %v1960_v37 = vld [vmem:[#allocation4 + $0x708] sm:$0xff]  ;;  %v1959_v56 = vld [vmem:[#allocation4 + $0x700] sm:$0xff] }
 0x149   :  { %v4717_v30 = vadd.f32 %v732_v21, %v4589_v27  ;;  %2441 = vmatpush2.msra.mxu0 %v1971_v40  ;;  %2355 = vmatprep.subr.mxu1 %v1836_v2  ;;  %v1827_v40 = vld [vmem:[#allocation4 + $0x2e0] sm:$0xff]  ;;  %v1824_v2 = vld [vmem:[#allocation4 + $0x2c8] sm:$0xff] }
 0x14a   :  { %v4719_v52 = vpop.f32.mrf.mxu0  ;;  %v4721_v55 = vpop.f32.mrf.mxu1  ;;  %2442 = vmatprep.subr.mxu0 %v1968_v63  ;;  %2356 = vmatpush2.msra.mxu1 %v1835_v11  ;;  %v1956_v63 = vld [vmem:[#allocation4 + $0x6e8] sm:$0xff]  ;;  %v1955_v11 = vld [vmem:[#allocation4 + $0x6e0] sm:$0xff] }
 0x14b   :  { %5504 = vst [vmem:[#allocation36_spill] sm:$0xff] %v4719_v52  ;;  %5505 = vst [vmem:[#allocation37_spill] sm:$0xff] %v4721_v55  ;;  %v1831_v55 = vld [vmem:[#allocation4 + $0x300] sm:$0xff]  ;;  %2443 = vmatpush2.msra.mxu0 %v1967_v62  ;;  %2357 = vmatprep.subr.mxu1 %v1832_v16  ;;  %v1820_v16 = vld [vmem:[#allocation4 + $0x2a8] sm:$0xff] }
 0x14c   :  { %v4723_v39 = vpop.f32.mrf.mxu0  ;;  %v738_v27 = vpop.f32.mrf.mxu1  ;;  %2444 = vmatprep.subr.mxu0 %v1964_v14  ;;  %2358 = vmatpush2.msra.mxu1 %v1831_v55  ;;  %v1952_v14 = vld [vmem:[#allocation4 + $0x6c8] sm:$0xff]  ;;  %v1951_v55 = vld [vmem:[#allocation4 + $0x6c0] sm:$0xff] }
 0x14d   :  { %v4726_v21 = vadd.f32 %v738_v27, %v4600_v51  ;;  %2445 = vmatpush2.msra.mxu0 %v1963_v49  ;;  %2359 = vmatprep.subr.mxu1 %v1828_v54  ;;  %v1819_v49 = vld [vmem:[#allocation4 + $0x2a0] sm:$0xff]  ;;  %v1816_v54 = vld [vmem:[#allocation4 + $0x288] sm:$0xff] }
 0x14e   :  { %v4728_v52 = vpop.f32.mrf.mxu0  ;;  %v4730_v41 = vpop.f32.mrf.mxu1  ;;  %2446 = vmatprep.subr.mxu0 %v1960_v37  ;;  %2360 = vmatpush2.msra.mxu1 %v1827_v40  ;;  %v1948_v37 = vld [vmem:[#allocation4 + $0x6a8] sm:$0xff]  ;;  %v1947_v40 = vld [vmem:[#allocation4 + $0x6a0] sm:$0xff] }
 0x14f   :  { %5506 = vst [vmem:[#allocation38_spill] sm:$0xff] %v4728_v52  ;;  %5507 = vst [vmem:[#allocation39_spill] sm:$0xff] %v4730_v41  ;;  %v1823_v41 = vld [vmem:[#allocation4 + $0x2c0] sm:$0xff]  ;;  %2447 = vmatpush2.msra.mxu0 %v1959_v56  ;;  %2361 = vmatprep.subr.mxu1 %v1824_v2  ;;  %v1812_v2 = vld [vmem:[#allocation4 + $0x268] sm:$0xff] }
 0x150   :  { %v4732_v47 = vpop.f32.mrf.mxu0  ;;  %v744_v51 = vpop.f32.mrf.mxu1  ;;  %2448 = vmatprep.subr.mxu0 %v1956_v63  ;;  %2362 = vmatpush2.msra.mxu1 %v1823_v41  ;;  %v1944_v63 = vld [vmem:[#allocation4 + $0x688] sm:$0xff]  ;;  %v1943_v41 = vld [vmem:[#allocation4 + $0x680] sm:$0xff] }
 0x151   :  { %v4735_v27 = vadd.f32 %v744_v51, %v4611_v61  ;;  %2449 = vmatpush2.msra.mxu0 %v1955_v11  ;;  %2363 = vmatprep.subr.mxu1 %v1820_v16  ;;  %v1811_v11 = vld [vmem:[#allocation4 + $0x260] sm:$0xff]  ;;  %v1808_v16 = vld [vmem:[#allocation4 + $0x248] sm:$0xff] }
 0x152   :  { %v4737_v52 = vpop.f32.mrf.mxu0  ;;  %v4739_v62 = vpop.f32.mrf.mxu1  ;;  %2450 = vmatprep.subr.mxu0 %v1952_v14  ;;  %2364 = vmatpush2.msra.mxu1 %v1819_v49  ;;  %v1940_v14 = vld [vmem:[#allocation4 + $0x668] sm:$0xff]  ;;  %v1939_v49 = vld [vmem:[#allocation4 + $0x660] sm:$0xff] }
 0x153   :  { %5508 = vst [vmem:[#allocation40_spill] sm:$0xff] %v4737_v52  ;;  %5509 = vst [vmem:[#allocation41_spill] sm:$0xff] %v4739_v62  ;;  %v1815_v62 = vld [vmem:[#allocation4 + $0x280] sm:$0xff]  ;;  %2451 = vmatpush2.msra.mxu0 %v1951_v55  ;;  %2365 = vmatprep.subr.mxu1 %v1816_v54  ;;  %v1804_v54 = vld [vmem:[#allocation4 + $0x228] sm:$0xff] }
 0x154   :  { %v4741_v12 = vpop.f32.mrf.mxu0  ;;  %v750_v61 = vpop.f32.mrf.mxu1  ;;  %2452 = vmatprep.subr.mxu0 %v1948_v37  ;;  %2366 = vmatpush2.msra.mxu1 %v1815_v62  ;;  %v1936_v37 = vld [vmem:[#allocation4 + $0x648] sm:$0xff]  ;;  %v1935_v62 = vld [vmem:[#allocation4 + $0x640] sm:$0xff] }
 0x155   :  { %v4744_v51 = vadd.f32 %v750_v61, %v4622_v8  ;;  %2453 = vmatpush2.msra.mxu0 %v1947_v40  ;;  %2367 = vmatprep.subr.mxu1 %v1812_v2  ;;  %v1803_v40 = vld [vmem:[#allocation4 + $0x220] sm:$0xff]  ;;  %v1800_v2 = vld [vmem:[#allocation4 + $0x208] sm:$0xff] }
 0x156   :  { %v4746_v52 = vpop.f32.mrf.mxu0  ;;  %v4748_v56 = vpop.f32.mrf.mxu1  ;;  %2454 = vmatprep.subr.mxu0 %v1944_v63  ;;  %2368 = vmatpush2.msra.mxu1 %v1811_v11  ;;  %v1932_v63 = vld [vmem:[#allocation4 + $0x628] sm:$0xff]  ;;  %v1931_v11 = vld [vmem:[#allocation4 + $0x620] sm:$0xff] }
 0x157   :  { %5510 = vst [vmem:[#allocation42_spill] sm:$0xff] %v4746_v52  ;;  %5511 = vst [vmem:[#allocation43_spill] sm:$0xff] %v4748_v56  ;;  %v1807_v56 = vld [vmem:[#allocation4 + $0x240] sm:$0xff]  ;;  %2455 = vmatpush2.msra.mxu0 %v1943_v41  ;;  %2369 = vmatprep.subr.mxu1 %v1808_v16  ;;  %v2052_v16 = vld [vmem:[#allocation4 + $0x9e8] sm:$0xff] }
 0x158   :  { %v4750_v35 = vpop.f32.mrf.mxu0  ;;  %v756_v8 = vpop.f32.mrf.mxu1  ;;  %2456 = vmatprep.subr.mxu0 %v1940_v14  ;;  %2370 = vmatpush2.msra.mxu1 %v1807_v56  ;;  %v1928_v14 = vld [vmem:[#allocation4 + $0x608] sm:$0xff]  ;;  %v1927_v56 = vld [vmem:[#allocation4 + $0x600] sm:$0xff] }
 0x159   :  { %v4753_v61 = vadd.f32 %v756_v8, %v4633_v17  ;;  %2457 = vmatpush2.msra.mxu0 %v1939_v49  ;;  %2371 = vmatprep.subr.mxu1 %v1804_v54 }
 0x15a   :  { %v4755_v52 = vpop.f32.mrf.mxu0  ;;  %v4757_v55 = vpop.f32.mrf.mxu1  ;;  %2458 = vmatprep.subr.mxu0 %v1936_v37  ;;  %2372 = vmatpush2.msra.mxu1 %v1803_v40 }
 0x15b   :  { %5512 = vst [vmem:[#allocation44_spill] sm:$0xff] %v4755_v52  ;;  %5513 = vst [vmem:[#allocation45_spill] sm:$0xff] %v4757_v55  ;;  %v1799_v55 = vld [vmem:[#allocation4 + $0x200] sm:$0xff]  ;;  %2459 = vmatpush2.msra.mxu0 %v1935_v62  ;;  %2373 = vmatprep.subr.mxu1 %v1800_v2 }
 0x15c   :  { %v4759_v10 = vpop.f32.mrf.mxu0  ;;  %v762_v17 = vpop.f32.mrf.mxu1  ;;  %2460 = vmatprep.subr.mxu0 %v1932_v63  ;;  %2374 = vmatpush2.msra.mxu1 %v1799_v55 }
 0x15d   :  { %v4762_v8 = vadd.f32 %v762_v17, %v4644_v53  ;;  %2461 = vmatpush2.msra.mxu0 %v1931_v11  ;;  %v2180_v17 = vld [vmem:[#allocation4 + $0xde8] sm:$0xff]  ;;  %2489 = vmatprep.subr.mxu1 %v2052_v16 }
 0x15e   :  { %v4764_v52 = vpop.f32.mrf.mxu0  ;;  %v4766_v41 = vpop.f32.mrf.mxu1  ;;  %2462 = vmatprep.subr.mxu0 %v1928_v14 }
 0x15f   :  { %5514 = vst [vmem:[#allocation46_spill] sm:$0xff] %v4764_v52  ;;  %2463 = vmatpush2.msra.mxu0 %v1927_v56 }
 0x160   :  { %v4768_v36 = vpop.f32.mrf.mxu0  ;;  %v768_v53 = vpop.f32.mrf.mxu1  ;;  %2578 = vmatprep.subr.mxu0 %v2180_v17 }
 0x161   :  { %v4771_v49 = vadd.f32 %v768_v53, %v4655_v1 }
 0x162   :  { %v4773_v37 = vpop.f32.mrf.mxu0  ;;  %v4775_v54 = vpop.f32.mrf.mxu1 }
 0x163   :  { %5515 = vst [vmem:[#allocation47_spill] sm:$0xff] %v4773_v37 }
 0x164   :  { %v4777_v62 = vpop.f32.mrf.mxu0  ;;  %v774_v40 = vpop.f32.mrf.mxu1 }
 0x165   :  { %v4780_v63 = vadd.f32 %v774_v40, %v4666_v15 }
 0x166   :  { %v618_v2 = vpop.f32.mrf.mxu0  ;;  %v4782_v1 = vpop.f32.mrf.mxu1 }
 0x168   :  { %v4784_v11 = vpop.f32.mrf.mxu0  ;;  %v780_v55 = vpop.f32.mrf.mxu1 }
 0x169   :  { %v4787_v53 = vadd.f32 %v780_v55, %v4677_v46 }
 0x16a   :  { %v4789_v37 = vpop.f32.mrf.mxu0  ;;  %v4791_v14 = vpop.f32.mrf.mxu1 }
 0x16c   :  { %v4793_v16 = vpop.f32.mrf.mxu0  ;;  %v988_v56 = vpop.f32.mrf.mxu1 }
 0x16d   :  { %5516 = vst [vmem:[#allocation48_spill] sm:$0xff] %v4793_v16  ;;  %v4796_v17 = vadd.f32 %v988_v56, %v4687_v24 }
 0x16e   :  { %v853_v15 = vpop.f32.mrf.mxu0  ;;  %v4798_v40 = vpop.f32.mrf.mxu1 }
 0x16f   :  { %5517 = vst [vmem:[#allocation49_spill] sm:$0xff] %v4796_v17  ;;  %5518 = vst [vmem:[#allocation50_spill] sm:$0xff] %v4798_v40 }
 0x170   :  { %v4800_v52 = vpop.f32.mrf.mxu0  ;;  %v994_v42 = vpop.f32.mrf.mxu1 }
 0x171   :  { %5519 = vst [vmem:[#allocation51_spill] sm:$0xff] %v4800_v52  ;;  %v4803_v31 = vadd.f32 %v994_v42, %v4696_v45 }
 0x172   :  { %v4805_v46 = vpop.f32.mrf.mxu0  ;;  %v4807_v55 = vpop.f32.mrf.mxu1 }
 0x173   :  { %5520 = vst [vmem:[#allocation52_spill] sm:$0xff] %v4803_v31  ;;  %5521 = vst [vmem:[#allocation53_spill] sm:$0xff] %v4807_v55 }
 0x174   :  { %v4809_v19 = vpop.f32.mrf.mxu0  ;;  %v1000_v33 = vpop.f32.mrf.mxu1 }
 0x175   :  { %5522 = vst [vmem:[#allocation54_spill] sm:$0xff] %v4809_v19  ;;  %v4812_v0 = vadd.f32 %v1000_v33, %v4705_v22 }
 0x176   :  { %v4814_v24 = vpop.f32.mrf.mxu0  ;;  %v4816_v56 = vpop.f32.mrf.mxu1 }
 0x177   :  { %5523 = vst [vmem:[#allocation55_spill] sm:$0xff] %v4812_v0  ;;  %5524 = vst [vmem:[#allocation56_spill] sm:$0xff] %v4816_v56 }
 0x178   :  { %v4818_v17 = vpop.f32.mrf.mxu0  ;;  %v1006_v52 = vpop.f32.mrf.mxu1 }
 0x179   :  { %5525 = vst [vmem:[#allocation57_spill] sm:$0xff] %v4818_v17  ;;  %v4821_v42 = vadd.f32 %v1006_v52, %v4714_v3 }
 0x17a   :  { %v4823_v45 = vpop.f32.mrf.mxu0  ;;  %v4825_v31 = vpop.f32.mrf.mxu1 }
 0x17b   :  { %5526 = vst [vmem:[#allocation58_spill] sm:$0xff] %v4821_v42  ;;  %5527 = vst [vmem:[#allocation59_spill] sm:$0xff] %v4825_v31 }
 0x17c   :  { %v4827_v55 = vpop.f32.mrf.mxu0  ;;  %v1012_v19 = vpop.f32.mrf.mxu1 }
 0x17d   :  { %5528 = vst [vmem:[#allocation60_spill] sm:$0xff] %v4827_v55  ;;  %v4830_v33 = vadd.f32 %v1012_v19, %v4723_v39 }
 0x17e   :  { %v4832_v22 = vpop.f32.mrf.mxu0  ;;  %v4834_v0 = vpop.f32.mrf.mxu1 }
 0x17f   :  { %5529 = vst [vmem:[#allocation61_spill] sm:$0xff] %v4830_v33  ;;  %5530 = vst [vmem:[#allocation62_spill] sm:$0xff] %v4834_v0 }
 0x180   :  { %v4836_v56 = vpop.f32.mrf.mxu0  ;;  %v1018_v17 = vpop.f32.mrf.mxu1 }
 0x181   :  { %5531 = vst [vmem:[#allocation63_spill] sm:$0xff] %v4836_v56  ;;  %v4839_v52 = vadd.f32 %v1018_v17, %v4732_v47 }
 0x182   :  { %v4841_v3 = vpop.f32.mrf.mxu0  ;;  %v4843_v42 = vpop.f32.mrf.mxu1 }
 0x183   :  { %5532 = vst [vmem:[#allocation64_spill] sm:$0xff] %v4839_v52  ;;  %5533 = vst [vmem:[#allocation65_spill] sm:$0xff] %v4843_v42 }
 0x184   :  { %v4845_v31 = vpop.f32.mrf.mxu0  ;;  %v1024_v55 = vpop.f32.mrf.mxu1 }
 0x185   :  { %5534 = vst [vmem:[#allocation66_spill] sm:$0xff] %v4845_v31  ;;  %v4848_v39 = vadd.f32 %v1024_v55, %v4741_v12 }
 0x186   :  { %v4850_v19 = vpop.f32.mrf.mxu0  ;;  %v4852_v33 = vpop.f32.mrf.mxu1 }
 0x187   :  { %5535 = vst [vmem:[#allocation67_spill] sm:$0xff] %v4848_v39  ;;  %5536 = vst [vmem:[#allocation68_spill] sm:$0xff] %v4852_v33 }
 0x188   :  { %v4854_v0 = vpop.f32.mrf.mxu0  ;;  %v1030_v56 = vpop.f32.mrf.mxu1 }
 0x189   :  { %5537 = vst [vmem:[#allocation69_spill] sm:$0xff] %v4854_v0  ;;  %v4857_v47 = vadd.f32 %v1030_v56, %v4750_v35 }
 0x18a   :  { %v4859_v17 = vpop.f32.mrf.mxu0  ;;  %v4861_v52 = vpop.f32.mrf.mxu1 }
 0x18b   :  { %5538 = vst [vmem:[#allocation70_spill] sm:$0xff] %v4857_v47  ;;  %5539 = vst [vmem:[#allocation71_spill] sm:$0xff] %v4861_v52 }
 0x18c   :  { %v4863_v42 = vpop.f32.mrf.mxu0  ;;  %v1036_v31 = vpop.f32.mrf.mxu1 }
 0x18d   :  { %v4866_v12 = vadd.f32 %v1036_v31, %v4759_v10 }
 0x18e   :  { %v4868_v55 = vpop.f32.mrf.mxu0  ;;  %v4870_v39 = vpop.f32.mrf.mxu1 }
 0x18f   :  { %5540 = vst [vmem:[#allocation72_spill] sm:$0xff] %v4866_v12  ;;  %5541 = vst [vmem:[#allocation73_spill] sm:$0xff] %v4870_v39 }
 0x190   :  { %v4872_v33 = vpop.f32.mrf.mxu0  ;;  %v1042_v0 = vpop.f32.mrf.mxu1 }
 0x191   :  { %v4875_v35 = vadd.f32 %v1042_v0, %v4768_v36 }
 0x192   :  { %v4877_v56 = vpop.f32.mrf.mxu0  ;;  %v4879_v47 = vpop.f32.mrf.mxu1 }
 0x193   :  { %5542 = vst [vmem:[#allocation74_spill] sm:$0xff] %v4875_v35  ;;  %5543 = vst [vmem:[#allocation75_spill] sm:$0xff] %v4879_v47 }
 0x194   :  { %v4881_v52 = vpop.f32.mrf.mxu0  ;;  %v1048_v40 = vpop.f32.mrf.mxu1 }
 0x195   :  { %5544 = vst [vmem:[#allocation76_spill] sm:$0xff] %v4881_v52  ;;  %v4884_v31 = vadd.f32 %v1048_v40, %v4777_v62  ;;  %v854_v40 = vadd.f32 %v853_v15, %v4565_v29  ;;  %v1672_v29 = vlaneseq }
 0x196   :  { %v4886_v10 = vpop.f32.mrf.mxu0  ;;  %v1050_v12 = vpop.f32.mrf.mxu1 }
 0x197   :  { %5545 = vst [vmem:[#allocation77_spill] sm:$0xff] %v4884_v31  ;;  %v4888_v39 = vadd.f32 %v1050_v12, %v618_v2 }
 0x198   :  { %v4890_v16 = vpop.f32.mrf.mxu0  ;;  %v1054_v26 = vpop.f32.mrf.mxu1 }
 0x199   :  { %5546 = vst [vmem:[#allocation78_spill] sm:$0xff] %v4888_v39  ;;  %5547 = vst [vmem:[#allocation79_spill] sm:$0xff] %v4890_v16  ;;  %v4893_v0 = vadd.f32 %v1054_v26, %v4784_v11  ;;  %v860_v11 = vadd.f32 %v4805_v46, %v4576_v34  ;;  %v4921_v34 = vshrl.u32 %v1672_v29, 7  ;;  %v878_v29 = vadd.f32 %v4832_v22, %v4609_v57 }
 0x19a   :  { %v4895_v36 = vpop.f32.mrf.mxu0  ;;  %v1056_v35 = vpop.f32.mrf.mxu1 }
 0x19b   :  { %5548 = vst [vmem:[#allocation80_spill] sm:$0xff] %v4893_v0  ;;  %v4898_v52 = vadd.f32 %v1056_v35, %v4789_v37  ;;  %5552 = vst [vmem:[#allocation84_spill] sm:$0xff] %v4921_v34 }
 0x19c   :  { %v1216_v47 = vpop.f32.mrf.mxu0  ;;  %v4900_v62 = vpop.f32.mrf.mxu1 }
 0x19d   :  { %5549 = vst [vmem:[#allocation81_spill] sm:$0xff] %v4898_v52  ;;  %5550 = vst [vmem:[#allocation82_spill] sm:$0xff] %v4900_v62  ;;  %v1561_v12 = vadd.f32 %v1216_v47, %v4690_v50 }
 0x19e   :  { %v4903_v31 = vpop.f32.mrf.mxu0  ;;  %v1355_v2 = vpop.f32.mrf.mxu1 }
 0x19f   :  { %5551 = vst [vmem:[#allocation83_spill] sm:$0xff] %v4903_v31  ;;  %v1564_v16 = vadd.f32 %v1355_v2, %v854_v40  ;;  %v866_v40 = vadd.f32 %v4814_v24, %v4587_v38  ;;  %v95_v24 = vld [vmem:[#allocation9] sm:$0x3f] }
 0x1a0   :  { %v1222_v39 = vpop.f32.mrf.mxu0  ;;  %v4906_v26 = vpop.f32.mrf.mxu1 }
 0x1a1   :  { %v1633_v0 = vmax.f32 %v1561_v12, %v1564_v16  ;;  %v1567_v52 = vadd.f32 %v1222_v39, %v4699_v18  ;;  %v872_v18 = vadd.f32 %v4823_v45, %v4598_v48 }
 0x1a2   :  { %v4910_v37 = vpop.f32.mrf.mxu0  ;;  %v1361_v35 = vpop.f32.mrf.mxu1 }
 0x1a3   :  { %v1570_v62 = vadd.f32 %v1361_v35, %v860_v11 }
 0x1a4   :  { %v1228_v15 = vpop.f32.mrf.mxu0  ;;  %v4913_v31 = vpop.f32.mrf.mxu1 }
 0x1a5   :  { %v1636_v60 = vmax.f32 %v1567_v52, %v1570_v62  ;;  %v4930_v62 = vsub.s32 0, %v4921_v34  ;;  %v1573_v11 = vadd.f32 %v1228_v15, %v4708_v25 }
 0x1a6   :  { %v4915_v50 = vpop.f32.mrf.mxu0  ;;  %v1367_v47 = vpop.f32.mrf.mxu1 }
 0x1a7   :  { %v4919_v2 = vmax.f32 %v1633_v0, %v1636_v60  ;;  %v1576_v39 = vadd.f32 %v1367_v47, %v866_v40  ;;  %v4941_v34 = vrot.slane %v95_v24, %v4930_v62 }
 0x1a8   :  { %v1234_v16 = vpop.f32.mrf.mxu0  ;;  %v4923_v46 = vpop.f32.mrf.mxu1 }
 0x1a9   :  { %5553 = vst [vmem:[#allocation85_spill] sm:$0xff] %v4923_v46  ;;  %v1579_v38 = vadd.f32 %v1234_v16, %v4717_v30  ;;  %v1639_v48 = vmax.f32 %v1573_v11, %v1576_v39 }
 0x1aa   :  { %v4927_v12 = vpop.f32.mrf.mxu0  ;;  %v1373_v52 = vpop.f32.mrf.mxu1 }
 0x1ab   :  { %v1582_v60 = vadd.f32 %v1373_v52, %v872_v18  ;;  %v884_v18 = vadd.f32 %v4841_v3, %v4620_v4 }
 0x1ac   :  { %v1240_v0 = vpop.f32.mrf.mxu0  ;;  %v4934_v35 = vpop.f32.mrf.mxu1 }
 0x1ad   :  { %v1642_v45 = vmax.f32 %v1579_v38, %v1582_v60  ;;  %v1585_v25 = vadd.f32 %v1240_v0, %v4726_v21  ;;  %v890_v0 = vadd.f32 %v4850_v19, %v4631_v13  ;;  %v900_v19 = vadd.f32 %v4863_v42, %v4646_v43 }
 0x1ae   :  { %v4938_v47 = vpop.f32.mrf.mxu0  ;;  %v1379_v40 = vpop.f32.mrf.mxu1 }
 0x1af   :  { %v1690_v46 = vmax.f32 %v1639_v48, %v1642_v45  ;;  %v1588_v30 = vadd.f32 %v1379_v40, %v878_v29 }
 0x1b0   :  { %v1246_v15 = vpop.f32.mrf.mxu0  ;;  %v4944_v16 = vpop.f32.mrf.mxu1 }
 0x1b1   :  { %v1693_v57 = vadd.f32 %v1690_v46, %v4941_v34  ;;  %v1645_v22 = vmax.f32 %v1585_v25, %v1588_v30  ;;  %v1591_v38 = vadd.f32 %v1246_v15, %v4735_v27  ;;  %v896_v25 = vadd.f32 %v4859_v17, %v4642_v23 }
 0x1b2   :  { %v4949_v39 = vpop.f32.mrf.mxu0  ;;  %v1385_v52 = vpop.f32.mrf.mxu1  ;;  %v906_v17 = vadd.f32 %v4872_v33, %v4657_v44 }
 0x1b3   :  { %v4951_v11 = vmax.f32 %v1693_v57, 0.0  ;;  %v1594_v60 = vadd.f32 %v1385_v52, %v884_v18 }
 0x1b4   :  { %v1252_v24 = vpop.f32.mrf.mxu0  ;;  %v4954_v21 = vpop.f32.mrf.mxu1 }
 0x1b5   :  { %v1648_v29 = vmax.f32 %v1591_v38, %v1594_v60  ;;  %2464 = vmatprep.mubr.f32.mxu0 %v4951_v11  ;;  %v1597_v48 = vadd.f32 %v1252_v24, %v4744_v51  ;;  %v765_v51 = vadd.f32 %v4766_v41, %v4651_v58  ;;  %v902_v38 = vadd.f32 %v4868_v55, %v4653_v59 }
 0x1b6   :  { %v4959_v4 = vpop.f32.mrf.mxu0  ;;  %v1391_v3 = vpop.f32.mrf.mxu1  ;;  %v771_v59 = vadd.f32 %v4775_v54, %v4662_v7  ;;  %v908_v41 = vadd.f32 %v4877_v56, %v4664_v9  ;;  %v914_v7 = vadd.f32 %v4886_v10, %v4675_v32 }
 0x1b7   :  { %v4961_v46 = vmax.f32 %v1645_v22, %v1648_v29  ;;  %v1600_v45 = vadd.f32 %v1391_v3, %v890_v0 }
 0x1b8   :  { %v1258_v40 = vpop.f32.mrf.mxu0  ;;  %v4964_v27 = vpop.f32.mrf.mxu1 }
 0x1b9   :  { %v1651_v30 = vmax.f32 %v1597_v48, %v1600_v45  ;;  %v1603_v18 = vadd.f32 %v1258_v40, %v4753_v61 }
 0x1ba   :  { %v4968_v15 = vpop.f32.mrf.mxu0  ;;  %v1397_v13 = vpop.f32.mrf.mxu1 }
 0x1bb   :  { %v1606_v57 = vadd.f32 %v1397_v13, %v896_v25  ;;  %v777_v13 = vadd.f32 %v4782_v1, %v4673_v20  ;;  %v920_v20 = vadd.f32 %v4895_v36, %v4685_v6 }
 0x1bc   :  { %v1264_v22 = vpop.f32.mrf.mxu0  ;;  %v1401_v52 = vpop.f32.mrf.mxu1 }
 0x1bd   :  { %v1654_v60 = vmax.f32 %v1603_v18, %v1606_v57  ;;  %v4977_v23 = vadd.f32 %v1401_v52, %v900_v19  ;;  %v1609_v61 = vadd.f32 %v1264_v22, %v4762_v8 }
 0x1be   :  { %v1266_v24 = vpop.f32.mrf.mxu0  ;;  %v1403_v0 = vpop.f32.mrf.mxu1 }
 0x1bf   :  { %v4981_v43 = vmax.f32 %v1651_v30, %v1654_v60  ;;  %v4984_v42 = vadd.f32 %v1266_v24, %v765_v51  ;;  %v1612_v29 = vadd.f32 %v1403_v0, %v902_v38  ;;  %v783_v51 = vadd.f32 %v4791_v14, %v4683_v5  ;;  %v5554_v38 = vld [vmem:[#allocation31_spill] sm:$0xff]  ;;  %v5555_v0 = vld [vmem:[#allocation13_spill] sm:$0xff]  ;;  %v5558_v5 = vld [vmem:[#allocation50_spill] sm:$0xff] }
 0x1c0   :  { %v1270_v3 = vpop.f32.mrf.mxu0  ;;  %v1407_v58 = vpop.f32.mrf.mxu1  ;;  %v717_v60 = vadd.f32 %v5554_v38, %v4563_v28  ;;  %v5563_v28 = vld [vmem:[#allocation82_spill] sm:$0xff]  ;;  %v5568_v38 = vld [vmem:[#allocation52_spill] sm:$0xff] }
 0x1c1   :  { %v1657_v55 = vmax.f32 %v1609_v61, %v1612_v29  ;;  %v4990_v48 = vadd.f32 %v1407_v58, %v906_v17  ;;  %v1615_v45 = vadd.f32 %v1270_v3, %v4771_v49  ;;  %v5556_v61 = vld [vmem:[#allocation48_spill] sm:$0xff]  ;;  %v5557_v58 = vld [vmem:[#allocation30_spill] sm:$0xff] }
 0x1c2   :  { %v1272_v44 = vpop.f32.mrf.mxu0  ;;  %v1409_v33 = vpop.f32.mrf.mxu1  ;;  %v852_v29 = vadd.f32 %v5556_v61, %v5555_v0  ;;  %v991_v14 = vadd.f32 %v5558_v5, %v5557_v58  ;;  %v5570_v0 = vld [vmem:[#allocation35_spill] sm:$0xff] }
 0x1c3   :  { %v4993_v40 = vadd.f32 %v1272_v44, %v771_v59  ;;  %v1618_v8 = vadd.f32 %v1409_v33, %v908_v41  ;;  %v5559_v59 = vld [vmem:[#allocation83_spill] sm:$0xff]  ;;  %v5560_v41 = vld [vmem:[#allocation49_spill] sm:$0xff] }
 0x1c4   :  { %v1276_v25 = vpop.f32.mrf.mxu0  ;;  %v4995_v30 = vpop.f32.mrf.mxu1  ;;  %v1562_v6 = vadd.f32 %v5559_v59, %v717_v60  ;;  %v5562_v44 = vld [vmem:[#allocation33_spill] sm:$0xff]  ;;  %v5571_v59 = vld [vmem:[#allocation16_spill] sm:$0xff] }
 0x1c5   :  { %v1660_v9 = vmax.f32 %v1615_v45, %v1618_v8  ;;  %v1621_v54 = vadd.f32 %v1276_v25, %v4780_v63  ;;  %v1563_v8 = vadd.f32 %v5563_v28, %v852_v29 }
 0x1c6   :  { %v1278_v56 = vpop.f32.mrf.mxu0  ;;  %v1415_v19 = vpop.f32.mrf.mxu1 }
 0x1c7   :  { %v5002_v18 = vmax.f32 %v1657_v55, %v1660_v9  ;;  %v5004_v49 = vadd.f32 %v1278_v56, %v777_v13  ;;  %v1624_v57 = vadd.f32 %v1415_v19, %v914_v7  ;;  %v5561_v55 = vld [vmem:[#allocation15_spill] sm:$0xff]  ;;  %v5564_v9 = vld [vmem:[#allocation14_spill] sm:$0xff]  ;;  %v5566_v19 = vld [vmem:[#allocation32_spill] sm:$0xff] }
 0x1c8   :  { %v1282_v22 = vpop.f32.mrf.mxu0  ;;  %v5006_v52 = vpop.f32.mrf.mxu1  ;;  %v723_v33 = vadd.f32 %v5562_v44, %v5561_v55 }
 0x1c9   :  { %v1663_v32 = vmax.f32 %v1621_v54, %v1624_v57  ;;  %v1627_v1 = vadd.f32 %v1282_v22, %v4787_v53  ;;  %v5565_v54 = vld [vmem:[#allocation51_spill] sm:$0xff]  ;;  %v5567_v57 = vld [vmem:[#allocation53_spill] sm:$0xff] }
 0x1ca   :  { %v1284_v63 = vpop.f32.mrf.mxu0  ;;  %v1421_v10 = vpop.f32.mrf.mxu1  ;;  %v858_v56 = vadd.f32 %v5565_v54, %v5564_v9  ;;  %v997_v22 = vadd.f32 %v5567_v57, %v5566_v19  ;;  %v5054_v54 = vadd.f32 %v4941_v34, %v4919_v2  ;;  %v1702_v2 = vadd.f32 %v4961_v46, %v4941_v34  ;;  %v2048_v46 = vld [vmem:[#allocation4 + $0x9c8] sm:$0xff] }
 0x1cb   :  { %v5015_v17 = vadd.f32 %v1284_v63, %v783_v51  ;;  %v1630_v24 = vadd.f32 %v1421_v10, %v920_v20  ;;  %v96_v20 = vld [vmem:[#allocation9 + $0x8] sm:$0x3f] }
 0x1cc   :  { %v1490_v3 = vpop.f32.mrf.mxu0 }
 0x1cd   :  { %v1666_v36 = vmax.f32 %v1627_v1, %v1630_v24  ;;  %v1565_v53 = vadd.f32 %v1490_v3, %v5560_v41  ;;  %v1568_v1 = vadd.f32 %v4910_v37, %v723_v33  ;;  %v97_v24 = vld [vmem:[#allocation9 + $0x10] sm:$0x3f]  ;;  %v1569_v3 = vadd.f32 %v4906_v26, %v858_v56  ;;  %v5572_v37 = vld [vmem:[#allocation54_spill] sm:$0xff]  ;;  %v5575_v26 = vld [vmem:[#allocation55_spill] sm:$0xff] }
 0x1ce   :  { %v1492_v45 = vpop.f32.mrf.mxu0  ;;  %v5574_v41 = vld [vmem:[#allocation56_spill] sm:$0xff]  ;;  %v5046_v55 = vrot.slane %v97_v24, %v4930_v62 }
 0x1cf   :  { %v1726_v25 = vmax.f32 %v1663_v32, %v1666_v36  ;;  %v1634_v13 = vmax.f32 %v1562_v6, %v1565_v53  ;;  %v1566_v7 = vadd.f32 %v1492_v45, %v991_v14  ;;  %v5569_v32 = vld [vmem:[#allocation17_spill] sm:$0xff]  ;;  %v5039_v14 = vrot.slane %v96_v20, %v4930_v62  ;;  %v5573_v36 = vld [vmem:[#allocation34_spill] sm:$0xff] }
 0x1d0   :  { %v1496_v51 = vpop.f32.mrf.mxu0  ;;  %v729_v61 = vadd.f32 %v5570_v0, %v5569_v32  ;;  %v864_v6 = vadd.f32 %v5572_v37, %v5571_v59  ;;  %v1003_v53 = vadd.f32 %v5574_v41, %v5573_v36  ;;  %v5582_v0 = vld [vmem:[#allocation58_spill] sm:$0xff]  ;;  %v5583_v59 = vld [vmem:[#allocation85_spill] sm:$0xff]  ;;  %v2179_v41 = vld [vmem:[#allocation4 + $0xde0] sm:$0xff] }
 0x1d1   :  { %v5032_v63 = vadd.f32 %v1726_v25, %v4941_v34  ;;  %v1635_v10 = vmax.f32 %v1563_v8, %v1566_v7  ;;  %v1571_v60 = vadd.f32 %v1496_v51, %v5568_v38  ;;  %v5576_v25 = vld [vmem:[#allocation19_spill] sm:$0xff]  ;;  %v5577_v7 = vld [vmem:[#allocation37_spill] sm:$0xff] }
 0x1d2   :  { %v1498_v29 = vpop.f32.mrf.mxu0  ;;  %v1574_v33 = vadd.f32 %v4915_v50, %v729_v61  ;;  %v735_v9 = vadd.f32 %v5577_v7, %v5576_v25  ;;  %v1575_v56 = vadd.f32 %v4913_v31, %v864_v6  ;;  %v5578_v50 = vld [vmem:[#allocation18_spill] sm:$0xff]  ;;  %v5581_v38 = vld [vmem:[#allocation59_spill] sm:$0xff] }
 0x1d3   :  { %v1637_v58 = vmax.f32 %v1568_v1, %v1571_v60  ;;  %v1572_v5 = vadd.f32 %v1498_v29, %v997_v22  ;;  %v5580_v1 = vld [vmem:[#allocation36_spill] sm:$0xff]  ;;  %v5588_v25 = vld [vmem:[#allocation38_spill] sm:$0xff] }
 0x1d4   :  { %v1502_v44 = vpop.f32.mrf.mxu0  ;;  %v1009_v60 = vadd.f32 %v5581_v38, %v5580_v1  ;;  %v1580_v24 = vadd.f32 %v4927_v12, %v735_v9  ;;  %v5589_v7 = vld [vmem:[#allocation62_spill] sm:$0xff] }
 0x1d5   :  { %v1670_v45 = vmax.f32 %v1634_v13, %v1637_v58  ;;  %v1638_v28 = vmax.f32 %v1569_v3, %v1572_v5  ;;  %v1577_v8 = vadd.f32 %v1502_v44, %v5575_v26  ;;  %v5579_v13 = vld [vmem:[#allocation57_spill] sm:$0xff]  ;;  %v1687_v3 = vmax.f32 %v5054_v54, 0.0  ;;  %v2051_v5 = vld [vmem:[#allocation4 + $0x9e0] sm:$0xff]  ;;  %v5585_v44 = vld [vmem:[#allocation39_spill] sm:$0xff] }
 0x1d6   :  { %v1504_v19 = vpop.f32.mrf.mxu0  ;;  %v870_v20 = vadd.f32 %v5579_v13, %v5578_v50  ;;  %v1015_v9 = vadd.f32 %v5589_v7, %v5588_v25  ;;  %v2176_v50 = vld [vmem:[#allocation4 + $0xdc8] sm:$0xff]  ;;  %v5590_v13 = vld [vmem:[#allocation23_spill] sm:$0xff]  ;;  %v5592_v38 = vld [vmem:[#allocation22_spill] sm:$0xff] }
 0x1d7   :  { %v1671_v57 = vmax.f32 %v1635_v10, %v1638_v28  ;;  %v1640_v62 = vmax.f32 %v1574_v33, %v1577_v8  ;;  %v1578_v22 = vadd.f32 %v1504_v19, %v1003_v53  ;;  %v5058_v51 = vadd.f32 %v5039_v14, %v1670_v45  ;;  %v5584_v53 = vld [vmem:[#allocation21_spill] sm:$0xff]  ;;  %v5586_v45 = vld [vmem:[#allocation20_spill] sm:$0xff]  ;;  %v2238_v54 = vld [vmem:[#allocation4 + $0xfb8] sm:$0xff] }
 0x1d8   :  { %v1508_v32 = vpop.f32.mrf.mxu0  ;;  %v1581_v37 = vadd.f32 %v5583_v59, %v870_v20  ;;  %v741_v33 = vadd.f32 %v5585_v44, %v5584_v53  ;;  %v5587_v28 = vld [vmem:[#allocation60_spill] sm:$0xff]  ;;  %v5591_v20 = vld [vmem:[#allocation41_spill] sm:$0xff] }
 0x1d9   :  { %v5068_v31 = vadd.f32 %v5046_v55, %v1671_v57  ;;  %v1641_v10 = vmax.f32 %v1575_v56, %v1578_v22  ;;  %v1583_v61 = vadd.f32 %v1508_v32, %v5582_v0  ;;  %v1688_v29 = vmax.f32 %v5058_v51, 0.0  ;;  %v2047_v22 = vld [vmem:[#allocation4 + $0x9c0] sm:$0xff]  ;;  %v5596_v44 = vld [vmem:[#allocation65_spill] sm:$0xff]  ;;  %v1953_v51 = vld [vmem:[#allocation4 + $0x6d0] sm:$0xff] }
 0x1da   :  { %v1510_v58 = vpop.f32.mrf.mxu0  ;;  %v876_v26 = vadd.f32 %v5587_v28, %v5586_v45  ;;  %v5085_v56 = vmax.f32 %v1702_v2, 0.0  ;;  %v747_v1 = vadd.f32 %v5591_v20, %v5590_v13  ;;  %v2175_v0 = vld [vmem:[#allocation4 + $0xdc0] sm:$0xff]  ;;  %v2040_v28 = vld [vmem:[#allocation4 + $0x988] sm:$0xff] }
 0x1db   :  { %v1689_v12 = vmax.f32 %v5068_v31, 0.0  ;;  %v1643_v6 = vmax.f32 %v1580_v24, %v1583_v61  ;;  %v1584_v36 = vadd.f32 %v1510_v58, %v1009_v60  ;;  %2375 = vmatprep.mubr.f32.mxu1 %v1688_v29  ;;  %v5593_v60 = vld [vmem:[#allocation63_spill] sm:$0xff]  ;;  %v5595_v53 = vld [vmem:[#allocation40_spill] sm:$0xff] }
 0x1dc   :  { %v1514_v8 = vpop.f32.mrf.mxu0  ;;  %2376 = vmatmul.mubr.f32.vlgmr.msra.gmra.mxu1 %v1687_v3  ;;  %v882_v24 = vadd.f32 %v5593_v60, %v5592_v38  ;;  %v5094_v32 = vadd.f32 %v4934_v35, %v876_v26  ;;  %v1021_v45 = vadd.f32 %v5596_v44, %v5595_v53  ;;  %v1586_v35 = vadd.f32 %v4938_v47, %v741_v33  ;;  %v2171_v26 = vld [vmem:[#allocation4 + $0xda0] sm:$0xff]  ;;  %v5598_v38 = vld [vmem:[#allocation25_spill] sm:$0xff]  ;;  %v5599_v60 = vld [vmem:[#allocation43_spill] sm:$0xff] }
 0x1dd   :  { %v1691_v19 = vmax.f32 %v1640_v62, %v1643_v6  ;;  %v1644_v57 = vmax.f32 %v1581_v37, %v1584_v36  ;;  %2490 = vmatpush1.msra.mxu1 %v2051_v5  ;;  %2465 = vmatmul.mubr.f32.vlgmr.msra.gmra.mxu0 %v1689_v12  ;;  %v2044_v62 = vld [vmem:[#allocation4 + $0x9a8] sm:$0xff]  ;;  %v2043_v6 = vld [vmem:[#allocation4 + $0x9a0] sm:$0xff]  ;;  %v5604_v53 = vld [vmem:[#allocation42_spill] sm:$0xff] }
 0x1de   :  { %2491 = vmatprep.subr.mxu1 %v2048_v46  ;;  %2579 = vmatpush1.msra.mxu0 %v2179_v41  ;;  %v1516_v2 = vpop.f32.mrf.mxu0  ;;  %v5594_v5 = vld [vmem:[#allocation61_spill] sm:$0xff]  ;;  %v1592_v46 = vadd.f32 %v4949_v39, %v747_v1  ;;  %v5597_v7 = vld [vmem:[#allocation64_spill] sm:$0xff]  ;;  %v1593_v47 = vadd.f32 %v4944_v16, %v882_v24  ;;  %v1711_v39 = vadd.f32 %v4981_v43, %v4941_v34  ;;  %v2170_v31 = vld [vmem:[#allocation4 + $0xd98] sm:$0xff] }
 0x1df   :  { %v1694_v61 = vadd.f32 %v1691_v19, %v5039_v14  ;;  %v1692_v58 = vmax.f32 %v1641_v10, %v1644_v57  ;;  %v1589_v59 = vadd.f32 %v1514_v8, %v5594_v5  ;;  %v1590_v37 = vadd.f32 %v1516_v2, %v1015_v9  ;;  %2470 = vmatprep.mubr.f32.mxu0 %v5085_v56  ;;  %v2172_v36 = vld [vmem:[#allocation4 + $0xda8] sm:$0xff]  ;;  %v2039_v19 = vld [vmem:[#allocation4 + $0x980] sm:$0xff] }
 0x1e0   :  { %2492 = vmatpush1.msra.mxu1 %v2047_v22  ;;  %2580 = vmatprep.subr.mxu0 %v2176_v50  ;;  %v1520_v41 = vpop.f32.mrf.mxu0  ;;  %v2168_v57 = vld [vmem:[#allocation4 + $0xd88] sm:$0xff]  ;;  %v2167_v1 = vld [vmem:[#allocation4 + $0xd80] sm:$0xff] }
 0x1e1   :  { %v5103_v10 = vmax.f32 %v1694_v61, 0.0  ;;  %v1695_v8 = vadd.f32 %v1692_v58, %v5046_v55  ;;  %v1647_v25 = vmax.f32 %v5094_v32, %v1590_v37  ;;  %2493 = vmatprep.subr.mxu1 %v2044_v62  ;;  %2581 = vmatpush1.msra.mxu0 %v2175_v0  ;;  %v1595_v9 = vadd.f32 %v1520_v41, %v5597_v7  ;;  %v2036_v22 = vld [vmem:[#allocation4 + $0x968] sm:$0xff]  ;;  %v2035_v24 = vld [vmem:[#allocation4 + $0x960] sm:$0xff]  ;;  %v5600_v62 = vld [vmem:[#allocation27_spill] sm:$0xff] }
 0x1e2   :  { %2494 = vmatpush1.msra.mxu1 %v2043_v6  ;;  %2582 = vmatprep.subr.mxu0 %v2172_v36  ;;  %v1522_v33 = vpop.f32.mrf.mxu0  ;;  %v1646_v50 = vmax.f32 %v1586_v35, %v1589_v59  ;;  %v753_v32 = vadd.f32 %v5599_v60, %v5598_v38  ;;  %v2164_v43 = vld [vmem:[#allocation4 + $0xd68] sm:$0xff]  ;;  %v5602_v37 = vld [vmem:[#allocation24_spill] sm:$0xff]  ;;  %v5603_v6 = vld [vmem:[#allocation66_spill] sm:$0xff] }
 0x1e3   :  { %v1649_v13 = vmax.f32 %v1592_v46, %v1595_v9  ;;  %2495 = vmatprep.subr.mxu1 %v2040_v28  ;;  %2583 = vmatpush1.msra.mxu0 %v2171_v26  ;;  %v1596_v20 = vadd.f32 %v1522_v33, %v1021_v45  ;;  %v5113_v2 = vmax.f32 %v1695_v8, 0.0  ;;  %v5601_v0 = vld [vmem:[#allocation45_spill] sm:$0xff]  ;;  %v888_v36 = vadd.f32 %v5603_v6, %v5602_v37  ;;  %v5605_v44 = vld [vmem:[#allocation68_spill] sm:$0xff]  ;;  %v5606_v35 = vld [vmem:[#allocation26_spill] sm:$0xff] }
 0x1e4   :  { %2496 = vmatpush1.msra.mxu1 %v2039_v19  ;;  %2584 = vmatprep.subr.mxu0 %v2168_v57  ;;  %v1526_v16 = vpop.f32.mrf.mxu0  ;;  %v759_v61 = vadd.f32 %v5601_v0, %v5600_v62  ;;  %v2032_v59 = vld [vmem:[#allocation4 + $0x948] sm:$0xff]  ;;  %v1027_v45 = vadd.f32 %v5605_v44, %v5604_v53  ;;  %v2163_v28 = vld [vmem:[#allocation4 + $0xd60] sm:$0xff]  ;;  %v5125_v8 = vmax.f32 %v1711_v39, 0.0  ;;  %v5608_v19 = vld [vmem:[#allocation67_spill] sm:$0xff] }
 0x1e5   :  { %v1700_v58 = vmax.f32 %v1646_v50, %v1649_v13  ;;  %v1650_v5 = vmax.f32 %v1593_v47, %v1596_v20  ;;  %2381 = vmatprep.mubr.f32.mxu1 %v5103_v10  ;;  %2497 = vmatprep.subr.mxu1 %v2036_v22  ;;  %v5607_v46 = vld [vmem:[#allocation69_spill] sm:$0xff]  ;;  %v1601_v57 = vadd.f32 %v1526_v16, %v5608_v19  ;;  %v2031_v47 = vld [vmem:[#allocation4 + $0x940] sm:$0xff]  ;;  %v5610_v50 = vld [vmem:[#allocation71_spill] sm:$0xff] }
 0x1e6   :  { %v894_v41 = vadd.f32 %v5607_v46, %v5606_v35  ;;  %2585 = vmatpush1.msra.mxu0 %v2167_v1  ;;  %2382 = vmatmul.mubr.f32.gmra.mxu1 %v4951_v11  ;;  %v1528_v26 = vpop.f32.mrf.mxu0  ;;  %v2160_v33 = vld [vmem:[#allocation4 + $0xd48] sm:$0xff]  ;;  %v5609_v22 = vld [vmem:[#allocation44_spill] sm:$0xff]  ;;  %v1599_v20 = vadd.f32 %v4954_v21, %v888_v36  ;;  %v1604_v16 = vadd.f32 %v4968_v15, %v759_v61 }
 0x1e7   :  { %v1703_v7 = vadd.f32 %v1700_v58, %v5039_v14  ;;  %v1701_v9 = vmax.f32 %v1647_v25, %v1650_v5  ;;  %2498 = vmatpush1.msra.mxu1 %v2035_v24  ;;  %2586 = vmatprep.subr.mxu0 %v2164_v43  ;;  %v1033_v13 = vadd.f32 %v5610_v50, %v5609_v22  ;;  %v2028_v39 = vld [vmem:[#allocation4 + $0x928] sm:$0xff]  ;;  %v2159_v38 = vld [vmem:[#allocation4 + $0xd40] sm:$0xff]  ;;  %v5611_v24 = vld [vmem:[#allocation70_spill] sm:$0xff] }
 0x1e8   :  { %2471 = vmatmul.mubr.f32.gmra.mxu0 %v5113_v2  ;;  %2499 = vmatprep.subr.mxu1 %v2032_v59  ;;  %v1602_v1 = vadd.f32 %v1528_v26, %v1027_v45  ;;  %v1532_v60 = vpop.f32.mrf.mxu0  ;;  %v1598_v25 = vadd.f32 %v4959_v4, %v753_v32  ;;  %v2027_v62 = vld [vmem:[#allocation4 + $0x920] sm:$0xff]  ;;  %v2156_v0 = vld [vmem:[#allocation4 + $0xd28] sm:$0xff]  ;;  %v1605_v21 = vadd.f32 %v4964_v27, %v894_v41 }
 0x1e9   :  { %2587 = vmatpush1.msra.mxu0 %v2163_v28  ;;  %2476 = vmatprep.mubr.f32.mxu0 %v5125_v8  ;;  %v1607_v43 = vadd.f32 %v1532_v60, %v5611_v24  ;;  %v1704_v58 = vadd.f32 %v1701_v9, %v5046_v55  ;;  %v2024_v59 = vld [vmem:[#allocation4 + $0x908] sm:$0xff]  ;;  %v2155_v37 = vld [vmem:[#allocation4 + $0xd20] sm:$0xff]  ;;  %v5139_v4 = vmax.f32 %v1703_v7, 0.0  ;;  %v1720_v27 = vadd.f32 %v5002_v18, %v4941_v34  ;;  %v5613_v7 = vld [vmem:[#allocation46_spill] sm:$0xff] }
 0x1ea   :  { %v1653_v5 = vmax.f32 %v1599_v20, %v1602_v1  ;;  %2500 = vmatpush1.msra.mxu1 %v2031_v47  ;;  %2588 = vmatprep.subr.mxu0 %v2160_v33  ;;  %v1534_v6 = vpop.f32.mrf.mxu0  ;;  %v1652_v15 = vmax.f32 %v1598_v25, %v1601_v57  ;;  %v2023_v36 = vld [vmem:[#allocation4 + $0x900] sm:$0xff]  ;;  %v2152_v53 = vld [vmem:[#allocation4 + $0xd08] sm:$0xff] }
 0x1eb   :  { %2501 = vmatprep.subr.mxu1 %v2028_v39  ;;  %2589 = vmatpush1.msra.mxu0 %v2159_v38  ;;  %v1655_v32 = vmax.f32 %v1604_v16, %v1607_v43  ;;  %v1608_v61 = vadd.f32 %v1534_v6, %v1033_v13  ;;  %v2020_v44 = vld [vmem:[#allocation4 + $0x8e8] sm:$0xff]  ;;  %v2151_v41 = vld [vmem:[#allocation4 + $0xd00] sm:$0xff]  ;;  %v5146_v57 = vmax.f32 %v1704_v58, 0.0  ;;  %v5615_v39 = vld [vmem:[#allocation47_spill] sm:$0xff]  ;;  %v5153_v25 = vmax.f32 %v1720_v27, 0.0 }
 0x1ec   :  { %2502 = vmatpush1.msra.mxu1 %v2027_v62  ;;  %2590 = vmatprep.subr.mxu0 %v2156_v0  ;;  %v1538_v45 = vpop.f32.mrf.mxu0  ;;  %v5612_v28 = vld [vmem:[#allocation72_spill] sm:$0xff]  ;;  %v5614_v9 = vld [vmem:[#allocation73_spill] sm:$0xff]  ;;  %v5616_v38 = vld [vmem:[#allocation75_spill] sm:$0xff] }
 0x1ed   :  { %v1709_v35 = vmax.f32 %v1652_v15, %v1655_v32  ;;  %2503 = vmatprep.subr.mxu1 %v2024_v59  ;;  %2591 = vmatpush1.msra.mxu0 %v2155_v37  ;;  %v1656_v46 = vmax.f32 %v1605_v21, %v1608_v61  ;;  %v1613_v26 = vadd.f32 %v1538_v45, %v5612_v28  ;;  %v2019_v47 = vld [vmem:[#allocation4 + $0x8e0] sm:$0xff]  ;;  %v2148_v34 = vld [vmem:[#allocation4 + $0xce8] sm:$0xff]  ;;  %v5617_v62 = vld [vmem:[#allocation74_spill] sm:$0xff] }
 0x1ee   :  { %v1039_v19 = vadd.f32 %v5614_v9, %v5613_v7  ;;  %2504 = vmatpush1.msra.mxu1 %v2023_v36  ;;  %2592 = vmatprep.subr.mxu0 %v2152_v53  ;;  %v1540_v18 = vpop.f32.mrf.mxu0  ;;  %v2016_v50 = vld [vmem:[#allocation4 + $0x8c8] sm:$0xff]  ;;  %v2147_v13 = vld [vmem:[#allocation4 + $0xce0] sm:$0xff]  ;;  %v1045_v60 = vadd.f32 %v5616_v38, %v5615_v39  ;;  %v5623_v38 = vld [vmem:[#allocation79_spill] sm:$0xff] }
 0x1ef   :  { %v1710_v33 = vmax.f32 %v1653_v5, %v1656_v46  ;;  %2387 = vmatprep.mubr.f32.mxu1 %v5139_v4  ;;  %2505 = vmatprep.subr.mxu1 %v2020_v44  ;;  %v1658_v22 = vmax.f32 %v4984_v42, %v1613_v26  ;;  %v1712_v16 = vadd.f32 %v1709_v35, %v5039_v14  ;;  %v2015_v24 = vld [vmem:[#allocation4 + $0x8c0] sm:$0xff]  ;;  %v2144_v43 = vld [vmem:[#allocation4 + $0xcc8] sm:$0xff] }
 0x1f0   :  { %2593 = vmatpush1.msra.mxu0 %v2151_v41  ;;  %2388 = vmatmul.mubr.f32.gmra.mxu1 %v5085_v56  ;;  %v1614_v20 = vadd.f32 %v1540_v18, %v1039_v19  ;;  %v1544_v1 = vpop.f32.mrf.mxu0  ;;  %v2012_v21 = vld [vmem:[#allocation4 + $0x8a8] sm:$0xff]  ;;  %v2143_v58 = vld [vmem:[#allocation4 + $0xcc0] sm:$0xff] }
 0x1f1   :  { %2506 = vmatpush1.msra.mxu1 %v2019_v47  ;;  %2594 = vmatprep.subr.mxu0 %v2148_v34  ;;  %v1619_v42 = vadd.f32 %v1544_v1, %v5617_v62  ;;  %v2011_v37 = vld [vmem:[#allocation4 + $0x8a0] sm:$0xff]  ;;  %v2140_v6 = vld [vmem:[#allocation4 + $0xca8] sm:$0xff]  ;;  %v1713_v32 = vadd.f32 %v1710_v33, %v5046_v55  ;;  %v5162_v27 = vmax.f32 %v1712_v16, 0.0 }
 0x1f2   :  { %2477 = vmatmul.mubr.f32.gmra.mxu0 %v5146_v57  ;;  %2507 = vmatprep.subr.mxu1 %v2016_v50  ;;  %v1659_v0 = vmax.f32 %v4977_v23, %v1614_v20  ;;  %v1546_v5 = vpop.f32.mrf.mxu0  ;;  %v2008_v61 = vld [vmem:[#allocation4 + $0x888] sm:$0xff]  ;;  %v2139_v36 = vld [vmem:[#allocation4 + $0xca0] sm:$0xff] }
 0x1f3   :  { %2595 = vmatpush1.msra.mxu0 %v2147_v13  ;;  %2482 = vmatprep.mubr.f32.mxu0 %v5153_v25  ;;  %v1661_v59 = vmax.f32 %v4993_v40, %v1619_v42  ;;  %v1620_v15 = vadd.f32 %v1546_v5, %v1045_v60  ;;  %v2007_v45 = vld [vmem:[#allocation4 + $0x880] sm:$0xff]  ;;  %v2136_v35 = vld [vmem:[#allocation4 + $0xc88] sm:$0xff]  ;;  %v5173_v33 = vmax.f32 %v1713_v32, 0.0  ;;  %v5621_v13 = vld [vmem:[#allocation78_spill] sm:$0xff] }
 0x1f4   :  { %2508 = vmatpush1.msra.mxu1 %v2015_v24  ;;  %2596 = vmatprep.subr.mxu0 %v2144_v43  ;;  %v1550_v53 = vpop.f32.mrf.mxu0  ;;  %v5618_v40 = vld [vmem:[#allocation77_spill] sm:$0xff]  ;;  %v5619_v41 = vld [vmem:[#allocation28_spill] sm:$0xff] }
 0x1f5   :  { %2509 = vmatprep.subr.mxu1 %v2012_v21  ;;  %2597 = vmatpush1.msra.mxu0 %v2143_v58  ;;  %v1718_v23 = vmax.f32 %v1658_v22, %v1661_v59  ;;  %v1662_v44 = vmax.f32 %v4990_v48, %v1620_v15  ;;  %v1625_v46 = vadd.f32 %v1550_v53, %v5618_v40  ;;  %v5620_v28 = vld [vmem:[#allocation76_spill] sm:$0xff]  ;;  %v2004_v7 = vld [vmem:[#allocation4 + $0x868] sm:$0xff] }
 0x1f6   :  { %v912_v26 = vadd.f32 %v5620_v28, %v5619_v41  ;;  %2510 = vmatpush1.msra.mxu1 %v2011_v37  ;;  %2598 = vmatprep.subr.mxu0 %v2140_v6  ;;  %v1552_v9 = vpop.f32.mrf.mxu0  ;;  %v2135_v34 = vld [vmem:[#allocation4 + $0xc80] sm:$0xff]  ;;  %v2132_v50 = vld [vmem:[#allocation4 + $0xc68] sm:$0xff] }
 0x1f7   :  { %v5169_v19 = vadd.f32 %v1718_v23, %v5039_v14  ;;  %2511 = vmatprep.subr.mxu1 %v2008_v61  ;;  %2599 = vmatpush1.msra.mxu0 %v2139_v36  ;;  %v1719_v47 = vmax.f32 %v1659_v0, %v1662_v44  ;;  %v1664_v48 = vmax.f32 %v5004_v49, %v1625_v46  ;;  %v2003_v22 = vld [vmem:[#allocation4 + $0x860] sm:$0xff]  ;;  %v5622_v39 = vld [vmem:[#allocation29_spill] sm:$0xff] }
 0x1f8   :  { %v1623_v18 = vadd.f32 %v4995_v30, %v912_v26  ;;  %2512 = vmatpush1.msra.mxu1 %v2007_v45  ;;  %2600 = vmatprep.subr.mxu0 %v2136_v35  ;;  %v1626_v20 = vadd.f32 %v1552_v9, %v5621_v13  ;;  %v1556_v1 = vpop.f32.mrf.mxu0  ;;  %v918_v60 = vadd.f32 %v5623_v38, %v5622_v39  ;;  %v2000_v49 = vld [vmem:[#allocation4 + $0x848] sm:$0xff]  ;;  %v5624_v30 = vld [vmem:[#allocation80_spill] sm:$0xff] }
 0x1f9   :  { %v5179_v16 = vadd.f32 %v1719_v47, %v5046_v55  ;;  %2393 = vmatprep.mubr.f32.mxu1 %v5162_v27  ;;  %2513 = vmatprep.subr.mxu1 %v2004_v7  ;;  %v1631_v24 = vadd.f32 %v1556_v1, %v5624_v30  ;;  %v2131_v43 = vld [vmem:[#allocation4 + $0xc60] sm:$0xff]  ;;  %v2128_v58 = vld [vmem:[#allocation4 + $0xc48] sm:$0xff] }
 0x1fa   :  { %2601 = vmatpush1.msra.mxu0 %v2135_v34  ;;  %2394 = vmatmul.mubr.f32.gmra.mxu1 %v5125_v8  ;;  %v1665_v62 = vmax.f32 %v1623_v18, %v1626_v20  ;;  %v1558_v42 = vpop.f32.mrf.mxu0  ;;  %v1629_v0 = vadd.f32 %v5006_v52, %v918_v60  ;;  %v1999_v21 = vld [vmem:[#allocation4 + $0x840] sm:$0xff]  ;;  %v5625_v59 = vld [vmem:[#allocation81_spill] sm:$0xff] }
 0x1fb   :  { %2514 = vmatpush1.msra.mxu1 %v2003_v22  ;;  %2602 = vmatprep.subr.mxu0 %v2132_v50  ;;  %v1667_v5 = vmax.f32 %v5015_v17, %v1631_v24  ;;  %v1632_v37 = vadd.f32 %v1558_v42, %v5625_v59  ;;  %v1996_v6 = vld [vmem:[#allocation4 + $0x828] sm:$0xff]  ;;  %v2127_v15 = vld [vmem:[#allocation4 + $0xc40] sm:$0xff] }
 0x1fc   :  { %2483 = vmatmul.mubr.f32.gmra.mxu0 %v5173_v33  ;;  %2515 = vmatprep.subr.mxu1 %v2000_v49  ;;  %v1995_v61 = vld [vmem:[#allocation4 + $0x820] sm:$0xff]  ;;  %v2124_v52 = vld [vmem:[#allocation4 + $0xc28] sm:$0xff] }
 0x1fd   :  { %2553 = vmatprep.mubr.f32.mxu1 %v5113_v2  ;;  %2603 = vmatpush1.msra.mxu0 %v2131_v43  ;;  %v1727_v32 = vmax.f32 %v1664_v48, %v1667_v5  ;;  %v1668_v36 = vmax.f32 %v1629_v0, %v1632_v37  ;;  %v1992_v53 = vld [vmem:[#allocation4 + $0x808] sm:$0xff]  ;;  %v2123_v17 = vld [vmem:[#allocation4 + $0xc20] sm:$0xff] }
 0x1fe   :  { %2516 = vmatpush1.msra.mxu1 %v1999_v21  ;;  %2604 = vmatprep.subr.mxu0 %v2128_v58  ;;  %v1991_v44 = vld [vmem:[#allocation4 + $0x800] sm:$0xff]  ;;  %v2120_v35 = vld [vmem:[#allocation4 + $0xc08] sm:$0xff] }
 0x1ff   :  { %2642 = vmatprep.mubr.f32.mxu0 %v5139_v4  ;;  %2517 = vmatprep.subr.mxu1 %v1996_v6  ;;  %v1728_v23 = vmax.f32 %v1665_v62, %v1668_v36  ;;  %v5191_v45 = vadd.f32 %v1727_v32, %v5039_v14  ;;  %v2116_v40 = vld [vmem:[#allocation4 + $0xbe8] sm:$0xff]  ;;  %v2119_v41 = vld [vmem:[#allocation4 + $0xc00] sm:$0xff] }
 0x200   :  { %2605 = vmatpush1.msra.mxu0 %v2127_v15  ;;  %2518 = vmatpush1.msra.mxu1 %v1995_v61  ;;  %v2115_v28 = vld [vmem:[#allocation4 + $0xbe0] sm:$0xff]  ;;  %v2244_v26 = vld [vmem:[#allocation4 + $0xfe8] sm:$0xff] }
 0x201   :  { %2606 = vmatprep.subr.mxu0 %v2124_v52  ;;  %2519 = vmatprep.subr.mxu1 %v1992_v53  ;;  %v5194_v46 = vadd.f32 %v1728_v23, %v5046_v55  ;;  %v2112_v7 = vld [vmem:[#allocation4 + $0xbc8] sm:$0xff]  ;;  %v2243_v9 = vld [vmem:[#allocation4 + $0xfe0] sm:$0xff] }
 0x202   :  { %2607 = vmatpush1.msra.mxu0 %v2123_v17  ;;  %2520 = vmatpush1.msra.mxu1 %v1991_v44  ;;  %v2111_v14 = vld [vmem:[#allocation4 + $0xbc0] sm:$0xff]  ;;  %v2240_v47 = vld [vmem:[#allocation4 + $0xfc8] sm:$0xff] }
 0x203   :  { %2608 = vmatprep.subr.mxu0 %v2120_v35  ;;  %2521 = vmatprep.subr.mxu1 %v2116_v40  ;;  %v2108_v34 = vld [vmem:[#allocation4 + $0xba8] sm:$0xff]  ;;  %v2239_v48 = vld [vmem:[#allocation4 + $0xfc0] sm:$0xff] }
 0x204   :  { %2609 = vmatpush1.msra.mxu0 %v2119_v41  ;;  %2522 = vmatpush2.msra.mxu1 %v2115_v28  ;;  %v2107_v18 = vld [vmem:[#allocation4 + $0xba0] sm:$0xff]  ;;  %v2236_v55 = vld [vmem:[#allocation4 + $0xfa8] sm:$0xff] }
 0x205   :  { %2610 = vmatprep.subr.mxu0 %v2244_v26  ;;  %2523 = vmatprep.subr.mxu1 %v2112_v7  ;;  %v2104_v22 = vld [vmem:[#allocation4 + $0xb88] sm:$0xff]  ;;  %v2235_v50 = vld [vmem:[#allocation4 + $0xfa0] sm:$0xff] }
 0x206   :  { %2611 = vmatpush2.msra.mxu0 %v2243_v9  ;;  %2524 = vmatpush2.msra.mxu1 %v2111_v14  ;;  %v2103_v13 = vld [vmem:[#allocation4 + $0xb80] sm:$0xff]  ;;  %v2232_v20 = vld [vmem:[#allocation4 + $0xf88] sm:$0xff] }
 0x207   :  { %2612 = vmatprep.subr.mxu0 %v2240_v47  ;;  %2525 = vmatprep.subr.mxu1 %v2108_v34  ;;  %v2100_v1 = vld [vmem:[#allocation4 + $0xb68] sm:$0xff]  ;;  %v2231_v39 = vld [vmem:[#allocation4 + $0xf80] sm:$0xff] }
 0x208   :  { %2613 = vmatpush2.msra.mxu0 %v2239_v48  ;;  %2526 = vmatpush2.msra.mxu1 %v2107_v18  ;;  %v2099_v38 = vld [vmem:[#allocation4 + $0xb60] sm:$0xff]  ;;  %v2228_v60 = vld [vmem:[#allocation4 + $0xf68] sm:$0xff] }
 0x209   :  { %2614 = vmatprep.subr.mxu0 %v2236_v55  ;;  %2527 = vmatprep.subr.mxu1 %v2104_v22  ;;  %v2096_v49 = vld [vmem:[#allocation4 + $0xb48] sm:$0xff]  ;;  %v2227_v30 = vld [vmem:[#allocation4 + $0xf60] sm:$0xff] }
 0x20a   :  { %2615 = vmatpush2.msra.mxu0 %v2235_v50  ;;  %2528 = vmatpush2.msra.mxu1 %v2103_v13  ;;  %v2095_v24 = vld [vmem:[#allocation4 + $0xb40] sm:$0xff]  ;;  %v2224_v43 = vld [vmem:[#allocation4 + $0xf48] sm:$0xff] }
 0x20b   :  { %2616 = vmatprep.subr.mxu0 %v2232_v20  ;;  %2529 = vmatprep.subr.mxu1 %v2100_v1  ;;  %v2092_v62 = vld [vmem:[#allocation4 + $0xb28] sm:$0xff]  ;;  %v2223_v42 = vld [vmem:[#allocation4 + $0xf40] sm:$0xff] }
 0x20c   :  { %2617 = vmatpush2.msra.mxu0 %v2231_v39  ;;  %2530 = vmatpush2.msra.mxu1 %v2099_v38  ;;  %v2091_v0 = vld [vmem:[#allocation4 + $0xb20] sm:$0xff]  ;;  %v2220_v21 = vld [vmem:[#allocation4 + $0xf28] sm:$0xff] }
 0x20d   :  { %2618 = vmatprep.subr.mxu0 %v2228_v60  ;;  %2531 = vmatprep.subr.mxu1 %v2096_v49  ;;  %v2088_v58 = vld [vmem:[#allocation4 + $0xb08] sm:$0xff]  ;;  %v2219_v5 = vld [vmem:[#allocation4 + $0xf20] sm:$0xff] }
 0x20e   :  { %2619 = vmatpush2.msra.mxu0 %v2227_v30  ;;  %2532 = vmatpush2.msra.mxu1 %v2095_v24  ;;  %v2087_v59 = vld [vmem:[#allocation4 + $0xb00] sm:$0xff]  ;;  %v2216_v37 = vld [vmem:[#allocation4 + $0xf08] sm:$0xff] }
 0x20f   :  { %2620 = vmatprep.subr.mxu0 %v2224_v43  ;;  %2533 = vmatprep.subr.mxu1 %v2092_v62  ;;  %v2084_v6 = vld [vmem:[#allocation4 + $0xae8] sm:$0xff]  ;;  %v2215_v15 = vld [vmem:[#allocation4 + $0xf00] sm:$0xff]  ;;  %v1926_v62 = vld [vmem:[#allocation4 + $0x5f8] sm:$0xff] }
 0x210   :  { %2621 = vmatpush2.msra.mxu0 %v2223_v42  ;;  %2534 = vmatpush2.msra.mxu1 %v2091_v0  ;;  %v2083_v32 = vld [vmem:[#allocation4 + $0xae0] sm:$0xff]  ;;  %v2212_v61 = vld [vmem:[#allocation4 + $0xee8] sm:$0xff]  ;;  %v1925_v0 = vld [vmem:[#allocation4 + $0x5f0] sm:$0xff] }
 0x211   :  { %2622 = vmatprep.subr.mxu0 %v2220_v21  ;;  %2535 = vmatprep.subr.mxu1 %v2088_v58  ;;  %v2080_v36 = vld [vmem:[#allocation4 + $0xac8] sm:$0xff]  ;;  %v2211_v52 = vld [vmem:[#allocation4 + $0xee0] sm:$0xff]  ;;  %v1922_v58 = vld [vmem:[#allocation4 + $0x5d8] sm:$0xff] }
 0x212   :  { %2623 = vmatpush2.msra.mxu0 %v2219_v5  ;;  %2536 = vmatpush2.msra.mxu1 %v2087_v59  ;;  %v2079_v53 = vld [vmem:[#allocation4 + $0xac0] sm:$0xff]  ;;  %v2208_v17 = vld [vmem:[#allocation4 + $0xec8] sm:$0xff]  ;;  %v1921_v59 = vld [vmem:[#allocation4 + $0x5d0] sm:$0xff] }
 0x213   :  { %2624 = vmatprep.subr.mxu0 %v2216_v37  ;;  %2537 = vmatprep.subr.mxu1 %v2084_v6  ;;  %v2076_v23 = vld [vmem:[#allocation4 + $0xaa8] sm:$0xff]  ;;  %v2207_v44 = vld [vmem:[#allocation4 + $0xec0] sm:$0xff]  ;;  %v1918_v6 = vld [vmem:[#allocation4 + $0x5b8] sm:$0xff] }
 0x214   :  { %2625 = vmatpush2.msra.mxu0 %v2215_v15  ;;  %2538 = vmatpush2.msra.mxu1 %v2083_v32  ;;  %v2075_v35 = vld [vmem:[#allocation4 + $0xaa0] sm:$0xff]  ;;  %v2204_v40 = vld [vmem:[#allocation4 + $0xea8] sm:$0xff]  ;;  %v5202_v32 = vmax.f32 %v5169_v19, 0.0 }
 0x215   :  { %2626 = vmatprep.subr.mxu0 %v2212_v61  ;;  %2539 = vmatprep.subr.mxu1 %v2080_v36  ;;  %v2072_v41 = vld [vmem:[#allocation4 + $0xa88] sm:$0xff]  ;;  %v2203_v28 = vld [vmem:[#allocation4 + $0xea0] sm:$0xff]  ;;  %v1917_v61 = vld [vmem:[#allocation4 + $0x5b0] sm:$0xff] }
 0x216   :  { %2627 = vmatpush2.msra.mxu0 %v2211_v52  ;;  %2540 = vmatpush2.msra.mxu1 %v2079_v53  ;;  %v2071_v26 = vld [vmem:[#allocation4 + $0xa80] sm:$0xff]  ;;  %v2200_v7 = vld [vmem:[#allocation4 + $0xe88] sm:$0xff]  ;;  %v1914_v52 = vld [vmem:[#allocation4 + $0x598] sm:$0xff] }
 0x217   :  { %2628 = vmatprep.subr.mxu0 %v2208_v17  ;;  %2541 = vmatprep.subr.mxu1 %v2076_v23  ;;  %v2068_v9 = vld [vmem:[#allocation4 + $0xa68] sm:$0xff]  ;;  %v2199_v14 = vld [vmem:[#allocation4 + $0xe80] sm:$0xff]  ;;  %v1913_v17 = vld [vmem:[#allocation4 + $0x590] sm:$0xff]  ;;  %v5208_v23 = vmax.f32 %v5179_v16, 0.0 }
 0x218   :  { %2629 = vmatpush2.msra.mxu0 %v2207_v44  ;;  %2542 = vmatpush2.msra.mxu1 %v2075_v35  ;;  %v2067_v47 = vld [vmem:[#allocation4 + $0xa60] sm:$0xff]  ;;  %v2196_v34 = vld [vmem:[#allocation4 + $0xe68] sm:$0xff]  ;;  %v1910_v44 = vld [vmem:[#allocation4 + $0x578] sm:$0xff] }
 0x219   :  { %2630 = vmatprep.subr.mxu0 %v2204_v40  ;;  %2543 = vmatprep.subr.mxu1 %v2072_v41  ;;  %v2064_v48 = vld [vmem:[#allocation4 + $0xa48] sm:$0xff]  ;;  %v2195_v18 = vld [vmem:[#allocation4 + $0xe60] sm:$0xff]  ;;  %v1733_v40 = vmax.f32 %v5191_v45, 0.0  ;;  %v1909_v41 = vld [vmem:[#allocation4 + $0x570] sm:$0xff] }
 0x21a   :  { %2631 = vmatpush2.msra.mxu0 %v2203_v28  ;;  %2544 = vmatpush2.msra.mxu1 %v2071_v26  ;;  %v2063_v55 = vld [vmem:[#allocation4 + $0xa40] sm:$0xff]  ;;  %v2192_v22 = vld [vmem:[#allocation4 + $0xe48] sm:$0xff]  ;;  %v1906_v16 = vld [vmem:[#allocation4 + $0x558] sm:$0xff] }
 0x21b   :  { %2632 = vmatprep.subr.mxu0 %v2200_v7  ;;  %2545 = vmatprep.subr.mxu1 %v2068_v9  ;;  %v2060_v50 = vld [vmem:[#allocation4 + $0xa28] sm:$0xff]  ;;  %v2191_v13 = vld [vmem:[#allocation4 + $0xe40] sm:$0xff]  ;;  %v1905_v7 = vld [vmem:[#allocation4 + $0x550] sm:$0xff] }
 0x21c   :  { %2633 = vmatpush2.msra.mxu0 %v2199_v14  ;;  %2546 = vmatpush2.msra.mxu1 %v2067_v47  ;;  %v2059_v20 = vld [vmem:[#allocation4 + $0xa20] sm:$0xff]  ;;  %v2188_v1 = vld [vmem:[#allocation4 + $0xe28] sm:$0xff]  ;;  %v1732_v14 = vmax.f32 %v5032_v63, 0.0  ;;  %v1902_v47 = vld [vmem:[#allocation4 + $0x538] sm:$0xff] }
 0x21d   :  { %2634 = vmatprep.subr.mxu0 %v2196_v34  ;;  %2547 = vmatprep.subr.mxu1 %v2064_v48  ;;  %v2056_v39 = vld [vmem:[#allocation4 + $0xa08] sm:$0xff]  ;;  %v2187_v38 = vld [vmem:[#allocation4 + $0xe20] sm:$0xff]  ;;  %v1901_v48 = vld [vmem:[#allocation4 + $0x530] sm:$0xff] }
 0x21e   :  { %2635 = vmatpush2.msra.mxu0 %v2195_v18  ;;  %2548 = vmatpush2.msra.mxu1 %v2063_v55  ;;  %v2055_v60 = vld [vmem:[#allocation4 + $0xa00] sm:$0xff]  ;;  %v2184_v49 = vld [vmem:[#allocation4 + $0xe08] sm:$0xff]  ;;  %v1898_v55 = vld [vmem:[#allocation4 + $0x518] sm:$0xff] }
 0x21f   :  { %2636 = vmatprep.subr.mxu0 %v2192_v22  ;;  %2549 = vmatprep.subr.mxu1 %v2060_v50  ;;  %v2183_v30 = vld [vmem:[#allocation4 + $0xe00] sm:$0xff]  ;;  %v2308_v24 = vld [vmem:[#allocation4 + $0x11e8] sm:$0xff]  ;;  %v1897_v50 = vld [vmem:[#allocation4 + $0x510] sm:$0xff] }
 0x220   :  { %2637 = vmatpush2.msra.mxu0 %v2191_v13  ;;  %2550 = vmatpush2.msra.mxu1 %v2059_v20  ;;  %v2307_v43 = vld [vmem:[#allocation4 + $0x11e0] sm:$0xff]  ;;  %v2304_v42 = vld [vmem:[#allocation4 + $0x11c8] sm:$0xff]  ;;  %v1894_v20 = vld [vmem:[#allocation4 + $0x4f8] sm:$0xff] }
 0x221   :  { %2638 = vmatprep.subr.mxu0 %v2188_v1  ;;  %2551 = vmatprep.subr.mxu1 %v2056_v39  ;;  %v2303_v21 = vld [vmem:[#allocation4 + $0x11c0] sm:$0xff]  ;;  %v2300_v5 = vld [vmem:[#allocation4 + $0x11a8] sm:$0xff]  ;;  %v1893_v39 = vld [vmem:[#allocation4 + $0x4f0] sm:$0xff] }
 0x222   :  { %2639 = vmatpush2.msra.mxu0 %v2187_v38  ;;  %2552 = vmatpush2.msra.mxu1 %v2055_v60  ;;  %v2299_v37 = vld [vmem:[#allocation4 + $0x11a0] sm:$0xff]  ;;  %v2296_v15 = vld [vmem:[#allocation4 + $0x1188] sm:$0xff]  ;;  %v1890_v60 = vld [vmem:[#allocation4 + $0x4d8] sm:$0xff] }
 0x223   :  { %2640 = vmatprep.subr.mxu0 %v2184_v49  ;;  %2554 = vmatmul.mubr.f32.vlgmr.msra.gmra.mxu1 %v5103_v10  ;;  %v2295_v36 = vld [vmem:[#allocation4 + $0x1180] sm:$0xff]  ;;  %v2292_v53 = vld [vmem:[#allocation4 + $0x1168] sm:$0xff]  ;;  %v2077_v45 = vld [vmem:[#allocation4 + $0xab0] sm:$0xff] }
 0x224   :  { %2641 = vmatpush2.msra.mxu0 %v2183_v30  ;;  %2667 = vmatprep.subr.mxu1 %v2308_v24  ;;  %v2291_v19 = vld [vmem:[#allocation4 + $0x1160] sm:$0xff]  ;;  %v2288_v35 = vld [vmem:[#allocation4 + $0x1148] sm:$0xff]  ;;  %v1889_v30 = vld [vmem:[#allocation4 + $0x4d0] sm:$0xff] }
 0x225   :  { %2559 = vmatprep.mubr.f32.mxu1 %v5146_v57  ;;  %2643 = vmatmul.mubr.f32.vlgmr.msra.gmra.mxu0 %v5085_v56  ;;  %v2287_v28 = vld [vmem:[#allocation4 + $0x1140] sm:$0xff]  ;;  %v2284_v26 = vld [vmem:[#allocation4 + $0x1128] sm:$0xff]  ;;  %v2069_v63 = vld [vmem:[#allocation4 + $0xa70] sm:$0xff] }
 0x226   :  { %2668 = vmatpush1.msra.mxu1 %v2307_v43  ;;  %2845 = vmatprep.subr.mxu0 %v1926_v62  ;;  %v2283_v9 = vld [vmem:[#allocation4 + $0x1120] sm:$0xff]  ;;  %v2280_v34 = vld [vmem:[#allocation4 + $0x1108] sm:$0xff]  ;;  %v1886_v43 = vld [vmem:[#allocation4 + $0x4b8] sm:$0xff] }
 0x227   :  { %2648 = vmatprep.mubr.f32.mxu0 %v5162_v27  ;;  %2669 = vmatprep.subr.mxu1 %v2304_v42  ;;  %v2279_v18 = vld [vmem:[#allocation4 + $0x1100] sm:$0xff]  ;;  %v2276_v22 = vld [vmem:[#allocation4 + $0x10e8] sm:$0xff]  ;;  %v1885_v42 = vld [vmem:[#allocation4 + $0x4b0] sm:$0xff] }
 0x228   :  { %2846 = vmatpush1.msra.mxu0 %v1925_v0  ;;  %2670 = vmatpush1.msra.mxu1 %v2303_v21  ;;  %v2275_v13 = vld [vmem:[#allocation4 + $0x10e0] sm:$0xff]  ;;  %v2272_v1 = vld [vmem:[#allocation4 + $0x10c8] sm:$0xff]  ;;  %v1882_v21 = vld [vmem:[#allocation4 + $0x498] sm:$0xff] }
 0x229   :  { %2847 = vmatprep.subr.mxu0 %v1922_v58  ;;  %2560 = vmatmul.mubr.f32.gmra.mxu1 %v5139_v4  ;;  %v2271_v38 = vld [vmem:[#allocation4 + $0x10c0] sm:$0xff]  ;;  %v2268_v49 = vld [vmem:[#allocation4 + $0x10a8] sm:$0xff] }
 0x22a   :  { %2671 = vmatprep.subr.mxu1 %v2300_v5  ;;  %2848 = vmatpush1.msra.mxu0 %v1921_v59  ;;  %v2267_v24 = vld [vmem:[#allocation4 + $0x10a0] sm:$0xff]  ;;  %v2264_v62 = vld [vmem:[#allocation4 + $0x1088] sm:$0xff]  ;;  %v1881_v5 = vld [vmem:[#allocation4 + $0x490] sm:$0xff] }
 0x22b   :  { %2565 = vmatprep.mubr.f32.mxu1 %v5173_v33  ;;  %2649 = vmatmul.mubr.f32.gmra.mxu0 %v5125_v8  ;;  %v2263_v0 = vld [vmem:[#allocation4 + $0x1080] sm:$0xff]  ;;  %v2260_v58 = vld [vmem:[#allocation4 + $0x1068] sm:$0xff] }
 0x22c   :  { %2672 = vmatpush1.msra.mxu1 %v2299_v37  ;;  %2849 = vmatprep.subr.mxu0 %v1918_v6  ;;  %v2259_v59 = vld [vmem:[#allocation4 + $0x1060] sm:$0xff]  ;;  %v1878_v37 = vld [vmem:[#allocation4 + $0x478] sm:$0xff]  ;;  %v2256_v6 = vld [vmem:[#allocation4 + $0x1048] sm:$0xff] }
 0x22d   :  { %2654 = vmatprep.mubr.f32.mxu0 %v5202_v32  ;;  %2673 = vmatprep.subr.mxu1 %v2296_v15  ;;  %v1877_v15 = vld [vmem:[#allocation4 + $0x470] sm:$0xff] }
 0x22e   :  { %2850 = vmatpush1.msra.mxu0 %v1917_v61  ;;  %2674 = vmatpush1.msra.mxu1 %v2295_v36  ;;  %v2255_v61 = vld [vmem:[#allocation4 + $0x1040] sm:$0xff]  ;;  %v1874_v36 = vld [vmem:[#allocation4 + $0x458] sm:$0xff] }
 0x22f   :  { %2851 = vmatprep.subr.mxu0 %v1914_v52  ;;  %2566 = vmatmul.mubr.f32.gmra.mxu1 %v5162_v27  ;;  %v2252_v52 = vld [vmem:[#allocation4 + $0x1028] sm:$0xff] }
 0x230   :  { %2675 = vmatprep.subr.mxu1 %v2292_v53  ;;  %2852 = vmatpush1.msra.mxu0 %v1913_v17  ;;  %v1873_v53 = vld [vmem:[#allocation4 + $0x450] sm:$0xff]  ;;  %v2251_v17 = vld [vmem:[#allocation4 + $0x1020] sm:$0xff] }
 0x231   :  { %2571 = vmatprep.mubr.f32.mxu1 %v5208_v23  ;;  %2655 = vmatmul.mubr.f32.gmra.mxu0 %v5153_v25 }
 0x232   :  { %2676 = vmatpush1.msra.mxu1 %v2291_v19  ;;  %2853 = vmatprep.subr.mxu0 %v1910_v44  ;;  %v1870_v19 = vld [vmem:[#allocation4 + $0x438] sm:$0xff]  ;;  %v2248_v44 = vld [vmem:[#allocation4 + $0x1008] sm:$0xff] }
 0x233   :  { %2660 = vmatprep.mubr.f32.mxu0 %v1733_v40  ;;  %2677 = vmatprep.subr.mxu1 %v2288_v35  ;;  %v1869_v35 = vld [vmem:[#allocation4 + $0x430] sm:$0xff] }
 0x234   :  { %2854 = vmatpush1.msra.mxu0 %v1909_v41  ;;  %2678 = vmatpush1.msra.mxu1 %v2287_v28  ;;  %v2247_v41 = vld [vmem:[#allocation4 + $0x1000] sm:$0xff]  ;;  %v1866_v28 = vld [vmem:[#allocation4 + $0x418] sm:$0xff] }
 0x235   :  { %2855 = vmatprep.subr.mxu0 %v1906_v16  ;;  %2572 = vmatmul.mubr.f32.gmra.mxu1 %v5202_v32  ;;  %v1798_v16 = vld [vmem:[#allocation4 + $0x1f8] sm:$0xff] }
 0x236   :  { %2679 = vmatprep.subr.mxu1 %v2284_v26  ;;  %2856 = vmatpush1.msra.mxu0 %v1905_v7  ;;  %v1865_v26 = vld [vmem:[#allocation4 + $0x410] sm:$0xff]  ;;  %v5626_v7 = vmov 0.0  }
 0x237   :  { %2661 = vmatmul.mubr.f32.gmra.mxu0 %v1732_v14  ;;  %2680 = vmatpush1.msra.mxu1 %v2283_v9  ;;  %v1797_v9 = vld [vmem:[#allocation4 + $0x1f0] sm:$0xff] }
 0x238   :  { %2857 = vmatprep.subr.mxu0 %v1902_v47  ;;  %2681 = vmatprep.subr.mxu1 %v2280_v34  ;;  %v1990_v47 = vld [vmem:[#allocation4 + $0x7f8] sm:$0xff] }
 0x239   :  { %2858 = vmatpush1.msra.mxu0 %v1901_v48  ;;  %2909 = vmatprep.mubr.f32.mxu0 %v4951_v11  ;;  %v1794_v34 = vld [vmem:[#allocation4 + $0x1d8] sm:$0xff]  ;;  %v1989_v48 = vld [vmem:[#allocation4 + $0x7f0] sm:$0xff] }
 0x23a   :  { %2682 = vmatpush1.msra.mxu1 %v2279_v18  ;;  %2859 = vmatprep.subr.mxu0 %v1898_v55  ;;  %v1793_v18 = vld [vmem:[#allocation4 + $0x1d0] sm:$0xff]  ;;  %v1986_v55 = vld [vmem:[#allocation4 + $0x7d8] sm:$0xff] }
 0x23b   :  { %2683 = vmatprep.subr.mxu1 %v2276_v22  ;;  %2860 = vmatpush1.msra.mxu0 %v1897_v50  ;;  %v1790_v22 = vld [vmem:[#allocation4 + $0x1b8] sm:$0xff]  ;;  %v1985_v50 = vld [vmem:[#allocation4 + $0x7d0] sm:$0xff] }
 0x23c   :  { %2684 = vmatpush1.msra.mxu1 %v2275_v13  ;;  %2861 = vmatprep.subr.mxu0 %v1894_v20  ;;  %v1789_v13 = vld [vmem:[#allocation4 + $0x1b0] sm:$0xff]  ;;  %v1982_v20 = vld [vmem:[#allocation4 + $0x7b8] sm:$0xff] }
 0x23d   :  { %2685 = vmatprep.subr.mxu1 %v2272_v1  ;;  %2862 = vmatpush1.msra.mxu0 %v1893_v39  ;;  %v1786_v1 = vld [vmem:[#allocation4 + $0x198] sm:$0xff]  ;;  %v1981_v39 = vld [vmem:[#allocation4 + $0x7b0] sm:$0xff] }
 0x23e   :  { %2686 = vmatpush1.msra.mxu1 %v2271_v38  ;;  %2863 = vmatprep.subr.mxu0 %v1890_v60  ;;  %v1785_v38 = vld [vmem:[#allocation4 + $0x190] sm:$0xff]  ;;  %v1978_v60 = vld [vmem:[#allocation4 + $0x798] sm:$0xff] }
 0x23f   :  { %2687 = vmatprep.subr.mxu1 %v2268_v49  ;;  %2864 = vmatpush1.msra.mxu0 %v1889_v30  ;;  %v1782_v49 = vld [vmem:[#allocation4 + $0x178] sm:$0xff]  ;;  %v1977_v30 = vld [vmem:[#allocation4 + $0x790] sm:$0xff] }
 0x240   :  { %2688 = vmatpush1.msra.mxu1 %v2267_v24  ;;  %2865 = vmatprep.subr.mxu0 %v1886_v43  ;;  %v1781_v24 = vld [vmem:[#allocation4 + $0x170] sm:$0xff]  ;;  %v1974_v43 = vld [vmem:[#allocation4 + $0x778] sm:$0xff] }
 0x241   :  { %2689 = vmatprep.subr.mxu1 %v2264_v62  ;;  %2866 = vmatpush1.msra.mxu0 %v1885_v42  ;;  %v1778_v62 = vld [vmem:[#allocation4 + $0x158] sm:$0xff]  ;;  %v1973_v42 = vld [vmem:[#allocation4 + $0x770] sm:$0xff] }
 0x242   :  { %2690 = vmatpush1.msra.mxu1 %v2263_v0  ;;  %2867 = vmatprep.subr.mxu0 %v1882_v21  ;;  %v1777_v0 = vld [vmem:[#allocation4 + $0x150] sm:$0xff]  ;;  %v1970_v21 = vld [vmem:[#allocation4 + $0x758] sm:$0xff] }
 0x243   :  { %2691 = vmatprep.subr.mxu1 %v2260_v58  ;;  %2868 = vmatpush1.msra.mxu0 %v1881_v5  ;;  %v1734_v58 = vmax.f32 %v5194_v46, 0.0  ;;  %v1774_v5 = vld [vmem:[#allocation4 + $0x138] sm:$0xff] }
 0x244   :  { %2692 = vmatpush1.msra.mxu1 %v2259_v59  ;;  %2869 = vmatprep.subr.mxu0 %v1878_v37  ;;  %v1969_v59 = vld [vmem:[#allocation4 + $0x750] sm:$0xff] }
 0x245   :  { %2693 = vmatprep.subr.mxu1 %v2256_v6  ;;  %2870 = vmatpush1.msra.mxu0 %v1877_v15  ;;  %v1773_v37 = vld [vmem:[#allocation4 + $0x130] sm:$0xff]  ;;  %v1966_v6 = vld [vmem:[#allocation4 + $0x738] sm:$0xff] }
 0x246   :  { %2694 = vmatpush1.msra.mxu1 %v2255_v61  ;;  %2871 = vmatprep.subr.mxu0 %v1874_v36  ;;  %v1770_v15 = vld [vmem:[#allocation4 + $0x118] sm:$0xff]  ;;  %v1965_v61 = vld [vmem:[#allocation4 + $0x730] sm:$0xff] }
 0x247   :  { %2695 = vmatprep.subr.mxu1 %v2252_v52  ;;  %2872 = vmatpush1.msra.mxu0 %v1873_v53  ;;  %v1769_v36 = vld [vmem:[#allocation4 + $0x110] sm:$0xff]  ;;  %v1962_v52 = vld [vmem:[#allocation4 + $0x718] sm:$0xff] }
 0x248   :  { %2696 = vmatpush1.msra.mxu1 %v2251_v17  ;;  %2873 = vmatprep.subr.mxu0 %v1870_v19  ;;  %v1766_v53 = vld [vmem:[#allocation4 + $0xf8] sm:$0xff]  ;;  %v1961_v17 = vld [vmem:[#allocation4 + $0x710] sm:$0xff] }
 0x249   :  { %2697 = vmatprep.subr.mxu1 %v2248_v44  ;;  %2874 = vmatpush1.msra.mxu0 %v1869_v35  ;;  %v1765_v19 = vld [vmem:[#allocation4 + $0xf0] sm:$0xff]  ;;  %v1958_v44 = vld [vmem:[#allocation4 + $0x6f8] sm:$0xff] }
 0x24a   :  { %2698 = vmatpush1.msra.mxu1 %v2247_v41  ;;  %2731 = vmatprep.mubr.f32.mxu1 %v5626_v7  ;;  %v1762_v35 = vld [vmem:[#allocation4 + $0xd8] sm:$0xff]  ;;  %v1957_v41 = vld [vmem:[#allocation4 + $0x6f0] sm:$0xff] }
 0x24b   :  { %2875 = vmatprep.subr.mxu0 %v1866_v28  ;;  %2732 = vmatmul.mubr.f32.vlgmr.msra.gmra.mxu1 %v5146_v57  ;;  %v1761_v28 = vld [vmem:[#allocation4 + $0xd0] sm:$0xff] }
 0x24c   :  { %2756 = vmatprep.subr.mxu1 %v1798_v16  ;;  %2876 = vmatpush1.msra.mxu0 %v1865_v26  ;;  %v1954_v16 = vld [vmem:[#allocation4 + $0x6d8] sm:$0xff] }
 0x24d   :  { %2757 = vmatpush1.msra.mxu1 %v1797_v9  ;;  %2877 = vmatprep.subr.mxu0 %v1990_v47  ;;  %v1758_v26 = vld [vmem:[#allocation4 + $0xb8] sm:$0xff] }
 0x24e   :  { %2758 = vmatprep.subr.mxu1 %v1794_v34  ;;  %2878 = vmatpush2.msra.mxu0 %v1989_v48  ;;  %v1950_v9 = vld [vmem:[#allocation4 + $0x6b8] sm:$0xff]  ;;  %v1949_v34 = vld [vmem:[#allocation4 + $0x6b0] sm:$0xff] }
 0x24f   :  { %2737 = vmatprep.mubr.f32.mxu1 %v5626_v7  ;;  %2759 = vmatpush1.msra.mxu1 %v1793_v18  ;;  %v1754_v47 = vld [vmem:[#allocation4 + $0x98] sm:$0xff]  ;;  %v1753_v48 = vld [vmem:[#allocation4 + $0x90] sm:$0xff] }
 0x250   :  { %2879 = vmatprep.subr.mxu0 %v1986_v55  ;;  %2738 = vmatmul.mubr.f32.gmra.mxu1 %v5173_v33  ;;  %v1946_v18 = vld [vmem:[#allocation4 + $0x698] sm:$0xff] }
 0x251   :  { %2760 = vmatprep.subr.mxu1 %v1790_v22  ;;  %2880 = vmatpush2.msra.mxu0 %v1985_v50  ;;  %v1750_v55 = vld [vmem:[#allocation4 + $0x78] sm:$0xff]  ;;  %v1945_v22 = vld [vmem:[#allocation4 + $0x690] sm:$0xff] }
 0x252   :  { %2761 = vmatpush1.msra.mxu1 %v1789_v13  ;;  %2881 = vmatprep.subr.mxu0 %v1982_v20  ;;  %v1749_v50 = vld [vmem:[#allocation4 + $0x70] sm:$0xff]  ;;  %v1942_v13 = vld [vmem:[#allocation4 + $0x678] sm:$0xff] }
 0x253   :  { %2762 = vmatprep.subr.mxu1 %v1786_v1  ;;  %2882 = vmatpush2.msra.mxu0 %v1981_v39  ;;  %v1746_v20 = vld [vmem:[#allocation4 + $0x58] sm:$0xff]  ;;  %v1941_v1 = vld [vmem:[#allocation4 + $0x670] sm:$0xff] }
 0x254   :  { %2743 = vmatprep.mubr.f32.mxu1 %v5626_v7  ;;  %2763 = vmatpush1.msra.mxu1 %v1785_v38  ;;  %v1745_v39 = vld [vmem:[#allocation4 + $0x50] sm:$0xff]  ;;  %v1938_v38 = vld [vmem:[#allocation4 + $0x658] sm:$0xff] }
 0x255   :  { %2883 = vmatprep.subr.mxu0 %v1978_v60  ;;  %2744 = vmatmul.mubr.f32.gmra.mxu1 %v5208_v23  ;;  %v1742_v60 = vld [vmem:[#allocation4 + $0x38] sm:$0xff] }
 0x256   :  { %2764 = vmatprep.subr.mxu1 %v1782_v49  ;;  %2884 = vmatpush2.msra.mxu0 %v1977_v30  ;;  %v1937_v49 = vld [vmem:[#allocation4 + $0x650] sm:$0xff] }
 0x257   :  { %2765 = vmatpush1.msra.mxu1 %v1781_v24  ;;  %2885 = vmatprep.subr.mxu0 %v1974_v43  ;;  %v1741_v30 = vld [vmem:[#allocation4 + $0x30] sm:$0xff]  ;;  %v1934_v24 = vld [vmem:[#allocation4 + $0x638] sm:$0xff] }
 0x258   :  { %2766 = vmatprep.subr.mxu1 %v1778_v62  ;;  %2886 = vmatpush2.msra.mxu0 %v1973_v42  ;;  %v1738_v43 = vld [vmem:[#allocation4 + $0x18] sm:$0xff]  ;;  %v1933_v62 = vld [vmem:[#allocation4 + $0x630] sm:$0xff] }
 0x259   :  { %2749 = vmatprep.mubr.f32.mxu1 %v5626_v7  ;;  %2767 = vmatpush1.msra.mxu1 %v1777_v0  ;;  %v1737_v42 = vld [vmem:[#allocation4 + $0x10] sm:$0xff]  ;;  %v1930_v0 = vld [vmem:[#allocation4 + $0x618] sm:$0xff] }
 0x25a   :  { %2887 = vmatprep.subr.mxu0 %v1970_v21  ;;  %2750 = vmatmul.mubr.f32.gmra.mxu1 %v1734_v58  ;;  %v1862_v21 = vld [vmem:[#allocation4 + $0x3f8] sm:$0xff] }
 0x25b   :  { %2768 = vmatprep.subr.mxu1 %v1774_v5  ;;  %2888 = vmatpush2.msra.mxu0 %v1969_v59  ;;  %v1929_v5 = vld [vmem:[#allocation4 + $0x610] sm:$0xff] }
 0x25c   :  { %2769 = vmatpush1.msra.mxu1 %v1773_v37  ;;  %2820 = vmatprep.mubr.f32.mxu1 %v1688_v29  ;;  %v1757_v29 = vld [vmem:[#allocation4 + $0xb0] sm:$0xff]  ;;  %v2182_v37 = vld [vmem:[#allocation4 + $0xdf8] sm:$0xff] }
 0x25d   :  { %2889 = vmatprep.subr.mxu0 %v1966_v6  ;;  %2770 = vmatprep.subr.mxu1 %v1770_v15  ;;  %v1861_v59 = vld [vmem:[#allocation4 + $0x3f0] sm:$0xff]  ;;  %v1858_v6 = vld [vmem:[#allocation4 + $0x3d8] sm:$0xff] }
 0x25e   :  { %2890 = vmatpush2.msra.mxu0 %v1965_v61  ;;  %2771 = vmatpush1.msra.mxu1 %v1769_v36  ;;  %v2181_v15 = vld [vmem:[#allocation4 + $0xdf0] sm:$0xff]  ;;  %v2178_v36 = vld [vmem:[#allocation4 + $0xdd8] sm:$0xff] }
 0x25f   :  { %2891 = vmatprep.subr.mxu0 %v1962_v52  ;;  %2772 = vmatprep.subr.mxu1 %v1766_v53  ;;  %v1857_v61 = vld [vmem:[#allocation4 + $0x3d0] sm:$0xff]  ;;  %v1854_v52 = vld [vmem:[#allocation4 + $0x3b8] sm:$0xff] }
 0x260   :  { %2892 = vmatpush2.msra.mxu0 %v1961_v17  ;;  %2773 = vmatpush1.msra.mxu1 %v1765_v19  ;;  %v2177_v53 = vld [vmem:[#allocation4 + $0xdd0] sm:$0xff]  ;;  %v2174_v19 = vld [vmem:[#allocation4 + $0xdb8] sm:$0xff] }
 0x261   :  { %2893 = vmatprep.subr.mxu0 %v1958_v44  ;;  %2774 = vmatprep.subr.mxu1 %v1762_v35  ;;  %v1853_v17 = vld [vmem:[#allocation4 + $0x3b0] sm:$0xff]  ;;  %v1850_v44 = vld [vmem:[#allocation4 + $0x398] sm:$0xff] }
 0x262   :  { %2894 = vmatpush2.msra.mxu0 %v1957_v41  ;;  %2775 = vmatpush1.msra.mxu1 %v1761_v28  ;;  %v2173_v35 = vld [vmem:[#allocation4 + $0xdb0] sm:$0xff] }
 0x263   :  { %2895 = vmatprep.subr.mxu0 %v1954_v16  ;;  %2776 = vmatprep.subr.mxu1 %v1758_v26  ;;  %v1849_v41 = vld [vmem:[#allocation4 + $0x390] sm:$0xff]  ;;  %v2166_v26 = vld [vmem:[#allocation4 + $0xd78] sm:$0xff] }
 0x264   :  { %2896 = vmatpush2.msra.mxu0 %v1953_v51  ;;  %2777 = vmatpush1.msra.mxu1 %v1757_v29  ;;  %v2169_v28 = vld [vmem:[#allocation4 + $0xd90] sm:$0xff]  ;;  %v1842_v51 = vld [vmem:[#allocation4 + $0x358] sm:$0xff] }
 0x265   :  { %2897 = vmatprep.subr.mxu0 %v1950_v9  ;;  %2778 = vmatprep.subr.mxu1 %v1754_v47  ;;  %v1845_v16 = vld [vmem:[#allocation4 + $0x370] sm:$0xff]  ;;  %v2162_v47 = vld [vmem:[#allocation4 + $0xd58] sm:$0xff] }
 0x266   :  { %2898 = vmatpush2.msra.mxu0 %v1949_v34  ;;  %2779 = vmatpush1.msra.mxu1 %v1753_v48  ;;  %v2165_v29 = vld [vmem:[#allocation4 + $0xd70] sm:$0xff]  ;;  %v1838_v34 = vld [vmem:[#allocation4 + $0x338] sm:$0xff] }
 0x267   :  { %2899 = vmatprep.subr.mxu0 %v1946_v18  ;;  %2780 = vmatprep.subr.mxu1 %v1750_v55  ;;  %v1841_v9 = vld [vmem:[#allocation4 + $0x350] sm:$0xff]  ;;  %v2158_v55 = vld [vmem:[#allocation4 + $0xd38] sm:$0xff] }
 0x268   :  { %2900 = vmatpush2.msra.mxu0 %v1945_v22  ;;  %2781 = vmatpush1.msra.mxu1 %v1749_v50  ;;  %v2161_v48 = vld [vmem:[#allocation4 + $0xd50] sm:$0xff]  ;;  %v1834_v22 = vld [vmem:[#allocation4 + $0x318] sm:$0xff] }
 0x269   :  { %2901 = vmatprep.subr.mxu0 %v1942_v13  ;;  %2782 = vmatprep.subr.mxu1 %v1746_v20  ;;  %v1837_v18 = vld [vmem:[#allocation4 + $0x330] sm:$0xff]  ;;  %v2154_v20 = vld [vmem:[#allocation4 + $0xd18] sm:$0xff] }
 0x26a   :  { %2902 = vmatpush2.msra.mxu0 %v1941_v1  ;;  %2783 = vmatpush1.msra.mxu1 %v1745_v39  ;;  %v2157_v50 = vld [vmem:[#allocation4 + $0xd30] sm:$0xff]  ;;  %v1830_v1 = vld [vmem:[#allocation4 + $0x2f8] sm:$0xff] }
 0x26b   :  { %2903 = vmatprep.subr.mxu0 %v1938_v38  ;;  %2784 = vmatprep.subr.mxu1 %v1742_v60  ;;  %v1833_v13 = vld [vmem:[#allocation4 + $0x310] sm:$0xff]  ;;  %v2150_v60 = vld [vmem:[#allocation4 + $0xcf8] sm:$0xff] }
 0x26c   :  { %2904 = vmatpush2.msra.mxu0 %v1937_v49  ;;  %2785 = vmatpush1.msra.mxu1 %v1741_v30  ;;  %v2153_v39 = vld [vmem:[#allocation4 + $0xd10] sm:$0xff]  ;;  %v1826_v49 = vld [vmem:[#allocation4 + $0x2d8] sm:$0xff] }
 0x26d   :  { %2905 = vmatprep.subr.mxu0 %v1934_v24  ;;  %2786 = vmatprep.subr.mxu1 %v1738_v43  ;;  %v1829_v38 = vld [vmem:[#allocation4 + $0x2f0] sm:$0xff]  ;;  %v2146_v43 = vld [vmem:[#allocation4 + $0xcd8] sm:$0xff] }
 0x26e   :  { %2906 = vmatpush2.msra.mxu0 %v1933_v62  ;;  %2787 = vmatpush1.msra.mxu1 %v1737_v42  ;;  %v2149_v30 = vld [vmem:[#allocation4 + $0xcf0] sm:$0xff]  ;;  %v1822_v62 = vld [vmem:[#allocation4 + $0x2b8] sm:$0xff] }
 0x26f   :  { %2907 = vmatprep.subr.mxu0 %v1930_v0  ;;  %2788 = vmatprep.subr.mxu1 %v1862_v21  ;;  %v1825_v24 = vld [vmem:[#allocation4 + $0x2d0] sm:$0xff]  ;;  %v2142_v21 = vld [vmem:[#allocation4 + $0xcb8] sm:$0xff] }
 0x270   :  { %2908 = vmatpush2.msra.mxu0 %v1929_v5  ;;  %2789 = vmatpush2.msra.mxu1 %v1861_v59  ;;  %v2145_v42 = vld [vmem:[#allocation4 + $0xcd0] sm:$0xff]  ;;  %v1818_v5 = vld [vmem:[#allocation4 + $0x298] sm:$0xff] }
 0x271   :  { %2910 = vmatmul.mubr.f32.vlgmr.msra.gmra.mxu0 %v1689_v12  ;;  %3023 = vmatprep.subr.mxu0 %v2182_v37  ;;  %v1846_v12 = vld [vmem:[#allocation4 + $0x378] sm:$0xff]  ;;  %v1821_v0 = vld [vmem:[#allocation4 + $0x2b0] sm:$0xff] }
 0x272   :  { %2790 = vmatprep.subr.mxu1 %v1858_v6  ;;  %2915 = vmatprep.mubr.f32.mxu0 %v5085_v56  ;;  %v2141_v59 = vld [vmem:[#allocation4 + $0xcb0] sm:$0xff]  ;;  %v2138_v6 = vld [vmem:[#allocation4 + $0xc98] sm:$0xff] }
 0x273   :  { %3024 = vmatpush1.msra.mxu0 %v2181_v15  ;;  %2791 = vmatpush2.msra.mxu1 %v1857_v61  ;;  %v1817_v37 = vld [vmem:[#allocation4 + $0x290] sm:$0xff]  ;;  %v1814_v15 = vld [vmem:[#allocation4 + $0x278] sm:$0xff] }
 0x274   :  { %3025 = vmatprep.subr.mxu0 %v2178_v36  ;;  %2792 = vmatprep.subr.mxu1 %v1854_v52  ;;  %v2137_v61 = vld [vmem:[#allocation4 + $0xc90] sm:$0xff]  ;;  %v2134_v52 = vld [vmem:[#allocation4 + $0xc78] sm:$0xff] }
 0x275   :  { %3026 = vmatpush1.msra.mxu0 %v2177_v53  ;;  %2793 = vmatpush2.msra.mxu1 %v1853_v17  ;;  %v1813_v36 = vld [vmem:[#allocation4 + $0x270] sm:$0xff]  ;;  %v1810_v53 = vld [vmem:[#allocation4 + $0x258] sm:$0xff] }
 0x276   :  { %2916 = vmatmul.mubr.f32.gmra.mxu0 %v5113_v2  ;;  %3027 = vmatprep.subr.mxu0 %v2174_v19  ;;  %v2133_v17 = vld [vmem:[#allocation4 + $0xc70] sm:$0xff] }
 0x277   :  { %2794 = vmatprep.subr.mxu1 %v1850_v44  ;;  %2921 = vmatprep.mubr.f32.mxu0 %v5125_v8  ;;  %v1809_v19 = vld [vmem:[#allocation4 + $0x250] sm:$0xff]  ;;  %v2130_v44 = vld [vmem:[#allocation4 + $0xc58] sm:$0xff] }
 0x278   :  { %3028 = vmatpush1.msra.mxu0 %v2173_v35  ;;  %2795 = vmatpush2.msra.mxu1 %v1849_v41  ;;  %v1806_v35 = vld [vmem:[#allocation4 + $0x238] sm:$0xff]  ;;  %v2129_v41 = vld [vmem:[#allocation4 + $0xc50] sm:$0xff] }
 0x279   :  { %3029 = vmatprep.subr.mxu0 %v2170_v31  ;;  %2796 = vmatprep.subr.mxu1 %v1846_v12  ;;  %v1805_v31 = vld [vmem:[#allocation4 + $0x230] sm:$0xff]  ;;  %v2126_v12 = vld [vmem:[#allocation4 + $0xc38] sm:$0xff] }
 0x27a   :  { %3030 = vmatpush1.msra.mxu0 %v2169_v28  ;;  %2797 = vmatpush2.msra.mxu1 %v1845_v16  ;;  %v1802_v28 = vld [vmem:[#allocation4 + $0x218] sm:$0xff]  ;;  %v2125_v16 = vld [vmem:[#allocation4 + $0xc30] sm:$0xff] }
 0x27b   :  { %2922 = vmatmul.mubr.f32.gmra.mxu0 %v5146_v57  ;;  %3031 = vmatprep.subr.mxu0 %v2166_v26  ;;  %v1801_v26 = vld [vmem:[#allocation4 + $0x210] sm:$0xff] }
 0x27c   :  { %2798 = vmatprep.subr.mxu1 %v1842_v51  ;;  %2927 = vmatprep.mubr.f32.mxu0 %v5153_v25  ;;  %v2122_v51 = vld [vmem:[#allocation4 + $0xc18] sm:$0xff] }
 0x27d   :  { %3032 = vmatpush1.msra.mxu0 %v2165_v29  ;;  %2799 = vmatpush2.msra.mxu1 %v1841_v9  ;;  %v2054_v29 = vld [vmem:[#allocation4 + $0x9f8] sm:$0xff]  ;;  %v2121_v9 = vld [vmem:[#allocation4 + $0xc10] sm:$0xff] }
 0x27e   :  { %3033 = vmatprep.subr.mxu0 %v2162_v47  ;;  %2800 = vmatprep.subr.mxu1 %v1838_v34  ;;  %v2053_v47 = vld [vmem:[#allocation4 + $0x9f0] sm:$0xff]  ;;  %v2246_v34 = vld [vmem:[#allocation4 + $0xff8] sm:$0xff] }
 0x27f   :  { %3034 = vmatpush1.msra.mxu0 %v2161_v48  ;;  %2801 = vmatpush2.msra.mxu1 %v1837_v18  ;;  %v2050_v48 = vld [vmem:[#allocation4 + $0x9d8] sm:$0xff]  ;;  %v2245_v18 = vld [vmem:[#allocation4 + $0xff0] sm:$0xff] }
 0x280   :  { %2928 = vmatmul.mubr.f32.gmra.mxu0 %v5173_v33  ;;  %3035 = vmatprep.subr.mxu0 %v2158_v55  ;;  %v2049_v55 = vld [vmem:[#allocation4 + $0x9d0] sm:$0xff] }
 0x281   :  { %2802 = vmatprep.subr.mxu1 %v1834_v22  ;;  %3036 = vmatpush1.msra.mxu0 %v2157_v50  ;;  %v2242_v22 = vld [vmem:[#allocation4 + $0xfd8] sm:$0xff] }
 0x282   :  { %3087 = vmatprep.mubr.f32.mxu0 %v5139_v4  ;;  %2803 = vmatpush2.msra.mxu1 %v1833_v13  ;;  %v2046_v50 = vld [vmem:[#allocation4 + $0x9b8] sm:$0xff]  ;;  %v2241_v13 = vld [vmem:[#allocation4 + $0xfd0] sm:$0xff] }
 0x283   :  { %3037 = vmatprep.subr.mxu0 %v2154_v20  ;;  %2804 = vmatprep.subr.mxu1 %v1830_v1  ;;  %v2045_v20 = vld [vmem:[#allocation4 + $0x9b0] sm:$0xff] }
 0x284   :  { %3038 = vmatpush1.msra.mxu0 %v2153_v39  ;;  %2805 = vmatpush2.msra.mxu1 %v1829_v38  ;;  %v2237_v1 = vld [vmem:[#allocation4 + $0xfb0] sm:$0xff]  ;;  %v2234_v38 = vld [vmem:[#allocation4 + $0xf98] sm:$0xff] }
 0x285   :  { %3039 = vmatprep.subr.mxu0 %v2150_v60  ;;  %2806 = vmatprep.subr.mxu1 %v1826_v49  ;;  %v2041_v39 = vld [vmem:[#allocation4 + $0x990] sm:$0xff]  ;;  %v2038_v60 = vld [vmem:[#allocation4 + $0x978] sm:$0xff] }
 0x286   :  { %3040 = vmatpush1.msra.mxu0 %v2149_v30  ;;  %2807 = vmatpush2.msra.mxu1 %v1825_v24  ;;  %v2233_v49 = vld [vmem:[#allocation4 + $0xf90] sm:$0xff]  ;;  %v2034_v24 = vld [vmem:[#allocation4 + $0x958] sm:$0xff] }
 0x287   :  { %3041 = vmatprep.subr.mxu0 %v2146_v43  ;;  %2808 = vmatprep.subr.mxu1 %v1822_v62  ;;  %v2037_v30 = vld [vmem:[#allocation4 + $0x970] sm:$0xff] }
 0x288   :  { %3042 = vmatpush1.msra.mxu0 %v2145_v42  ;;  %2809 = vmatpush2.msra.mxu1 %v1821_v0  ;;  %v2229_v43 = vld [vmem:[#allocation4 + $0xf70] sm:$0xff]  ;;  %v2226_v42 = vld [vmem:[#allocation4 + $0xf58] sm:$0xff] }
 0x289   :  { %3043 = vmatprep.subr.mxu0 %v2142_v21  ;;  %2810 = vmatprep.subr.mxu1 %v1818_v5  ;;  %v2033_v62 = vld [vmem:[#allocation4 + $0x950] sm:$0xff]  ;;  %v2030_v0 = vld [vmem:[#allocation4 + $0x938] sm:$0xff] }
 0x28a   :  { %3044 = vmatpush1.msra.mxu0 %v2141_v59  ;;  %2811 = vmatpush2.msra.mxu1 %v1817_v37  ;;  %v2225_v21 = vld [vmem:[#allocation4 + $0xf50] sm:$0xff]  ;;  %v2222_v59 = vld [vmem:[#allocation4 + $0xf38] sm:$0xff] }
 0x28b   :  { %3045 = vmatprep.subr.mxu0 %v2138_v6  ;;  %2812 = vmatprep.subr.mxu1 %v1814_v15  ;;  %v2029_v5 = vld [vmem:[#allocation4 + $0x930] sm:$0xff]  ;;  %v2026_v37 = vld [vmem:[#allocation4 + $0x918] sm:$0xff] }
 0x28c   :  { %3046 = vmatpush1.msra.mxu0 %v2137_v61  ;;  %2813 = vmatpush2.msra.mxu1 %v1813_v36  ;;  %v2221_v6 = vld [vmem:[#allocation4 + $0xf30] sm:$0xff]  ;;  %v2218_v61 = vld [vmem:[#allocation4 + $0xf18] sm:$0xff] }
 0x28d   :  { %3047 = vmatprep.subr.mxu0 %v2134_v52  ;;  %2814 = vmatprep.subr.mxu1 %v1810_v53  ;;  %v2025_v15 = vld [vmem:[#allocation4 + $0x910] sm:$0xff]  ;;  %v2022_v36 = vld [vmem:[#allocation4 + $0x8f8] sm:$0xff] }
 0x28e   :  { %3048 = vmatpush1.msra.mxu0 %v2133_v17  ;;  %2815 = vmatpush2.msra.mxu1 %v1809_v19  ;;  %v2217_v52 = vld [vmem:[#allocation4 + $0xf10] sm:$0xff]  ;;  %v2214_v17 = vld [vmem:[#allocation4 + $0xef8] sm:$0xff] }
 0x28f   :  { %3049 = vmatprep.subr.mxu0 %v2130_v44  ;;  %2816 = vmatprep.subr.mxu1 %v1806_v35  ;;  %v2021_v53 = vld [vmem:[#allocation4 + $0x8f0] sm:$0xff]  ;;  %v2018_v19 = vld [vmem:[#allocation4 + $0x8d8] sm:$0xff] }
 0x290   :  { %3050 = vmatpush1.msra.mxu0 %v2129_v41  ;;  %2817 = vmatpush2.msra.mxu1 %v1805_v31  ;;  %v2213_v44 = vld [vmem:[#allocation4 + $0xef0] sm:$0xff]  ;;  %v2210_v41 = vld [vmem:[#allocation4 + $0xed8] sm:$0xff] }
 0x291   :  { %3051 = vmatprep.subr.mxu0 %v2126_v12  ;;  %2818 = vmatprep.subr.mxu1 %v1802_v28  ;;  %v2017_v35 = vld [vmem:[#allocation4 + $0x8d0] sm:$0xff]  ;;  %v2014_v31 = vld [vmem:[#allocation4 + $0x8b8] sm:$0xff] }
 0x292   :  { %3052 = vmatpush1.msra.mxu0 %v2125_v16  ;;  %2819 = vmatpush2.msra.mxu1 %v1801_v26  ;;  %v2013_v12 = vld [vmem:[#allocation4 + $0x8b0] sm:$0xff]  ;;  %v2206_v28 = vld [vmem:[#allocation4 + $0xeb8] sm:$0xff] }
 0x293   :  { %3053 = vmatprep.subr.mxu0 %v2122_v51  ;;  %2821 = vmatmul.mubr.f32.vlgmr.msra.gmra.mxu1 %v1687_v3  ;;  %v2042_v3 = vld [vmem:[#allocation4 + $0x998] sm:$0xff]  ;;  %v2205_v26 = vld [vmem:[#allocation4 + $0xeb0] sm:$0xff] }
 0x294   :  { %2934 = vmatprep.subr.mxu1 %v2054_v29  ;;  %3054 = vmatpush1.msra.mxu0 %v2121_v9  ;;  %v2010_v16 = vld [vmem:[#allocation4 + $0x898] sm:$0xff]  ;;  %v2009_v51 = vld [vmem:[#allocation4 + $0x890] sm:$0xff] }
 0x295   :  { %2826 = vmatprep.mubr.f32.mxu1 %v5103_v10  ;;  %2935 = vmatpush1.msra.mxu1 %v2053_v47  ;;  %v2202_v29 = vld [vmem:[#allocation4 + $0xe98] sm:$0xff]  ;;  %v2201_v47 = vld [vmem:[#allocation4 + $0xe90] sm:$0xff] }
 0x296   :  { %3055 = vmatprep.subr.mxu0 %v2246_v34  ;;  %2936 = vmatprep.subr.mxu1 %v2050_v48  ;;  %v2006_v9 = vld [vmem:[#allocation4 + $0x878] sm:$0xff]  ;;  %v2005_v34 = vld [vmem:[#allocation4 + $0x870] sm:$0xff] }
 0x297   :  { %3056 = vmatpush2.msra.mxu0 %v2245_v18  ;;  %2937 = vmatpush1.msra.mxu1 %v2049_v55  ;;  %v2198_v48 = vld [vmem:[#allocation4 + $0xe78] sm:$0xff]  ;;  %v2197_v55 = vld [vmem:[#allocation4 + $0xe70] sm:$0xff] }
 0x298   :  { %3057 = vmatprep.subr.mxu0 %v2242_v22  ;;  %2827 = vmatmul.mubr.f32.gmra.mxu1 %v4951_v11  ;;  %v2230_v11 = vld [vmem:[#allocation4 + $0xf78] sm:$0xff]  ;;  %v2001_v22 = vld [vmem:[#allocation4 + $0x850] sm:$0xff] }
 0x299   :  { %2938 = vmatprep.subr.mxu1 %v2046_v50  ;;  %3058 = vmatpush2.msra.mxu0 %v2241_v13  ;;  %v2002_v18 = vld [vmem:[#allocation4 + $0x858] sm:$0xff] }
 0x29a   :  { %2832 = vmatprep.mubr.f32.mxu1 %v5139_v4  ;;  %2939 = vmatpush1.msra.mxu1 %v2045_v20  ;;  %v2194_v50 = vld [vmem:[#allocation4 + $0xe58] sm:$0xff]  ;;  %v2193_v20 = vld [vmem:[#allocation4 + $0xe50] sm:$0xff] }
 0x29b   :  { %3059 = vmatprep.subr.mxu0 %v2238_v54  ;;  %2940 = vmatprep.subr.mxu1 %v2042_v3  ;;  %v1998_v13 = vld [vmem:[#allocation4 + $0x838] sm:$0xff]  ;;  %v1997_v54 = vld [vmem:[#allocation4 + $0x830] sm:$0xff] }
 0x29c   :  { %3060 = vmatpush2.msra.mxu0 %v2237_v1  ;;  %2941 = vmatpush1.msra.mxu1 %v2041_v39  ;;  %v2190_v3 = vld [vmem:[#allocation4 + $0xe38] sm:$0xff]  ;;  %v2189_v39 = vld [vmem:[#allocation4 + $0xe30] sm:$0xff] }
 0x29d   :  { %3061 = vmatprep.subr.mxu0 %v2234_v38  ;;  %2833 = vmatmul.mubr.f32.gmra.mxu1 %v5085_v56  ;;  %v1994_v1 = vld [vmem:[#allocation4 + $0x818] sm:$0xff]  ;;  %v1993_v38 = vld [vmem:[#allocation4 + $0x810] sm:$0xff] }
 0x29e   :  { %2942 = vmatprep.subr.mxu1 %v2038_v60  ;;  %3062 = vmatpush2.msra.mxu0 %v2233_v49  ;;  %v2186_v60 = vld [vmem:[#allocation4 + $0xe18] sm:$0xff] }
 0x29f   :  { %2838 = vmatprep.mubr.f32.mxu1 %v5162_v27  ;;  %2943 = vmatpush1.msra.mxu1 %v2037_v30  ;;  %v2118_v49 = vld [vmem:[#allocation4 + $0xbf8] sm:$0xff]  ;;  %v2185_v30 = vld [vmem:[#allocation4 + $0xe10] sm:$0xff] }
 0x2a0   :  { %3063 = vmatprep.subr.mxu0 %v2230_v11  ;;  %2944 = vmatprep.subr.mxu1 %v2034_v24  ;;  %v2117_v11 = vld [vmem:[#allocation4 + $0xbf0] sm:$0xff]  ;;  %v2114_v24 = vld [vmem:[#allocation4 + $0xbd8] sm:$0xff] }
 0x2a1   :  { %3064 = vmatpush2.msra.mxu0 %v2229_v43  ;;  %2945 = vmatpush1.msra.mxu1 %v2033_v62  ;;  %v2113_v43 = vld [vmem:[#allocation4 + $0xbd0] sm:$0xff]  ;;  %v2110_v62 = vld [vmem:[#allocation4 + $0xbb8] sm:$0xff] }
 0x2a2   :  { %3065 = vmatprep.subr.mxu0 %v2226_v42  ;;  %2839 = vmatmul.mubr.f32.gmra.mxu1 %v5125_v8  ;;  %v2109_v42 = vld [vmem:[#allocation4 + $0xbb0] sm:$0xff] }
 0x2a3   :  { %2946 = vmatprep.subr.mxu1 %v2030_v0  ;;  %3066 = vmatpush2.msra.mxu0 %v2225_v21  ;;  %v2106_v0 = vld [vmem:[#allocation4 + $0xb98] sm:$0xff]  ;;  %v2105_v21 = vld [vmem:[#allocation4 + $0xb90] sm:$0xff] }
 0x2a4   :  { %2947 = vmatpush1.msra.mxu1 %v2029_v5  ;;  %2998 = vmatprep.mubr.f32.mxu1 %v5113_v2  ;;  %v2209_v2 = vld [vmem:[#allocation4 + $0xed0] sm:$0xff]  ;;  %v2102_v5 = vld [vmem:[#allocation4 + $0xb78] sm:$0xff] }
 0x2a5   :  { %3067 = vmatprep.subr.mxu0 %v2222_v59  ;;  %2948 = vmatprep.subr.mxu1 %v2026_v37  ;;  %v2101_v59 = vld [vmem:[#allocation4 + $0xb70] sm:$0xff]  ;;  %v2098_v37 = vld [vmem:[#allocation4 + $0xb58] sm:$0xff] }
 0x2a6   :  { %3068 = vmatpush2.msra.mxu0 %v2221_v6  ;;  %2949 = vmatpush1.msra.mxu1 %v2025_v15  ;;  %v2094_v6 = vld [vmem:[#allocation4 + $0xb38] sm:$0xff]  ;;  %v2093_v15 = vld [vmem:[#allocation4 + $0xb30] sm:$0xff] }
 0x2a7   :  { %3069 = vmatprep.subr.mxu0 %v2218_v61  ;;  %2950 = vmatprep.subr.mxu1 %v2022_v36  ;;  %v2090_v61 = vld [vmem:[#allocation4 + $0xb18] sm:$0xff] }
 0x2a8   :  { %3070 = vmatpush2.msra.mxu0 %v2217_v52  ;;  %2951 = vmatpush1.msra.mxu1 %v2021_v53  ;;  %v2086_v36 = vld [vmem:[#allocation4 + $0xaf8] sm:$0xff]  ;;  %v2085_v52 = vld [vmem:[#allocation4 + $0xaf0] sm:$0xff] }
 0x2a9   :  { %3071 = vmatprep.subr.mxu0 %v2214_v17  ;;  %2952 = vmatprep.subr.mxu1 %v2018_v19  ;;  %v2082_v53 = vld [vmem:[#allocation4 + $0xad8] sm:$0xff]  ;;  %v2377_v19 = vpop.f32.mrf.mxu1 }
 0x2aa   :  { %3072 = vmatpush2.msra.mxu0 %v2213_v44  ;;  %2953 = vmatpush1.msra.mxu1 %v2017_v35  ;;  %v2078_v17 = vld [vmem:[#allocation4 + $0xab8] sm:$0xff]  ;;  %v2073_v44 = vld [vmem:[#allocation4 + $0xa90] sm:$0xff] }
 0x2ab   :  { %3073 = vmatprep.subr.mxu0 %v2210_v41  ;;  %2954 = vmatprep.subr.mxu1 %v2014_v31  ;;  %v2070_v35 = vld [vmem:[#allocation4 + $0xa78] sm:$0xff]  ;;  %v2379_v41 = vpop.f32.mrf.mxu1  ;;  %v2065_v31 = vld [vmem:[#allocation4 + $0xa50] sm:$0xff] }
 0x2ac   :  { %3074 = vmatpush2.msra.mxu0 %v2209_v2  ;;  %2955 = vmatpush1.msra.mxu1 %v2013_v12  ;;  %v2062_v2 = vld [vmem:[#allocation4 + $0xa38] sm:$0xff] }
 0x2ad   :  { %3075 = vmatprep.subr.mxu0 %v2206_v28  ;;  %2956 = vmatprep.subr.mxu1 %v2010_v16  ;;  %v5260_v12 = vpop.f32.mrf.mxu1  ;;  %v2061_v28 = vld [vmem:[#allocation4 + $0xa30] sm:$0xff]  ;;  %v2058_v16 = vld [vmem:[#allocation4 + $0xa18] sm:$0xff] }
 0x2ae   :  { %3076 = vmatpush2.msra.mxu0 %v2205_v26  ;;  %2957 = vmatpush1.msra.mxu1 %v2009_v51  ;;  %v2057_v26 = vld [vmem:[#allocation4 + $0xa10] sm:$0xff]  ;;  %v2310_v51 = vld [vmem:[#allocation4 + $0x11f8] sm:$0xff] }
 0x2af   :  { %3077 = vmatprep.subr.mxu0 %v2202_v29  ;;  %2958 = vmatprep.subr.mxu1 %v2006_v9  ;;  %v5262_v29 = vpop.f32.mrf.mxu1  ;;  %v2309_v9 = vld [vmem:[#allocation4 + $0x11f0] sm:$0xff] }
 0x2b0   :  { %3078 = vmatpush2.msra.mxu0 %v2201_v47  ;;  %2959 = vmatpush1.msra.mxu1 %v2005_v34  ;;  %v2306_v47 = vld [vmem:[#allocation4 + $0x11d8] sm:$0xff] }
 0x2b1   :  { %3079 = vmatprep.subr.mxu0 %v2198_v48  ;;  %2960 = vmatprep.subr.mxu1 %v2002_v18  ;;  %v5264_v34 = vpop.f32.mrf.mxu1  ;;  %v2305_v48 = vld [vmem:[#allocation4 + $0x11d0] sm:$0xff]  ;;  %v2302_v18 = vld [vmem:[#allocation4 + $0x11b8] sm:$0xff] }
 0x2b2   :  { %3080 = vmatpush2.msra.mxu0 %v2197_v55  ;;  %2961 = vmatpush1.msra.mxu1 %v2001_v22  ;;  %v2301_v55 = vld [vmem:[#allocation4 + $0x11b0] sm:$0xff]  ;;  %v2298_v22 = vld [vmem:[#allocation4 + $0x1198] sm:$0xff] }
 0x2b3   :  { %3081 = vmatprep.subr.mxu0 %v2194_v50  ;;  %2962 = vmatprep.subr.mxu1 %v1998_v13  ;;  %v5268_v50 = vpop.f32.mrf.mxu1  ;;  %v2297_v13 = vld [vmem:[#allocation4 + $0x1190] sm:$0xff] }
 0x2b4   :  { %3082 = vmatpush2.msra.mxu0 %v2193_v20  ;;  %2963 = vmatpush1.msra.mxu1 %v1997_v54  ;;  %v2466_v20 = vpop.f32.mrf.mxu0 }
 0x2b5   :  { %3083 = vmatprep.subr.mxu0 %v2190_v3  ;;  %2964 = vmatprep.subr.mxu1 %v1994_v1  ;;  %v2293_v3 = vld [vmem:[#allocation4 + $0x1170] sm:$0xff]  ;;  %v2290_v1 = vld [vmem:[#allocation4 + $0x1158] sm:$0xff] }
 0x2b6   :  { %3084 = vmatpush2.msra.mxu0 %v2189_v39  ;;  %2965 = vmatpush1.msra.mxu1 %v1993_v38  ;;  %v2289_v39 = vld [vmem:[#allocation4 + $0x1150] sm:$0xff]  ;;  %v2468_v38 = vpop.f32.mrf.mxu0 }
 0x2b7   :  { %3085 = vmatprep.subr.mxu0 %v2186_v60  ;;  %2966 = vmatprep.subr.mxu1 %v2118_v49  ;;  %v2285_v49 = vld [vmem:[#allocation4 + $0x1130] sm:$0xff] }
 0x2b8   :  { %3086 = vmatpush2.msra.mxu0 %v2185_v30  ;;  %2967 = vmatpush2.msra.mxu1 %v2117_v11  ;;  %v2467_v30 = vadd.f32 %v2466_v20, %v2377_v19  ;;  %v2282_v11 = vld [vmem:[#allocation4 + $0x1118] sm:$0xff] }
 0x2b9   :  { %3088 = vmatmul.mubr.f32.vlgmr.msra.gmra.mxu0 %v5085_v56  ;;  %2968 = vmatprep.subr.mxu1 %v2114_v24  ;;  %v2097_v56 = vld [vmem:[#allocation4 + $0xb50] sm:$0xff]  ;;  %v5278_v24 = vpop.f32.mrf.mxu0  ;;  %v2258_v19 = vld [vmem:[#allocation4 + $0x1058] sm:$0xff] }
 0x2ba   :  { %3093 = vmatprep.mubr.f32.mxu0 %v5162_v27  ;;  %2969 = vmatpush2.msra.mxu1 %v2113_v43  ;;  %v5272_v54 = vpop.f32.mrf.mxu1  ;;  %v3324_v20 = vld [vmem:[#allocation6 + $0x2f8] sm:$0xff]  ;;  %v2473_v46 = vadd.f32 %v5278_v24, %v5260_v12 }
 0x2bb   :  { %2970 = vmatprep.subr.mxu1 %v2110_v62  ;;  %v2469_v62 = vadd.f32 %v2468_v38, %v2379_v41 }
 0x2bc   :  { %2971 = vmatpush2.msra.mxu1 %v2109_v42  ;;  %v5276_v60 = vpop.f32.mrf.mxu1  ;;  %v2278_v42 = vld [vmem:[#allocation4 + $0x10f8] sm:$0xff] }
 0x2bd   :  { %3094 = vmatmul.mubr.f32.gmra.mxu0 %v5125_v8  ;;  %2972 = vmatprep.subr.mxu1 %v2106_v0  ;;  %v2089_v8 = vld [vmem:[#allocation4 + $0xb10] sm:$0xff] }
 0x2be   :  { %3099 = vmatprep.mubr.f32.mxu0 %v5202_v32  ;;  %2973 = vmatpush2.msra.mxu1 %v2105_v21  ;;  %v2277_v21 = vld [vmem:[#allocation4 + $0x10f0] sm:$0xff] }
 0x2bf   :  { %2974 = vmatprep.subr.mxu1 %v2102_v5 }
 0x2c0   :  { %2975 = vmatpush2.msra.mxu1 %v2101_v59  ;;  %v2274_v59 = vld [vmem:[#allocation4 + $0x10d8] sm:$0xff] }
 0x2c1   :  { %3100 = vmatmul.mubr.f32.gmra.mxu0 %v5153_v25  ;;  %2976 = vmatprep.subr.mxu1 %v2098_v37  ;;  %v2081_v25 = vld [vmem:[#allocation4 + $0xad0] sm:$0xff] }
 0x2c2   :  { %3105 = vmatprep.mubr.f32.mxu0 %v1733_v40  ;;  %2977 = vmatpush2.msra.mxu1 %v2097_v56  ;;  %v2074_v40 = vld [vmem:[#allocation4 + $0xa98] sm:$0xff]  ;;  %v5286_v56 = vpop.f32.mrf.mxu0 }
 0x2c3   :  { %2978 = vmatprep.subr.mxu1 %v2094_v6  ;;  %v2270_v6 = vld [vmem:[#allocation4 + $0x10b8] sm:$0xff] }
 0x2c4   :  { %2979 = vmatpush2.msra.mxu1 %v2093_v15  ;;  %v2478_v15 = vpop.f32.mrf.mxu0 }
 0x2c5   :  { %3106 = vmatmul.mubr.f32.gmra.mxu0 %v1732_v14  ;;  %2980 = vmatprep.subr.mxu1 %v2090_v61  ;;  %v2066_v14 = vld [vmem:[#allocation4 + $0xa58] sm:$0xff]  ;;  %v2269_v61 = vld [vmem:[#allocation4 + $0x10b0] sm:$0xff] }
 0x2c6   :  { %2981 = vmatpush2.msra.mxu1 %v2089_v8 }
 0x2c7   :  { %2982 = vmatprep.subr.mxu1 %v2086_v36  ;;  %v2266_v36 = vld [vmem:[#allocation4 + $0x1098] sm:$0xff] }
 0x2c8   :  { %2983 = vmatpush2.msra.mxu1 %v2085_v52  ;;  %v2265_v52 = vld [vmem:[#allocation4 + $0x1090] sm:$0xff] }
 0x2c9   :  { %2984 = vmatprep.subr.mxu1 %v2082_v53 }
 0x2ca   :  { %2985 = vmatpush2.msra.mxu1 %v2081_v25  ;;  %v2262_v25 = vld [vmem:[#allocation4 + $0x1078] sm:$0xff] }
 0x2cb   :  { %2986 = vmatprep.subr.mxu1 %v2078_v17  ;;  %v2480_v17 = vpop.f32.mrf.mxu0 }
 0x2cc   :  { %2987 = vmatpush2.msra.mxu1 %v2077_v45  ;;  %v2261_v45 = vld [vmem:[#allocation4 + $0x1070] sm:$0xff] }
 0x2cd   :  { %2988 = vmatprep.subr.mxu1 %v2074_v40  ;;  %v2479_v40 = vadd.f32 %v2478_v15, %v5264_v34 }
 0x2ce   :  { %2989 = vmatpush2.msra.mxu1 %v2073_v44  ;;  %v2257_v44 = vld [vmem:[#allocation4 + $0x1050] sm:$0xff] }
 0x2cf   :  { %2990 = vmatprep.subr.mxu1 %v2070_v35 }
 0x2d0   :  { %2991 = vmatpush2.msra.mxu1 %v2069_v63  ;;  %v2481_v63 = vadd.f32 %v2480_v17, %v5268_v50 }
 0x2d1   :  { %2992 = vmatprep.subr.mxu1 %v2066_v14  ;;  %v2254_v14 = vld [vmem:[#allocation4 + $0x1038] sm:$0xff] }
 0x2d2   :  { %2993 = vmatpush2.msra.mxu1 %v2065_v31  ;;  %v2253_v31 = vld [vmem:[#allocation4 + $0x1030] sm:$0xff] }
 0x2d3   :  { %2994 = vmatprep.subr.mxu1 %v2062_v2 }
 0x2d4   :  { %2995 = vmatpush2.msra.mxu1 %v2061_v28  ;;  %v2250_v28 = vld [vmem:[#allocation4 + $0x1018] sm:$0xff] }
 0x2d5   :  { %2996 = vmatprep.subr.mxu1 %v2058_v16 }
 0x2d6   :  { %2997 = vmatpush2.msra.mxu1 %v2057_v26  ;;  %v2249_v26 = vld [vmem:[#allocation4 + $0x1010] sm:$0xff] }
 0x2d7   :  { %2999 = vmatmul.mubr.f32.vlgmr.msra.gmra.mxu1 %v5103_v10  ;;  %3112 = vmatprep.subr.mxu1 %v2310_v51  ;;  %v2294_v10 = vld [vmem:[#allocation4 + $0x1178] sm:$0xff]  ;;  %v5298_v51 = vpop.f32.mrf.mxu0 }
 0x2d8   :  { %3004 = vmatprep.mubr.f32.mxu1 %v5146_v57  ;;  %3113 = vmatpush1.msra.mxu1 %v2309_v9 }
 0x2d9   :  { %3114 = vmatprep.subr.mxu1 %v2306_v47  ;;  %v5302_v9 = vpop.f32.mrf.mxu0 }
 0x2da   :  { %3115 = vmatpush1.msra.mxu1 %v2305_v48 }
 0x2db   :  { %3005 = vmatmul.mubr.f32.gmra.mxu1 %v5139_v4  ;;  %3116 = vmatprep.subr.mxu1 %v2302_v18  ;;  %v2286_v4 = vld [vmem:[#allocation4 + $0x1138] sm:$0xff] }
 0x2dc   :  { %3010 = vmatprep.mubr.f32.mxu1 %v5173_v33  ;;  %3117 = vmatpush1.msra.mxu1 %v2301_v55  ;;  %v3259_v55 = vld [vmem:[#allocation6 + $0xf0] sm:$0xff] }
 0x2dd   :  { %3118 = vmatprep.subr.mxu1 %v2298_v22  ;;  %v3258_v22 = vld [vmem:[#allocation6 + $0xe8] sm:$0xff] }
 0x2de   :  { %3119 = vmatpush1.msra.mxu1 %v2297_v13 }
 0x2df   :  { %3011 = vmatmul.mubr.f32.gmra.mxu1 %v5162_v27  ;;  %3120 = vmatprep.subr.mxu1 %v2294_v10  ;;  %v2281_v27 = vld [vmem:[#allocation4 + $0x1110] sm:$0xff]  ;;  %v3256_v10 = vld [vmem:[#allocation6 + $0xd8] sm:$0xff] }
 0x2e0   :  { %3016 = vmatprep.mubr.f32.mxu1 %v5208_v23  ;;  %3121 = vmatpush1.msra.mxu1 %v2293_v3  ;;  %v3323_v3 = vld [vmem:[#allocation6 + $0x2f0] sm:$0xff] }
 0x2e1   :  { %3122 = vmatprep.subr.mxu1 %v2290_v1 }
 0x2e2   :  { %3123 = vmatpush1.msra.mxu1 %v2289_v39  ;;  %v3254_v39 = vld [vmem:[#allocation6 + $0xc8] sm:$0xff] }
 0x2e3   :  { %3017 = vmatmul.mubr.f32.gmra.mxu1 %v5202_v32  ;;  %3124 = vmatprep.subr.mxu1 %v2286_v4  ;;  %v2555_v43 = vpop.f32.mrf.mxu1  ;;  %v2273_v32 = vld [vmem:[#allocation4 + $0x10d0] sm:$0xff]  ;;  %v3322_v4 = vld [vmem:[#allocation6 + $0x2e8] sm:$0xff] }
 0x2e4   :  { %3125 = vmatpush1.msra.mxu1 %v2285_v49  ;;  %3176 = vmatprep.mubr.f32.mxu1 %v5626_v7  ;;  %v5282_v0 = vadd.f32 %v2555_v43, %v2467_v30  ;;  %v3320_v43 = vld [vmem:[#allocation6 + $0x2d8] sm:$0xff] }
 0x2e5   :  { %3126 = vmatprep.subr.mxu1 %v2282_v11  ;;  %v2557_v5 = vpop.f32.mrf.mxu1  ;;  %v2644_v47 = vpop.f32.mrf.mxu0  ;;  %v3253_v11 = vld [vmem:[#allocation6 + $0xc0] sm:$0xff] }
 0x2e6   :  { %3127 = vmatpush1.msra.mxu1 %v2281_v27  ;;  %v5284_v37 = vadd.f32 %v2557_v5, %v2469_v62  ;;  %v2645_v38 = vadd.f32 %v2644_v47, %v5282_v0  ;;  %v3321_v27 = vld [vmem:[#allocation6 + $0x2e0] sm:$0xff]  ;;  %v3252_v62 = vld [vmem:[#allocation6 + $0xb8] sm:$0xff]  ;;  %v3251_v0 = vld [vmem:[#allocation6 + $0xb0] sm:$0xff] }
 0x2e7   :  { %3128 = vmatprep.subr.mxu1 %v2278_v42  ;;  %v2646_v34 = vpop.f32.mrf.mxu0  ;;  %v3319_v42 = vld [vmem:[#allocation6 + $0x2d0] sm:$0xff]  ;;  %v3318_v47 = vld [vmem:[#allocation6 + $0x2c8] sm:$0xff] }
 0x2e8   :  { %3129 = vmatpush1.msra.mxu1 %v2277_v21  ;;  %v2647_v49 = vadd.f32 %v2646_v34, %v5284_v37 }
 0x2e9   :  { %3130 = vmatprep.subr.mxu1 %v2274_v59  ;;  %v5288_v8 = vpop.f32.mrf.mxu1  ;;  %v3250_v59 = vld [vmem:[#allocation6 + $0xa8] sm:$0xff] }
 0x2ea   :  { %3131 = vmatpush1.msra.mxu1 %v2273_v32  ;;  %v2562_v12 = vadd.f32 %v5288_v8, %v2473_v46  ;;  %v3248_v8 = vld [vmem:[#allocation6 + $0x98] sm:$0xff] }
 0x2eb   :  { %3132 = vmatprep.subr.mxu1 %v2270_v6  ;;  %v5290_v53 = vpop.f32.mrf.mxu1  ;;  %v2650_v48 = vpop.f32.mrf.mxu0  ;;  %v3249_v6 = vld [vmem:[#allocation6 + $0xa0] sm:$0xff] }
 0x2ec   :  { %3133 = vmatpush1.msra.mxu1 %v2269_v61  ;;  %v2651_v15 = vadd.f32 %v2650_v48, %v2562_v12  ;;  %v3236_v12 = vld [vmem:[#allocation6 + $0x38] sm:$0xff] }
 0x2ed   :  { %3134 = vmatprep.subr.mxu1 %v2266_v36  ;;  %v2652_v50 = vpop.f32.mrf.mxu0 }
 0x2ee   :  { %3135 = vmatpush1.msra.mxu1 %v2265_v52  ;;  %v3247_v52 = vld [vmem:[#allocation6 + $0x90] sm:$0xff] }
 0x2ef   :  { %3136 = vmatprep.subr.mxu1 %v2262_v25  ;;  %v2567_v35 = vpop.f32.mrf.mxu1 }
 0x2f0   :  { %3137 = vmatpush1.msra.mxu1 %v2261_v45  ;;  %v5294_v41 = vadd.f32 %v2567_v35, %v2479_v40  ;;  %v2485_v45 = vadd.f32 %v5298_v51, %v5272_v54  ;;  %v2487_v40 = vadd.f32 %v5302_v9, %v5276_v60  ;;  %v3245_v60 = vld [vmem:[#allocation6 + $0x80] sm:$0xff] }
 0x2f1   :  { %3138 = vmatprep.subr.mxu1 %v2258_v19  ;;  %v2569_v2 = vpop.f32.mrf.mxu1  ;;  %v2656_v30 = vpop.f32.mrf.mxu0  ;;  %v3317_v9 = vld [vmem:[#allocation6 + $0x2c0] sm:$0xff] }
 0x2f2   :  { %3139 = vmatpush1.msra.mxu1 %v2257_v44  ;;  %v5296_v16 = vadd.f32 %v2569_v2, %v2481_v63  ;;  %v2657_v35 = vadd.f32 %v2656_v30, %v5294_v41  ;;  %v3244_v41 = vld [vmem:[#allocation6 + $0x78] sm:$0xff]  ;;  %v3310_v30 = vld [vmem:[#allocation6 + $0x288] sm:$0xff] }
 0x2f3   :  { %3140 = vmatprep.subr.mxu1 %v2254_v14  ;;  %v2658_v37 = vpop.f32.mrf.mxu0 }
 0x2f4   :  { %3141 = vmatpush1.msra.mxu1 %v2253_v31  ;;  %v2659_v63 = vadd.f32 %v2658_v37, %v5296_v16  ;;  %v3316_v16 = vld [vmem:[#allocation6 + $0x2b8] sm:$0xff] }
 0x2f5   :  { %3142 = vmatprep.subr.mxu1 %v2250_v28  ;;  %v5310_v18 = vpop.f32.mrf.mxu1  ;;  %v3304_v37 = vld [vmem:[#allocation6 + $0x258] sm:$0xff] }
 0x2f6   :  { %3143 = vmatpush1.msra.mxu1 %v2249_v26  ;;  %v2574_v14 = vadd.f32 %v5310_v18, %v2485_v45  ;;  %v3246_v26 = vld [vmem:[#allocation6 + $0x88] sm:$0xff] }
 0x2f7   :  { %3177 = vmatmul.mubr.f32.vlgmr.msra.gmra.mxu1 %v5146_v57  ;;  %v3260_v57 = vld [vmem:[#allocation6 + $0xf8] sm:$0xff]  ;;  %v5312_v13 = vpop.f32.mrf.mxu1  ;;  %3436 = vmatprep.subr.mxu1 %v3324_v20  ;;  %v2662_v17 = vpop.f32.mrf.mxu0  ;;  %v3313_v20 = vld [vmem:[#allocation6 + $0x2a0] sm:$0xff]  ;;  %v3298_v45 = vld [vmem:[#allocation6 + $0x228] sm:$0xff] }
 0x2f8   :  { %3182 = vmatprep.mubr.f32.mxu1 %v5626_v7  ;;  %3365 = vmatprep.subr.mxu0 %v3260_v57  ;;  %v2576_v31 = vadd.f32 %v5312_v13, %v2487_v40  ;;  %v3243_v57 = vld [vmem:[#allocation6 + $0x70] sm:$0xff]  ;;  %v3314_v13 = vld [vmem:[#allocation6 + $0x2a8] sm:$0xff]  ;;  %v3289_v40 = vld [vmem:[#allocation6 + $0x1e0] sm:$0xff] }
 0x2f9   :  { %3366 = vmatpush1.msra.mxu0 %v3259_v55  ;;  %3437 = vmatpush1.msra.mxu1 %v3323_v3  ;;  %v2664_v54 = vpop.f32.mrf.mxu0  ;;  %v3315_v55 = vld [vmem:[#allocation6 + $0x2b0] sm:$0xff] }
 0x2fa   :  { %3367 = vmatprep.subr.mxu0 %v3258_v22  ;;  %3438 = vmatprep.subr.mxu1 %v3322_v4  ;;  %v2663_v22 = vadd.f32 %v2662_v17, %v2574_v14  ;;  %v3311_v4 = vld [vmem:[#allocation6 + $0x290] sm:$0xff]  ;;  %v3290_v17 = vld [vmem:[#allocation6 + $0x1e8] sm:$0xff] }
 0x2fb   :  { %3183 = vmatmul.mubr.f32.gmra.mxu1 %v5173_v33  ;;  %v3257_v33 = vld [vmem:[#allocation6 + $0xe0] sm:$0xff]  ;;  %v3295_v14 = vld [vmem:[#allocation6 + $0x210] sm:$0xff] }
 0x2fc   :  { %3188 = vmatprep.mubr.f32.mxu1 %v5626_v7  ;;  %3368 = vmatpush1.msra.mxu0 %v3257_v33  ;;  %v3242_v33 = vld [vmem:[#allocation6 + $0x68] sm:$0xff] }
 0x2fd   :  { %3369 = vmatprep.subr.mxu0 %v3256_v10  ;;  %3439 = vmatpush1.msra.mxu1 %v3321_v27  ;;  %v3309_v27 = vld [vmem:[#allocation6 + $0x280] sm:$0xff] }
 0x2fe   :  { %3440 = vmatprep.subr.mxu1 %v3320_v43 }
 0x2ff   :  { %3189 = vmatmul.mubr.f32.gmra.mxu1 %v5208_v23  ;;  %v3255_v23 = vld [vmem:[#allocation6 + $0xd0] sm:$0xff] }
 0x300   :  { %3194 = vmatprep.mubr.f32.mxu1 %v5626_v7  ;;  %3370 = vmatpush1.msra.mxu0 %v3255_v23  ;;  %v3241_v23 = vld [vmem:[#allocation6 + $0x60] sm:$0xff] }
 0x301   :  { %3371 = vmatprep.subr.mxu0 %v3254_v39  ;;  %3441 = vmatpush1.msra.mxu1 %v3319_v42  ;;  %v3239_v39 = vld [vmem:[#allocation6 + $0x50] sm:$0xff]  ;;  %v3234_v42 = vld [vmem:[#allocation6 + $0x28] sm:$0xff] }
 0x302   :  { %3372 = vmatpush1.msra.mxu0 %v3253_v11  ;;  %3442 = vmatprep.subr.mxu1 %v3318_v47  ;;  %v3237_v11 = vld [vmem:[#allocation6 + $0x40] sm:$0xff] }
 0x303   :  { %3195 = vmatmul.mubr.f32.gmra.mxu1 %v1734_v58  ;;  %v2475_v58 = vadd.f32 %v5286_v56, %v5262_v29  ;;  %3373 = vmatprep.subr.mxu0 %v3252_v62  ;;  %v3307_v62 = vld [vmem:[#allocation6 + $0x270] sm:$0xff]  ;;  %v3293_v47 = vld [vmem:[#allocation6 + $0x200] sm:$0xff] }
 0x304   :  { %3374 = vmatpush1.msra.mxu0 %v3251_v0  ;;  %3443 = vmatpush1.msra.mxu1 %v3317_v9  ;;  %v3305_v0 = vld [vmem:[#allocation6 + $0x260] sm:$0xff]  ;;  %v3282_v9 = vld [vmem:[#allocation6 + $0x1a8] sm:$0xff] }
 0x305   :  { %v2564_v24 = vadd.f32 %v5290_v53, %v2475_v58  ;;  %3375 = vmatprep.subr.mxu0 %v3250_v59  ;;  %3444 = vmatprep.subr.mxu1 %v3316_v16  ;;  %v3240_v58 = vld [vmem:[#allocation6 + $0x58] sm:$0xff]  ;;  %v3281_v16 = vld [vmem:[#allocation6 + $0x1a0] sm:$0xff] }
 0x306   :  { %3376 = vmatpush1.msra.mxu0 %v3249_v6  ;;  %3445 = vmatpush1.msra.mxu1 %v3315_v55  ;;  %v3232_v59 = vld [vmem:[#allocation6 + $0x18] sm:$0xff]  ;;  %v3230_v6 = vld [vmem:[#allocation6 + $0x8] sm:$0xff]  ;;  %v3279_v55 = vld [vmem:[#allocation6 + $0x190] sm:$0xff] }
 0x307   :  { %v2653_v61 = vadd.f32 %v2652_v50, %v2564_v24  ;;  %3377 = vmatprep.subr.mxu0 %v3248_v8  ;;  %v2665_v50 = vadd.f32 %v2664_v54, %v2576_v31  ;;  %3446 = vmatprep.subr.mxu1 %v3314_v13  ;;  %v3308_v24 = vld [vmem:[#allocation6 + $0x278] sm:$0xff]  ;;  %v3301_v8 = vld [vmem:[#allocation6 + $0x240] sm:$0xff]  ;;  %v3286_v31 = vld [vmem:[#allocation6 + $0x1c8] sm:$0xff] }
 0x308   :  { %3378 = vmatpush1.msra.mxu0 %v3247_v52  ;;  %3447 = vmatpush1.msra.mxu1 %v3313_v20  ;;  %v3300_v52 = vld [vmem:[#allocation6 + $0x238] sm:$0xff]  ;;  %v3277_v13 = vld [vmem:[#allocation6 + $0x180] sm:$0xff] }
 0x309   :  { %3379 = vmatprep.subr.mxu0 %v3246_v26  ;;  %v3285_v26 = vld [vmem:[#allocation6 + $0x1c0] sm:$0xff]  ;;  %v3284_v54 = vld [vmem:[#allocation6 + $0x1b8] sm:$0xff] }
 0x30a   :  { %3380 = vmatpush1.msra.mxu0 %v3245_v60  ;;  %v3355_v60 = vld [vmem:[#allocation6 + $0x3f0] sm:$0xff]  ;;  %v3348_v20 = vld [vmem:[#allocation6 + $0x3b8] sm:$0xff] }
 0x30b   :  { %v2733_v1 = vpop.f32.mrf.mxu1  ;;  %3381 = vmatprep.subr.mxu0 %v3244_v41  ;;  %v3354_v41 = vld [vmem:[#allocation6 + $0x3e8] sm:$0xff] }
 0x30c   :  { %v2734_v21 = vadd.f32 %v2733_v1, %v2645_v38  ;;  %3382 = vmatpush1.msra.mxu0 %v3243_v57  ;;  %v3312_v1 = vld [vmem:[#allocation6 + $0x298] sm:$0xff] }
 0x30d   :  { %v2735_v29 = vpop.f32.mrf.mxu1  ;;  %3383 = vmatprep.subr.mxu0 %v3242_v33  ;;  %3448 = vmatprep.subr.mxu1 %v3312_v1  ;;  %v3352_v57 = vld [vmem:[#allocation6 + $0x3d8] sm:$0xff]  ;;  %v3350_v33 = vld [vmem:[#allocation6 + $0x3c8] sm:$0xff] }
 0x30e   :  { %v2736_v5 = vadd.f32 %v2735_v29, %v2647_v49  ;;  %3384 = vmatpush1.msra.mxu0 %v3241_v23  ;;  %3449 = vmatpush1.msra.mxu1 %v3311_v4  ;;  %v3238_v49 = vld [vmem:[#allocation6 + $0x48] sm:$0xff]  ;;  %v3235_v29 = vld [vmem:[#allocation6 + $0x30] sm:$0xff]  ;;  %v3276_v23 = vld [vmem:[#allocation6 + $0x178] sm:$0xff] }
 0x30f   :  { %3385 = vmatprep.subr.mxu0 %v3240_v58  ;;  %3450 = vmatprep.subr.mxu1 %v3310_v30  ;;  %v3274_v58 = vld [vmem:[#allocation6 + $0x168] sm:$0xff]  ;;  %v3345_v4 = vld [vmem:[#allocation6 + $0x3a0] sm:$0xff]  ;;  %v3271_v30 = vld [vmem:[#allocation6 + $0x150] sm:$0xff] }
 0x310   :  { %v3201_v56 = vmax.f32 %v2734_v21, %v2736_v5  ;;  %v2739_v32 = vpop.f32.mrf.mxu1  ;;  %3386 = vmatpush1.msra.mxu0 %v3239_v39  ;;  %3451 = vmatpush1.msra.mxu1 %v3309_v27  ;;  %v3306_v21 = vld [vmem:[#allocation6 + $0x268] sm:$0xff]  ;;  %v3233_v5 = vld [vmem:[#allocation6 + $0x20] sm:$0xff] }
 0x311   :  { %v2740_v53 = vadd.f32 %v2739_v32, %v2651_v15  ;;  %3387 = vmatprep.subr.mxu0 %v3238_v49  ;;  %3452 = vmatprep.subr.mxu1 %v3308_v24  ;;  %v3303_v32 = vld [vmem:[#allocation6 + $0x250] sm:$0xff]  ;;  %v3302_v15 = vld [vmem:[#allocation6 + $0x248] sm:$0xff]  ;;  %v3273_v39 = vld [vmem:[#allocation6 + $0x160] sm:$0xff] }
 0x312   :  { %v2741_v36 = vpop.f32.mrf.mxu1  ;;  %3388 = vmatpush1.msra.mxu0 %v3237_v11  ;;  %3453 = vmatpush1.msra.mxu1 %v3307_v62  ;;  %v3346_v1 = vld [vmem:[#allocation6 + $0x3a8] sm:$0xff]  ;;  %v3344_v49 = vld [vmem:[#allocation6 + $0x398] sm:$0xff]  ;;  %v3343_v11 = vld [vmem:[#allocation6 + $0x390] sm:$0xff] }
 0x313   :  { %v2742_v25 = vadd.f32 %v2741_v36, %v2653_v61  ;;  %3389 = vmatprep.subr.mxu0 %v3236_v12  ;;  %3454 = vmatprep.subr.mxu1 %v3306_v21  ;;  %v3229_v61 = vld [vmem:[#allocation6] sm:$0xff]  ;;  %v3292_v36 = vld [vmem:[#allocation6 + $0x1f8] sm:$0xff]  ;;  %v3270_v27 = vld [vmem:[#allocation6 + $0x148] sm:$0xff] }
 0x314   :  { %3390 = vmatpush1.msra.mxu0 %v3235_v29  ;;  %3455 = vmatpush1.msra.mxu1 %v3305_v0  ;;  %v3342_v12 = vld [vmem:[#allocation6 + $0x388] sm:$0xff]  ;;  %v3269_v24 = vld [vmem:[#allocation6 + $0x140] sm:$0xff]  ;;  %v3268_v62 = vld [vmem:[#allocation6 + $0x138] sm:$0xff] }
 0x315   :  { %v3202_v19 = vmax.f32 %v2740_v53, %v2742_v25  ;;  %v2745_v44 = vpop.f32.mrf.mxu1  ;;  %3391 = vmatprep.subr.mxu0 %v3234_v42  ;;  %3456 = vmatprep.subr.mxu1 %v3304_v37  ;;  %v3291_v53 = vld [vmem:[#allocation6 + $0x1f0] sm:$0xff]  ;;  %v3341_v29 = vld [vmem:[#allocation6 + $0x380] sm:$0xff]  ;;  %v3340_v42 = vld [vmem:[#allocation6 + $0x378] sm:$0xff] }
 0x316   :  { %v2746_v51 = vadd.f32 %v2745_v44, %v2657_v35  ;;  %3392 = vmatpush1.msra.mxu0 %v3233_v5  ;;  %3457 = vmatpush1.msra.mxu1 %v3303_v32  ;;  %v3299_v25 = vld [vmem:[#allocation6 + $0x230] sm:$0xff]  ;;  %v3288_v44 = vld [vmem:[#allocation6 + $0x1d8] sm:$0xff]  ;;  %v3266_v0 = vld [vmem:[#allocation6 + $0x128] sm:$0xff] }
 0x317   :  { %v5330_v2 = vmax.f32 %v3201_v56, %v3202_v19  ;;  %v2747_v28 = vpop.f32.mrf.mxu1  ;;  %3393 = vmatprep.subr.mxu0 %v3232_v59  ;;  %v3231_v56 = vld [vmem:[#allocation6 + $0x10] sm:$0xff]  ;;  %3458 = vmatprep.subr.mxu1 %v3302_v15  ;;  %v3297_v19 = vld [vmem:[#allocation6 + $0x220] sm:$0xff]  ;;  %v3296_v35 = vld [vmem:[#allocation6 + $0x218] sm:$0xff] }
 0x318   :  { %v2748_v34 = vadd.f32 %v2747_v28, %v2659_v63  ;;  %3394 = vmatpush1.msra.mxu0 %v3231_v56  ;;  %3459 = vmatpush1.msra.mxu1 %v3301_v8  ;;  %v3287_v63 = vld [vmem:[#allocation6 + $0x1d0] sm:$0xff]  ;;  %v3294_v28 = vld [vmem:[#allocation6 + $0x208] sm:$0xff]  ;;  %v3265_v37 = vld [vmem:[#allocation6 + $0x120] sm:$0xff] }
 0x319   :  { %3395 = vmatprep.subr.mxu0 %v3230_v6  ;;  %3460 = vmatprep.subr.mxu1 %v3300_v52  ;;  %v3267_v21 = vld [vmem:[#allocation6 + $0x130] sm:$0xff]  ;;  %v3338_v59 = vld [vmem:[#allocation6 + $0x368] sm:$0xff]  ;;  %v3337_v56 = vld [vmem:[#allocation6 + $0x360] sm:$0xff] }
 0x31a   :  { %v3203_v48 = vmax.f32 %v2746_v51, %v2748_v34  ;;  %v2751_v18 = vpop.f32.mrf.mxu1  ;;  %3396 = vmatpush1.msra.mxu0 %v3229_v61  ;;  %3461 = vmatpush1.msra.mxu1 %v3299_v25  ;;  %v3356_v51 = vld [vmem:[#allocation6 + $0x3f8] sm:$0xff]  ;;  %v3283_v34 = vld [vmem:[#allocation6 + $0x1b0] sm:$0xff]  ;;  %v3262_v8 = vld [vmem:[#allocation6 + $0x108] sm:$0xff] }
 0x31b   :  { %v2752_v3 = vadd.f32 %v2751_v18, %v2663_v22  ;;  %3397 = vmatprep.subr.mxu0 %v3292_v36  ;;  %3462 = vmatprep.subr.mxu1 %v3298_v45  ;;  %v3280_v18 = vld [vmem:[#allocation6 + $0x198] sm:$0xff]  ;;  %v3351_v22 = vld [vmem:[#allocation6 + $0x3d0] sm:$0xff]  ;;  %v3334_v36 = vld [vmem:[#allocation6 + $0x348] sm:$0xff] }
 0x31c   :  { %v2753_v10 = vpop.f32.mrf.mxu1  ;;  %3398 = vmatpush2.msra.mxu0 %v3291_v53  ;;  %3463 = vmatpush1.msra.mxu1 %v3297_v19  ;;  %v3339_v5 = vld [vmem:[#allocation6 + $0x370] sm:$0xff]  ;;  %v3264_v32 = vld [vmem:[#allocation6 + $0x118] sm:$0xff]  ;;  %v3261_v52 = vld [vmem:[#allocation6 + $0x100] sm:$0xff] }
 0x31d   :  { %v2754_v46 = vadd.f32 %v2753_v10, %v2665_v50  ;;  %3399 = vmatprep.subr.mxu0 %v3290_v17  ;;  %3464 = vmatprep.subr.mxu1 %v3296_v35  ;;  %v3278_v50 = vld [vmem:[#allocation6 + $0x188] sm:$0xff]  ;;  %v3349_v10 = vld [vmem:[#allocation6 + $0x3c0] sm:$0xff]  ;;  %v3336_v6 = vld [vmem:[#allocation6 + $0x358] sm:$0xff] }
 0x31e   :  { %3400 = vmatpush2.msra.mxu0 %v3289_v40  ;;  %3465 = vmatpush1.msra.mxu1 %v3295_v14  ;;  %v3263_v15 = vld [vmem:[#allocation6 + $0x110] sm:$0xff]  ;;  %v3333_v53 = vld [vmem:[#allocation6 + $0x340] sm:$0xff]  ;;  %v3332_v25 = vld [vmem:[#allocation6 + $0x338] sm:$0xff] }
 0x31f   :  { %v3204_v38 = vmax.f32 %v2752_v3, %v2754_v46  ;;  %3401 = vmatprep.subr.mxu0 %v3288_v44  ;;  %3466 = vmatprep.subr.mxu1 %v3294_v28  ;;  %v3275_v3 = vld [vmem:[#allocation6 + $0x170] sm:$0xff]  ;;  %v3330_v45 = vld [vmem:[#allocation6 + $0x328] sm:$0xff]  ;;  %v3329_v40 = vld [vmem:[#allocation6 + $0x320] sm:$0xff] }
 0x320   :  { %3402 = vmatpush2.msra.mxu0 %v3287_v63  ;;  %3467 = vmatpush1.msra.mxu1 %v3293_v47  ;;  %v3347_v46 = vld [vmem:[#allocation6 + $0x3b0] sm:$0xff]  ;;  %v3328_v19 = vld [vmem:[#allocation6 + $0x318] sm:$0xff]  ;;  %v3326_v35 = vld [vmem:[#allocation6 + $0x308] sm:$0xff] }
 0x321   :  { %v5332_v43 = vmax.f32 %v3203_v48, %v3204_v38  ;;  %3403 = vmatprep.subr.mxu0 %v3286_v31  ;;  %3468 = vmatprep.subr.mxu1 %v3356_v51  ;;  %v3353_v48 = vld [vmem:[#allocation6 + $0x3e0] sm:$0xff]  ;;  %v3272_v38 = vld [vmem:[#allocation6 + $0x158] sm:$0xff]  ;;  %v3335_v61 = vld [vmem:[#allocation6 + $0x350] sm:$0xff] }
 0x322   :  { %3404 = vmatpush2.msra.mxu0 %v3285_v26  ;;  %3469 = vmatpush2.msra.mxu1 %v3355_v60  ;;  %v3331_v17 = vld [vmem:[#allocation6 + $0x330] sm:$0xff]  ;;  %v3325_v63 = vld [vmem:[#allocation6 + $0x300] sm:$0xff]  ;;  %v3540_v14 = vld [vmem:[%s5472_s4 + $0xf8] sm:$0xff] }
 0x323   :  { %3405 = vmatprep.subr.mxu0 %v3284_v54  ;;  %3470 = vmatprep.subr.mxu1 %v3354_v41  ;;  %v3327_v44 = vld [vmem:[#allocation6 + $0x310] sm:$0xff] }
 0x324   :  { %3406 = vmatpush2.msra.mxu0 %v3283_v34  ;;  %3471 = vmatpush2.msra.mxu1 %v3353_v48 }
 0x325   :  { %3407 = vmatprep.subr.mxu0 %v3282_v9  ;;  %3472 = vmatprep.subr.mxu1 %v3352_v57 }
 0x326   :  { %3408 = vmatpush2.msra.mxu0 %v3281_v16  ;;  %3473 = vmatpush2.msra.mxu1 %v3351_v22 }
 0x327   :  { %3409 = vmatprep.subr.mxu0 %v3280_v18  ;;  %3474 = vmatprep.subr.mxu1 %v3350_v33 }
 0x328   :  { %3410 = vmatpush2.msra.mxu0 %v3279_v55  ;;  %3475 = vmatpush2.msra.mxu1 %v3349_v10 }
 0x329   :  { %3411 = vmatprep.subr.mxu0 %v3278_v50  ;;  %3476 = vmatprep.subr.mxu1 %v3348_v20 }
 0x32a   :  { %3412 = vmatpush2.msra.mxu0 %v3277_v13  ;;  %3477 = vmatpush2.msra.mxu1 %v3347_v46 }
 0x32b   :  { %3413 = vmatprep.subr.mxu0 %v3276_v23  ;;  %3478 = vmatprep.subr.mxu1 %v3346_v1 }
 0x32c   :  { %3414 = vmatpush2.msra.mxu0 %v3275_v3  ;;  %3479 = vmatpush2.msra.mxu1 %v3345_v4 }
 0x32d   :  { %3415 = vmatprep.subr.mxu0 %v3274_v58  ;;  %3480 = vmatprep.subr.mxu1 %v3344_v49 }
 0x32e   :  { %3416 = vmatpush2.msra.mxu0 %v3273_v39  ;;  %3481 = vmatpush2.msra.mxu1 %v3343_v11 }
 0x32f   :  { %3417 = vmatprep.subr.mxu0 %v3272_v38  ;;  %3482 = vmatprep.subr.mxu1 %v3342_v12 }
 0x330   :  { %3418 = vmatpush2.msra.mxu0 %v3271_v30  ;;  %3483 = vmatpush2.msra.mxu1 %v3341_v29 }
 0x331   :  { %3419 = vmatprep.subr.mxu0 %v3270_v27  ;;  %3484 = vmatprep.subr.mxu1 %v3340_v42  ;;  %v2911_v54 = vpop.f32.mrf.mxu0 }
 0x332   :  { %3420 = vmatpush2.msra.mxu0 %v3269_v24  ;;  %3485 = vmatpush2.msra.mxu1 %v3339_v5 }
 0x333   :  { %3421 = vmatprep.subr.mxu0 %v3268_v62  ;;  %3486 = vmatprep.subr.mxu1 %v3338_v59  ;;  %v2913_v34 = vpop.f32.mrf.mxu0 }
 0x334   :  { %3422 = vmatpush2.msra.mxu0 %v3267_v21  ;;  %3487 = vmatpush2.msra.mxu1 %v3337_v56 }
 0x335   :  { %3423 = vmatprep.subr.mxu0 %v3266_v0  ;;  %3488 = vmatprep.subr.mxu1 %v3336_v6  ;;  %v5627_v0 = vld [vmem:[#allocation84_spill] sm:$0xff] }
 0x336   :  { %3424 = vmatpush2.msra.mxu0 %v3265_v37  ;;  %3489 = vmatpush2.msra.mxu1 %v3335_v61  ;;  %v2917_v9 = vpop.f32.mrf.mxu0  ;;  %v3213_v59 = vsub.s32 1, %v5627_v0 }
 0x337   :  { %3425 = vmatprep.subr.mxu0 %v3264_v32  ;;  %3490 = vmatprep.subr.mxu1 %v3334_v36 }
 0x338   :  { %3426 = vmatpush2.msra.mxu0 %v3263_v15  ;;  %3491 = vmatpush2.msra.mxu1 %v3333_v53  ;;  %v2919_v16 = vpop.f32.mrf.mxu0 }
 0x339   :  { %3427 = vmatprep.subr.mxu0 %v3262_v8  ;;  %3492 = vmatprep.subr.mxu1 %v3332_v25 }
 0x33a   :  { %3428 = vmatpush2.msra.mxu0 %v3261_v52  ;;  %3493 = vmatpush2.msra.mxu1 %v3331_v17 }
 0x33b   :  { %3494 = vmatprep.subr.mxu1 %v3330_v45  ;;  %3923 = vmatprep.subr.mxu0 %v3540_v14  ;;  %v2923_v18 = vpop.f32.mrf.mxu0 }
 0x33c   :  { %3495 = vmatpush2.msra.mxu1 %v3329_v40 }
 0x33d   :  { %3496 = vmatprep.subr.mxu1 %v3328_v19  ;;  %v2925_v55 = vpop.f32.mrf.mxu0 }
 0x33e   :  { %3497 = vmatpush2.msra.mxu1 %v3327_v44  ;;  %v5339_v44 = vld [vmem:[#allocation9] sm:$0x3f] }
 0x33f   :  { %3498 = vmatprep.subr.mxu1 %v3326_v35  ;;  %v3214_v35 = vrot.slane %v5339_v44, %v3213_v59 }
 0x340   :  { %3499 = vmatpush2.msra.mxu1 %v3325_v63  ;;  %v2929_v50 = vpop.f32.mrf.mxu0 }
 0x341   :  { %3965 = vmatprep.subr.mxu1 %v5626_v7 }
 0x342   :  { %v2931_v13 = vpop.f32.mrf.mxu0 }
 0x353   :  { %v2822_v31 = vpop.f32.mrf.mxu1 }
 0x354   :  { %v2912_v49 = vadd.f32 %v2911_v54, %v2822_v31 }
 0x355   :  { %v2824_v28 = vpop.f32.mrf.mxu1 }
 0x356   :  { %v2914_v4 = vadd.f32 %v2913_v34, %v2824_v28  ;;  %v5342_v28 = vld [vmem:[#allocation9 + $0x8] sm:$0x3f] }
 0x358   :  { %v2828_v26 = vpop.f32.mrf.mxu1 }
 0x359   :  { %v2918_v30 = vadd.f32 %v2917_v9, %v2828_v26  ;;  %v3218_v26 = vrot.slane %v5342_v28, %v3213_v59  ;;  %v3534_v59 = vld [vmem:[%s5472_s4 + $0xc8] sm:$0xff] }
 0x35a   :  { %v2830_v47 = vpop.f32.mrf.mxu1 }
 0x35b   :  { %v2920_v11 = vadd.f32 %v2919_v16, %v2830_v47  ;;  %v3219_v16 = vadd.f32 %v3214_v35, %v5330_v2  ;;  %v3539_v2 = vld [vmem:[%s5472_s4 + $0xf0] sm:$0xff] }
 0x35d   :  { %v2834_v51 = vpop.f32.mrf.mxu1 }
 0x35e   :  { %v2924_v36 = vadd.f32 %v2923_v18, %v2834_v51 }
 0x35f   :  { %v2836_v60 = vpop.f32.mrf.mxu1 }
 0x360   :  { %v2926_v37 = vadd.f32 %v2925_v55, %v2836_v60 }
 0x362   :  { %v2840_v41 = vpop.f32.mrf.mxu1 }
 0x363   :  { %v2930_v52 = vadd.f32 %v2929_v50, %v2840_v41 }
 0x364   :  { %v2842_v48 = vpop.f32.mrf.mxu1 }
 0x365   :  { %v2932_v53 = vadd.f32 %v2931_v13, %v2842_v48 }
 0x379   :  { %v3089_v23 = vpop.f32.mrf.mxu0 }
 0x37b   :  { %v3091_v3 = vpop.f32.mrf.mxu0 }
 0x37d   :  { %v3095_v58 = vpop.f32.mrf.mxu0 }
 0x37f   :  { %v3097_v39 = vpop.f32.mrf.mxu0 }
 0x381   :  { %v3101_v12 = vpop.f32.mrf.mxu0 }
 0x383   :  { %v3103_v56 = vpop.f32.mrf.mxu0 }
 0x385   :  { %v3107_v63 = vpop.f32.mrf.mxu0 }
 0x387   :  { %v3109_v48 = vpop.f32.mrf.mxu0 }
 0x397   :  { %v3000_v57 = vpop.f32.mrf.mxu1 }
 0x398   :  { %v3001_v29 = vadd.f32 %v3000_v57, %v2912_v49  ;;  %v3538_v49 = vld [vmem:[%s5472_s4 + $0xe8] sm:$0xff] }
 0x399   :  { %v3002_v22 = vpop.f32.mrf.mxu1 }
 0x39a   :  { %v3003_v27 = vadd.f32 %v3002_v22, %v2914_v4  ;;  %v3090_v6 = vadd.f32 %v3089_v23, %v3001_v29  ;;  %v3523_v4 = vld [vmem:[%s5472_s4 + $0x70] sm:$0xff] }
 0x39b   :  { %v3006_v33 = vpop.f32.mrf.mxu1 }
 0x39c   :  { %v3007_v62 = vadd.f32 %v3006_v33, %v2918_v30  ;;  %v3092_v5 = vadd.f32 %v3091_v3, %v3003_v27  ;;  %v3225_v30 = vadd.f32 %v5332_v43, %v3214_v35  ;;  %v3536_v43 = vld [vmem:[%s5472_s4 + $0xd8] sm:$0xff]  ;;  %v3526_v35 = vld [vmem:[%s5472_s4 + $0x88] sm:$0xff] }
 0x39d   :  { %v3008_v10 = vpop.f32.mrf.mxu1 }
 0x39e   :  { %v3009_v42 = vadd.f32 %v3008_v10, %v2920_v11  ;;  %v3096_v61 = vadd.f32 %v3095_v58, %v3007_v62  ;;  %v3524_v58 = vld [vmem:[%s5472_s4 + $0x78] sm:$0xff]  ;;  %v3522_v11 = vld [vmem:[%s5472_s4 + $0x68] sm:$0xff]  ;;  %v3227_v62 = vmax.f32 %v3225_v30, 0.0 }
 0x39f   :  { %v3012_v20 = vpop.f32.mrf.mxu1 }
 0x3a0   :  { %v3098_v8 = vadd.f32 %v3097_v39, %v3009_v42  ;;  %v3013_v14 = vadd.f32 %v3012_v20, %v2924_v36  ;;  %v3520_v42 = vld [vmem:[%s5472_s4 + $0x58] sm:$0xff]  ;;  %v3530_v36 = vld [vmem:[%s5472_s4 + $0xa8] sm:$0xff] }
 0x3a1   :  { %v3014_v46 = vpop.f32.mrf.mxu1 }
 0x3a2   :  { %v3015_v17 = vadd.f32 %v3014_v46, %v2926_v37  ;;  %v3102_v18 = vadd.f32 %v3101_v12, %v3013_v14  ;;  %v3221_v46 = vmax.f32 %v3219_v16, 0.0  ;;  %v3537_v12 = vld [vmem:[%s5472_s4 + $0xe0] sm:$0xff]  ;;  %v3518_v37 = vld [vmem:[%s5472_s4 + $0x48] sm:$0xff] }
 0x3a3   :  { %v3018_v1 = vpop.f32.mrf.mxu1  ;;  %v3525_v14 = vld [vmem:[%s5472_s4 + $0x80] sm:$0xff] }
 0x3a4   :  { %v3019_v47 = vadd.f32 %v3018_v1, %v2930_v52  ;;  %v3104_v41 = vadd.f32 %v3103_v56, %v3015_v17  ;;  %v3533_v56 = vld [vmem:[%s5472_s4 + $0xc0] sm:$0xff]  ;;  %v3514_v52 = vld [vmem:[%s5472_s4 + $0x28] sm:$0xff]  ;;  %v3528_v17 = vld [vmem:[%s5472_s4 + $0x98] sm:$0xff] }
 0x3a5   :  { %v3020_v38 = vpop.f32.mrf.mxu1 }
 0x3a6   :  { %v3021_v54 = vadd.f32 %v3020_v38, %v2932_v53  ;;  %v3108_v22 = vadd.f32 %v3107_v63, %v3019_v47  ;;  %v3529_v53 = vld [vmem:[%s5472_s4 + $0xa0] sm:$0xff]  ;;  %v3510_v63 = vld [vmem:[%s5472_s4 + $0x8] sm:$0xff] }
 0x3a8   :  { %v3110_v50 = vadd.f32 %v3109_v48, %v3021_v54 }
 0x3b7   :  { %v3178_v24 = vpop.f32.mrf.mxu1 }
 0x3b8   :  { %v3179_v45 = vadd.f32 %v3178_v24, %v3090_v6  ;;  %v3521_v24 = vld [vmem:[%s5472_s4 + $0x60] sm:$0xff]  ;;  %v3532_v6 = vld [vmem:[%s5472_s4 + $0xb8] sm:$0xff] }
 0x3b9   :  { %v3180_v21 = vpop.f32.mrf.mxu1 }
 0x3ba   :  { %v3181_v15 = vadd.f32 %v3180_v21, %v3092_v5  ;;  %v3535_v21 = vld [vmem:[%s5472_s4 + $0xd0] sm:$0xff] }
 0x3bb   :  { %v3184_v32 = vpop.f32.mrf.mxu1  ;;  %v3519_v5 = vld [vmem:[%s5472_s4 + $0x50] sm:$0xff] }
 0x3bc   :  { %v3185_v40 = vadd.f32 %v3184_v32, %v3096_v61  ;;  %v3205_v51 = vmax.f32 %v3179_v45, %v3181_v15  ;;  %v3517_v32 = vld [vmem:[%s5472_s4 + $0x40] sm:$0xff]  ;;  %v3516_v15 = vld [vmem:[%s5472_s4 + $0x38] sm:$0xff]  ;;  %v3531_v61 = vld [vmem:[%s5472_s4 + $0xb0] sm:$0xff] }
 0x3bd   :  { %v3186_v25 = vpop.f32.mrf.mxu1  ;;  %v3512_v45 = vld [vmem:[%s5472_s4 + $0x18] sm:$0xff] }
 0x3be   :  { %v3187_v19 = vadd.f32 %v3186_v25, %v3098_v8  ;;  %v3515_v8 = vld [vmem:[%s5472_s4 + $0x30] sm:$0xff]  ;;  %v3513_v25 = vld [vmem:[%s5472_s4 + $0x20] sm:$0xff] }
 0x3bf   :  { %v3190_v31 = vpop.f32.mrf.mxu1 }
 0x3c0   :  { %v3206_v34 = vmax.f32 %v3185_v40, %v3187_v19  ;;  %v3191_v10 = vadd.f32 %v3190_v31, %v3102_v18  ;;  %v3527_v40 = vld [vmem:[%s5472_s4 + $0x90] sm:$0xff]  ;;  %v3509_v31 = vld [vmem:[%s5472_s4] sm:$0xff] }
 0x3c1   :  { %v3192_v60 = vpop.f32.mrf.mxu1  ;;  %v3511_v19 = vld [vmem:[%s5472_s4 + $0x10] sm:$0xff] }
 0x3c2   :  { %v3210_v9 = vmax.f32 %v3205_v51, %v3206_v34  ;;  %v3193_v55 = vadd.f32 %v3192_v60, %v3104_v41 }
 0x3c3   :  { %v3196_v57 = vpop.f32.mrf.mxu1 }
 0x3c4   :  { %v3220_v33 = vadd.f32 %v3218_v26, %v3210_v9  ;;  %v3197_v23 = vadd.f32 %v3196_v57, %v3108_v22  ;;  %v3207_v1 = vmax.f32 %v3191_v10, %v3193_v55  ;;  %v3618_v22 = vld [vmem:[%s5473_s5 + $0x10] sm:$0xf] }
 0x3c5   :  { %v3198_v13 = vpop.f32.mrf.mxu1 }
 0x3c6   :  { %v3199_v20 = vadd.f32 %v3198_v13, %v3110_v50  ;;  %v3222_v3 = vmax.f32 %v3220_v33, 0.0  ;;  %v3616_v50 = vld [vmem:[%s5473_s5] sm:$0xff]  ;;  %v3543_v33 = vsub.s32 3, %v5627_v0 }
 0x3c8   :  { %v3208_v39 = vmax.f32 %v3197_v23, %v3199_v20  ;;  %3429 = vmatprep.mubr.f32.mxu0 %v3222_v3  ;;  %v3544_v10 = vrot.slane %v5339_v44, %v3543_v33 }
 0x3c9   :  { %3430 = vmatmul.mubr.f32.vlgmr.msra.gmra.mxu0 %v3221_v46 }
 0x3ca   :  { %v3224_v38 = vmax.f32 %v3207_v1, %v3208_v39  ;;  %3924 = vmatpush3.msra.mxu0 %v3524_v58  ;;  %v3702_v58 = vld [vmem:[#allocation7 + $0x8] sm:$0x3]  ;;  %v3701_v1 = vld [vmem:[#allocation7] sm:$0xff]  ;;  %v3621_v39 = vsub.s32 4, %v5627_v0 }
 0x3cb   :  { %3925 = vmatprep.subr.mxu0 %v3539_v2 }
 0x3cc   :  { %v3226_v27 = vadd.f32 %v3224_v38, %v3218_v26  ;;  %3926 = vmatpush3.msra.mxu0 %v3523_v4  ;;  %v3359_v26 = vsub.s32 2, %v5627_v0  ;;  %v3622_v2 = vrot.slane %v5339_v44, %v3621_v39 }
 0x3cd   :  { %3927 = vmatprep.subr.mxu0 %v3538_v49 }
 0x3ce   :  { %v3228_v29 = vmax.f32 %v3226_v27, 0.0  ;;  %3928 = vmatpush3.msra.mxu0 %v3522_v11  ;;  %v3360_v54 = vrot.slane %v5339_v44, %v3359_v26  ;;  %v3364_v51 = vrot.slane %v5342_v28, %v3359_v26  ;;  %v3617_v28 = vld [vmem:[%s5473_s5 + $0x8] sm:$0xff]  ;;  %v3705_v11 = vsub.s32 5, %v5627_v0 }
 0x3cf   :  { %3929 = vmatprep.subr.mxu0 %v3537_v12 }
 0x3d0   :  { %3500 = vmatprep.mubr.f32.mxu1 %v3228_v29  ;;  %3930 = vmatpush3.msra.mxu0 %v3521_v24  ;;  %v3706_v27 = vrot.slane %v5339_v44, %v3705_v11 }
 0x3d1   :  { %3501 = vmatmul.mubr.f32.vlgmr.msra.gmra.mxu1 %v3227_v62  ;;  %3931 = vmatprep.subr.mxu0 %v3536_v43 }
 0x3d2   :  { %3932 = vmatpush3.msra.mxu0 %v3520_v42  ;;  %3966 = vmatpush3.msk.msra.mxu1 %vm197_vm0, %v3618_v22 }
 0x3d3   :  { %3933 = vmatprep.subr.mxu0 %v3535_v21  ;;  %3967 = vmatprep.subr.mxu1 %v5626_v7 }
 0x3d4   :  { %3934 = vmatpush3.msra.mxu0 %v3519_v5  ;;  %3968 = vmatpush3.msra.mxu1 %v3617_v28 }
 0x3d5   :  { %3935 = vmatprep.subr.mxu0 %v3534_v59  ;;  %3969 = vmatprep.subr.mxu1 %v5626_v7 }
 0x3d6   :  { %3936 = vmatpush3.msra.mxu0 %v3518_v37  ;;  %3971 = vmatprep.mubr.msk.f32.mxu1 %vm4118_vm2, %v5626_v7 }
 0x3d7   :  { %3937 = vmatprep.subr.mxu0 %v3533_v56  ;;  %3970 = vmatpush3.msra.mxu1 %v3616_v50 }
 0x3d8   :  { %3938 = vmatpush3.msra.mxu0 %v3517_v32  ;;  %3974 = vmatprep.subr.mxu1 %v5626_v7 }
 0x3d9   :  { %3939 = vmatprep.subr.mxu0 %v3532_v6 }
 0x3da   :  { %3940 = vmatpush3.msra.mxu0 %v3516_v15 }
 0x3db   :  { %3941 = vmatprep.subr.mxu0 %v3531_v61 }
 0x3dc   :  { %3942 = vmatpush3.msra.mxu0 %v3515_v8 }
 0x3dd   :  { %3943 = vmatprep.subr.mxu0 %v3530_v36 }
 0x3de   :  { %3944 = vmatpush3.msra.mxu0 %v3514_v52 }
 0x3df   :  { %3945 = vmatprep.subr.mxu0 %v3529_v53 }
 0x3e0   :  { %3946 = vmatpush3.msra.mxu0 %v3513_v25 }
 0x3e1   :  { %3947 = vmatprep.subr.mxu0 %v3528_v17 }
 0x3e2   :  { %3948 = vmatpush3.msra.mxu0 %v3512_v45 }
 0x3e3   :  { %3949 = vmatprep.subr.mxu0 %v3527_v40 }
 0x3e4   :  { %3950 = vmatpush3.msra.mxu0 %v3511_v19 }
 0x3e5   :  { %3951 = vmatprep.subr.mxu0 %v3526_v35 }
 0x3e6   :  { %3952 = vmatpush3.msra.mxu0 %v3510_v63 }
 0x3e7   :  { %3953 = vmatprep.subr.mxu0 %v3525_v14 }
 0x3e8   :  { %3954 = vmatpush3.msra.mxu0 %v3509_v31 }
 0x489   :  { %v3431_v47 = vpop.f32.mrf.mxu0 }
 0x48a   :  { %v3432_v60 = vadd.f32 %v3431_v47, %v3360_v54 }
 0x48b   :  { %v3433_v34 = vpop.f32.mrf.mxu0 }
 0x48c   :  { %v3434_v41 = vadd.f32 %v3433_v34, %v3364_v51 }
 0x491   :  { %v3502_v9 = vpop.f32.mrf.mxu1 }
 0x492   :  { %v3503_v16 = vadd.f32 %v3502_v9, %v3432_v60 }
 0x493   :  { %v3504_v48 = vpop.f32.mrf.mxu1 }
 0x494   :  { %v3505_v18 = vadd.f32 %v3504_v48, %v3434_v41  ;;  %v3507_v55 = vmax.f32 %v3503_v16, 0.0 }
 0x496   :  { %v3508_v57 = vmax.f32 %v3505_v18, 0.0 }
 0x498   :  { %3609 = vmatprep.mubr.f32.mxu0 %v3508_v57 }
 0x499   :  { %3610 = vmatmul.mubr.f32.vlgmr.msra.gmra.mxu0 %v3507_v55 }
 0x559   :  { %v3955_v13 = vpop.f32.mrf.mxu0 }
 0x55b   :  { %v3956_v23 = vpop.f32.mrf.mxu0 }
 0x55c   :  { %v3957_v20 = vadd.f32 %v3956_v23, %v3955_v13 }
 0x55e   :  { %v3612_v3 = vadd.f32 %v3957_v20, %v3544_v10 }
 0x560   :  { %v3615_v46 = vmax.f32 %v3612_v3, 0.0 }
 0x562   :  { %3972 = vmatmul.mubr.msk.f32.vlgmr.msra.gmra.mxu1 %vm3623_vm3, %v3615_v46 }
 0x563   :  { %3978 = vmatprep.mubr.msk.f32.mxu1 %vm4118_vm2, %v5626_v7  ;;  %3975 = vmatpush3.msk.msra.mxu1 %vm3711_vm4, %v3702_v58 }
 0x564   :  { %3976 = vmatprep.subr.mxu1 %v5626_v7 }
 0x565   :  { %3977 = vmatpush3.msra.mxu1 %v3701_v1 }
 0x622   :  { %v3696_v4 = vpop.f32.mrf.mxu1 }
 0x623   :  { %v3697_v38 = vadd.f32 %v3696_v4, %v3622_v2 }
 0x624   :  { %v3973_v49 = vpop.f32.mrf.mxu1 }
 0x625   :  { %v3700_v30 = vmax.f32 %v3697_v38, 0.0 }
 0x627   :  { %3979 = vmatmul.mubr.msk.f32.vlgmr.msra.gmra.mxu1 %vm3707_vm5, %v3700_v30 }
 0x6e7   :  { %v3781_v12 = vpop.f32.mrf.mxu1 }
 0x6e8   :  { %v3782_v24 = vadd.f32 %v3781_v12, %v3706_v27 }
 0x6e9   :  { %v3980_v29 = vpop.f32.mrf.mxu1 }
 0x6ea   :  { %3785 = vst [vmem:[%s5476_s8] sm:$0xff] %v3782_v24 }
 0x6eb   :  { %3790 = vsyncpa [#allocation3], 1 }
 0x6ec   :  { %3791 = vsyncpa [#allocation5], 1 }
 0x6ed   :  { %3792 = vsyncpa [#allocation8], 1 }

</bundles_post_ra>
